<compile_context>
chip_gen: v7x
topology: tpu7x:2x2x1
jax: 0.10.0
libtpu: 0.0.40
codegen_flags: <defaults>
</compile_context>

<pallas_src>
import math

import jax
import jax.numpy as jnp
from jax import lax
from jax.experimental import pallas as pl
from jax.experimental.pallas import tpu as pltpu

# ----------------------------- model config ---------------------------------
HIDDEN = 32          # hidden_dim
OUT = 32             # out_dim (== hidden so residual stays enabled)
POS_ENC = 8          # pos_enc_dim
N_LAYERS = 4         # L
N_GRAPHS = 4
NODES_PER_G = 8
N = N_GRAPHS * NODES_PER_G

N_AGG = 5            # mean, max, min, dir1-dx, dir1-av
N_SCALE = 3          # identity, amplification, attenuation
CAT_MULT = N_AGG * N_SCALE + 1   # (+1 for the h_in concat in posttrans input)

EPS_DIR = 1e-30
BN_EPS = 1e-5
# finite sentinel for masked max/min.  Safe while |activations| << 1e30; rows
# with zero in-degree are overwritten with 0 afterwards (DGL's empty-reduce
# default), so the sentinel never leaks into the output.
BIG = 1e30

# OGB AtomEncoder vocabulary sizes (9 atom feature columns)
ATOM_FEATURE_DIMS = (119, 4, 12, 12, 10, 6, 6, 2, 2)


# ----------------------------- Pallas kernel ---------------------------------
def fused_dgn_kernel(avg_d_ref,                                     # SMEM (1,)
                     h_atom_ref, pos_ref, wpos_ref, bpos_ref,       # embedding
                     a_ref, eigc_ref, eigr_ref, snorm_ref,          # graph data
                     wfull_ref, bfold_ref, shift_ref,               # fused layer weights
                     member_ref, rw1_ref, rb1_ref, rw2_ref, rb2_ref, rw3_ref, rb3_ref,
                     out_ref):
    n, H = N, HIDDEN

    adl = avg_d_ref[0]                     # dataset-level avg_d['log'] (SMEM scalar)
    inv_adl = 1.0 / adl

    # ---- embedding: AtomEncoder(h) + Linear(pos_enc); in_feat_dropout = id --
    h = (h_atom_ref[...]
         + jnp.dot(pos_ref[...], wpos_ref[...], preferred_element_type=jnp.float32)
         + bpos_ref[...])

    # ---- graph-structure terms, constant across the 4 layers (hoisted) ------
    A = a_ref[...]                                         # [N, N]
    deg = jnp.sum(A, axis=1, keepdims=True)                # in-degree [N, 1]
    has_deg = deg > 0.0
    inv_deg = jnp.where(has_deg,
                        pl.reciprocal(jnp.maximum(deg, 1.0), approx=True), 0.0)
    logd = jnp.log(deg + 1.0)
    amp = logd * inv_adl                                   # amplification scaler
    att = jnp.where(has_deg,                               # attenuation scaler (guarded)
                    adl * pl.reciprocal(jnp.maximum(logd, 1e-12), approx=True), 0.0)

    # directional (dir1) weights from the Laplacian eigenvector (eig_idx = 1);
    # exact division here: the denominator can be as small as EPS_DIR.
    dif = eigr_ref[...] - eigc_ref[...]                    # eig[j] - eig[i], [N, N]
    absdif = A * jnp.abs(dif)
    inv_denom = 1.0 / (jnp.sum(absdif, axis=1, keepdims=True) + EPS_DIR)
    w_dir = (A * dif) * inv_denom                          # [N, N]
    w_abs = absdif * inv_denom                             # [N, N]
    w_sum = jnp.sum(w_dir, axis=1, keepdims=True)          # [N, 1]

    # stacked structure operator: one MXU pass per layer covers mean/dx/av
    S = jnp.concatenate([A, w_dir, w_abs], axis=0)         # [3N, N]

    # edge mask broadcast built once, shared by max and min of every layer
    mask3 = jnp.broadcast_to(A[:, :, None], (n, n, H)) > 0.0
    snorm = snorm_ref[...]

    # ---- DGN layers; h stays on-chip; fori_loop bounds vreg live ranges ------
    def layer_body(l, h_in):
        sh = jnp.dot(S, h_in, preferred_element_type=jnp.float32)   # [3N, H]
        mean_agg = sh[0:n] * inv_deg
        dx_agg = jnp.abs(sh[n:2 * n] - w_sum * h_in)
        av_agg = sh[2 * n:3 * n]

        # masked max / min over in-neighbors; computed sequentially so the two
        # [N, N, H] masked temporaries are never live at the same time.
        hb = jnp.broadcast_to(h_in[None, :, :], (n, n, H))
        max_agg = jnp.where(has_deg,
                            jnp.max(jnp.where(mask3, hb, -BIG), axis=1), 0.0)
        min_agg = jnp.where(has_deg,
                            jnp.min(jnp.where(mask3, hb, BIG), axis=1), 0.0)

        # posttrans Linear over cat([id, amp, att](aggs), h_in) as ONE matmul:
        # wfull column blocks = [identity | amplification | attenuation] images
        # of [agg | h_in]; (diag(s) X) W == diag(s) (X W) for per-row scalars,
        # so the scaled copies of the aggregations are never materialized.
        # BatchNorm scale is already folded into wfull / bfold.
        agg = jnp.concatenate([mean_agg, max_agg, min_agg, dx_agg, av_agg, h_in],
                              axis=1)                                # [N, 6H]
        y = jnp.dot(agg, wfull_ref[l], preferred_element_type=jnp.float32)  # [N, 3H]
        z = y[:, 0:H] + amp * y[:, H:2 * H] + att * y[:, 2 * H:3 * H] + bfold_ref[l]

        z = snorm * z + shift_ref[l]          # graph norm + folded BN shift
        z = jnp.maximum(z, 0.0)               # ReLU; dropout = identity
        return h_in + z                       # residual

    h = lax.fori_loop(0, N_LAYERS, layer_body, h)

    # ---- readout: dgl.mean_nodes + MLPReadout(out_dim, 1, L=2) ---------------
    hg = jnp.dot(member_ref[...], h, preferred_element_type=jnp.float32)
    y = jnp.maximum(jnp.dot(hg, rw1_ref[...], preferred_element_type=jnp.float32)
                    + rb1_ref[...], 0.0)
    y = jnp.maximum(jnp.dot(y, rw2_ref[...], preferred_element_type=jnp.float32)
                    + rb2_ref[...], 0.0)
    out_ref[...] = jnp.dot(y, rw3_ref[...], preferred_element_type=jnp.float32) \
        + rb3_ref[...]


# ----------------------------- wrapper ----------------------------------------
def _vmem():
    return pl.BlockSpec(memory_space=pltpu.MemorySpace.VMEM)


def _smem():
    return pl.BlockSpec(memory_space=pltpu.MemorySpace.SMEM)


def atom_encoder(x_atom, emb_tables):
    # AtomEncoder: sum of per-column embedding lookups (gathers stay in the
    # surrounding jit; they have no clean dense-Pallas equivalent at this size).
    h = jnp.zeros((x_atom.shape[0], HIDDEN), jnp.float32)
    for k, tbl in enumerate(emb_tables):
        h = h + jnp.take(tbl, x_atom[:, k], axis=0)
    return h


def dgn_net_forward(params, A, x_atom, pos_enc, eig, snorm_n, member):
    # edge_feat=False: the edge-feature branch (BondEncoder / pretrans) is unused.
    # TODO(synk): edge_feat=True pretrans path (BondEncoder + per-edge MLP) not implemented.
    h_atom = atom_encoder(x_atom, params['atom_emb'])

    eig_col = eig[:, 1:2]                                  # eig_idx = 1 for dir1-*
    eig_row = jnp.transpose(eig_col)

    args = (params['avg_d_log'],
            h_atom, pos_enc, params['w_pos'], params['b_pos'],
            A, eig_col, eig_row, snorm_n,
            params['w_full'], params['b_fold'], params['bn_shift'],
            member, params['r_w1'], params['r_b1'], params['r_w2'],
            params['r_b2'], params['r_w3'], params['r_b3'])

    in_specs = [_smem()] + [_vmem()] * (len(args) - 1)

    return pl.pallas_call(
        fused_dgn_kernel,
        out_shape=jax.ShapeDtypeStruct((N_GRAPHS, 1), jnp.float32),
        in_specs=in_specs,
        out_specs=_vmem(),
        compiler_params=pltpu.CompilerParams(vmem_limit_bytes=8 * 1024 * 1024),
    )(*args)


# ----------------------------- parameter init --------------------------------
def init_params(key):
    keys = iter(jax.random.split(key, 64))
    p = {}
    p['atom_emb'] = [0.1 * jax.random.normal(next(keys), (d, HIDDEN), jnp.float32)
                     for d in ATOM_FEATURE_DIMS]
    p['w_pos'] = (1.0 / math.sqrt(POS_ENC)) * jax.random.normal(
        next(keys), (POS_ENC, HIDDEN), jnp.float32)
    p['b_pos'] = jnp.zeros((1, HIDDEN), jnp.float32)

    # posttrans weights: the original [CAT_MULT*in_dim, out_dim] matrix is split
    # into [id | amp | att | h_in] row blocks, re-packed as a single fused weight
    #   W_full[[agg | h_in] rows, [id | amp | att] column blocks]  (zeros for the
    # h_in x {amp, att} blocks), and the BatchNorm scale is folded in.
    w_full_l, b_fold_l, shift_l = [], [], []
    for l in range(N_LAYERS):
        in_dim = HIDDEN
        out_dim = HIDDEN if l < N_LAYERS - 1 else OUT
        fan_in = CAT_MULT * in_dim
        w = (1.0 / math.sqrt(fan_in)) * jax.random.normal(
            next(keys), (fan_in, out_dim), jnp.float32)
        b = jnp.zeros((1, out_dim), jnp.float32)
        s = N_AGG * in_dim
        w_id, w_amp, w_att, w_h = w[0:s], w[s:2 * s], w[2 * s:3 * s], w[3 * s:]

        # non-trivial ("trained") BatchNorm affine + running stats
        gamma = 1.0 + 0.1 * jax.random.normal(next(keys), (1, out_dim), jnp.float32)
        beta = 0.1 * jax.random.normal(next(keys), (1, out_dim), jnp.float32)
        rmean = 0.1 * jax.random.normal(next(keys), (1, out_dim), jnp.float32)
        rvar = 1.0 + 0.1 * jax.random.uniform(next(keys), (1, out_dim), jnp.float32)

        s_bn = gamma / jnp.sqrt(rvar + BN_EPS)                       # [1, out]
        top = jnp.concatenate([w_id, w_amp, w_att], axis=1)          # [5H, 3*out]
        bot = jnp.concatenate(
            [w_h, jnp.zeros((in_dim, 2 * out_dim), jnp.float32)], axis=1)   # [H, 3*out]
        w_fused = jnp.concatenate([top, bot], axis=0)                # [6H, 3*out]
        w_fused = w_fused * jnp.tile(s_bn, (1, 3))                   # BN scale folded
        w_full_l.append(w_fused)
        b_fold_l.append(b * s_bn)
        shift_l.append(beta - rmean * s_bn)

    p['w_full'] = jnp.stack(w_full_l)     # [L, 6H, 3*out]
    p['b_fold'] = jnp.stack(b_fold_l)     # [L, 1, out]
    p['bn_shift'] = jnp.stack(shift_l)    # [L, 1, out]

    d0, d1, d2 = OUT, OUT // 2, OUT // 4                   # MLPReadout(out_dim, 1, L=2)
    p['r_w1'] = (1.0 / math.sqrt(d0)) * jax.random.normal(next(keys), (d0, d1), jnp.float32)
    p['r_b1'] = jnp.zeros((1, d1), jnp.float32)
    p['r_w2'] = (1.0 / math.sqrt(d1)) * jax.random.normal(next(keys), (d1, d2), jnp.float32)
    p['r_b2'] = jnp.zeros((1, d2), jnp.float32)
    p['r_w3'] = (1.0 / math.sqrt(d2)) * jax.random.normal(next(keys), (d2, 1), jnp.float32)
    p['r_b3'] = jnp.zeros((1, 1), jnp.float32)
    return p


# ----------------------------- main -------------------------------------------
def ring_adj(n):
    idx = jnp.arange(n)
    a = jnp.zeros((n, n), jnp.float32)
    a = a.at[idx, (idx + 1) % n].set(1.0)
    a = a.at[idx, (idx - 1) % n].set(1.0)
    return a


if __name__ == "__main__":
    key = jax.random.PRNGKey(0)
    k_atom, k_pos, k_eig = jax.random.split(key, 3)

    # batched graph: N_GRAPHS independent 8-node rings (block-diagonal adjacency)
    a8 = ring_adj(NODES_PER_G)
    A = jnp.zeros((N, N), jnp.float32)
    for g in range(N_GRAPHS):
        lo = g * NODES_PER_G
        A = A.at[lo:lo + NODES_PER_G, lo:lo + NODES_PER_G].set(a8)

    # node inputs
    atom_keys = jax.random.split(k_atom, len(ATOM_FEATURE_DIMS))
    x_atom = jnp.stack(
        [jax.random.randint(ak, (N,), 0, d, dtype=jnp.int32)
         for ak, d in zip(atom_keys, ATOM_FEATURE_DIMS)], axis=1)          # [N, 9]
    pos_enc = jax.random.normal(k_pos, (N, POS_ENC), jnp.float32)          # g.ndata['pos_enc']
    eig = jax.random.normal(k_eig, (N, 2), jnp.float32)                    # g.ndata['eig']

    snorm_n = jnp.full((N, 1), 1.0 / math.sqrt(NODES_PER_G), jnp.float32)  # graph norm
    member = jnp.zeros((N_GRAPHS, N), jnp.float32)
    for g in range(N_GRAPHS):
        member = member.at[g, g * NODES_PER_G:(g + 1) * NODES_PER_G].set(1.0 / NODES_PER_G)

    params = init_params(jax.random.PRNGKey(42))
    # avg_d['log'] is a DATASET-level statistic (as in net_params['avg_d'] of the
    # original module); computed once here, not per batch inside the forward.
    params['avg_d_log'] = jnp.mean(
        jnp.log(jnp.sum(A, axis=1) + 1.0)).reshape(1).astype(jnp.float32)

    fwd = jax.jit(dgn_net_forward)
    scores = fwd(params, A, x_atom, pos_enc, eig, snorm_n, member)
    scores = jax.block_until_ready(scores)
    assert scores.shape == (N_GRAPHS, 1) and scores.dtype == jnp.float32
    print("KERNEL_OK")
</pallas_src>

<mosaic_0001>
module attributes {stable_mosaic.version = 11 : i64} {
  func.func @fused_dgn_kernel(%arg0: memref<1xf32, #tpu.memory_space<smem>>, %arg1: memref<32x32xf32, #tpu.memory_space<vmem>>, %arg2: memref<32x8xf32, #tpu.memory_space<vmem>>, %arg3: memref<8x32xf32, #tpu.memory_space<vmem>>, %arg4: memref<1x32xf32, #tpu.memory_space<vmem>>, %arg5: memref<32x32xf32, #tpu.memory_space<vmem>>, %arg6: memref<32x1xf32, #tpu.memory_space<vmem>>, %arg7: memref<1x32xf32, #tpu.memory_space<vmem>>, %arg8: memref<32x1xf32, #tpu.memory_space<vmem>>, %arg9: memref<4x192x96xf32, #tpu.memory_space<vmem>>, %arg10: memref<4x1x32xf32, #tpu.memory_space<vmem>>, %arg11: memref<4x1x32xf32, #tpu.memory_space<vmem>>, %arg12: memref<4x32xf32, #tpu.memory_space<vmem>>, %arg13: memref<32x16xf32, #tpu.memory_space<vmem>>, %arg14: memref<1x16xf32, #tpu.memory_space<vmem>>, %arg15: memref<16x8xf32, #tpu.memory_space<vmem>>, %arg16: memref<1x8xf32, #tpu.memory_space<vmem>>, %arg17: memref<8x1xf32, #tpu.memory_space<vmem>>, %arg18: memref<1x1xf32, #tpu.memory_space<vmem>>, %arg19: memref<4x1xf32, #tpu.memory_space<vmem>>) attributes {dimension_semantics = [], scalar_prefetch = 0 : i64, scratch_operands = 0 : i64, tpu.core_type = #tpu.core_type<tc>} {
    %c0 = arith.constant 0 : index
    %0 = memref.load %arg0[%c0] : memref<1xf32, #tpu.memory_space<smem>>
    %cst = arith.constant 1.000000e+00 : f32
    %1 = arith.divf %cst, %0 : f32
    %c0_0 = arith.constant 0 : index
    %c0_1 = arith.constant 0 : index
    %2 = vector.load %arg1[%c0_0, %c0_1] : memref<32x32xf32, #tpu.memory_space<vmem>>, vector<32x32xf32>
    %c0_2 = arith.constant 0 : index
    %c0_3 = arith.constant 0 : index
    %3 = vector.load %arg2[%c0_2, %c0_3] : memref<32x8xf32, #tpu.memory_space<vmem>>, vector<32x8xf32>
    %c0_4 = arith.constant 0 : index
    %c0_5 = arith.constant 0 : index
    %4 = vector.load %arg3[%c0_4, %c0_5] : memref<8x32xf32, #tpu.memory_space<vmem>>, vector<8x32xf32>
    %cst_6 = arith.constant dense<0.000000e+00> : vector<32x32xf32>
    %5 = tpu.matmul %3, %4, %cst_6 {dimension_numbers = #tpu.dot_dimension_numbers<[1], [0], [0], [1], [0, 0, 1, 1], [], []>} : vector<32x8xf32>, vector<8x32xf32>, vector<32x32xf32> -> vector<32x32xf32>
    %6 = arith.addf %2, %5 : vector<32x32xf32>
    %c0_7 = arith.constant 0 : index
    %c0_8 = arith.constant 0 : index
    %7 = vector.load %arg4[%c0_7, %c0_8] : memref<1x32xf32, #tpu.memory_space<vmem>>, vector<1x32xf32>
    %8 = vector.broadcast %7 : vector<1x32xf32> to vector<32x32xf32>
    %9 = arith.addf %6, %8 : vector<32x32xf32>
    %c0_9 = arith.constant 0 : index
    %c0_10 = arith.constant 0 : index
    %10 = vector.load %arg5[%c0_9, %c0_10] : memref<32x32xf32, #tpu.memory_space<vmem>>, vector<32x32xf32>
    %cst_11 = arith.constant dense<0.000000e+00> : vector<32xf32>
    %11 = vector.multi_reduction <add>, %10, %cst_11 [1] : vector<32x32xf32> to vector<32xf32>
    %12 = vector.shape_cast %11 : vector<32xf32> to vector<32x1xf32>
    %cst_12 = arith.constant 0.000000e+00 : f32
    %13 = vector.broadcast %cst_12 : f32 to vector<32x1xf32>
    %14 = arith.cmpf ogt, %12, %13 : vector<32x1xf32>
    %cst_13 = arith.constant 1.000000e+00 : f32
    %15 = vector.broadcast %cst_13 : f32 to vector<32x1xf32>
    %16 = arith.maximumf %12, %15 : vector<32x1xf32>
    %17 = tpu.reciprocal %16 {approx = true} : vector<32x1xf32> -> vector<32x1xf32>
    %cst_14 = arith.constant 0.000000e+00 : f32
    %18 = vector.broadcast %cst_14 : f32 to vector<32x1xf32>
    %19 = arith.select %14, %17, %18 : vector<32x1xi1>, vector<32x1xf32>
    %cst_15 = arith.constant 1.000000e+00 : f32
    %20 = vector.broadcast %cst_15 : f32 to vector<32x1xf32>
    %21 = arith.addf %12, %20 : vector<32x1xf32>
    %22 = math.log %21 : vector<32x1xf32>
    %23 = vector.broadcast %1 : f32 to vector<32x1xf32>
    %24 = arith.mulf %22, %23 : vector<32x1xf32>
    %cst_16 = arith.constant 9.99999996E-13 : f32
    %25 = vector.broadcast %cst_16 : f32 to vector<32x1xf32>
    %26 = arith.maximumf %22, %25 : vector<32x1xf32>
    %27 = tpu.reciprocal %26 {approx = true} : vector<32x1xf32> -> vector<32x1xf32>
    %28 = vector.broadcast %0 : f32 to vector<32x1xf32>
    %29 = arith.mulf %28, %27 : vector<32x1xf32>
    %cst_17 = arith.constant 0.000000e+00 : f32
    %30 = vector.broadcast %cst_17 : f32 to vector<32x1xf32>
    %31 = arith.select %14, %29, %30 : vector<32x1xi1>, vector<32x1xf32>
    %c0_18 = arith.constant 0 : index
    %c0_19 = arith.constant 0 : index
    %32 = vector.load %arg7[%c0_18, %c0_19] : memref<1x32xf32, #tpu.memory_space<vmem>>, vector<1x32xf32>
    %c0_20 = arith.constant 0 : index
    %c0_21 = arith.constant 0 : index
    %33 = vector.load %arg6[%c0_20, %c0_21] : memref<32x1xf32, #tpu.memory_space<vmem>>, vector<32x1xf32>
    %34 = vector.broadcast %32 : vector<1x32xf32> to vector<32x32xf32>
    %35 = vector.broadcast %33 : vector<32x1xf32> to vector<32x32xf32>
    %36 = arith.subf %34, %35 : vector<32x32xf32>
    %37 = math.absf %36 : vector<32x32xf32>
    %38 = arith.mulf %10, %37 : vector<32x32xf32>
    %cst_22 = arith.constant dense<0.000000e+00> : vector<32xf32>
    %39 = vector.multi_reduction <add>, %38, %cst_22 [1] : vector<32x32xf32> to vector<32xf32>
    %40 = vector.shape_cast %39 : vector<32xf32> to vector<32x1xf32>
    %cst_23 = arith.constant 1.000000e-30 : f32
    %41 = vector.broadcast %cst_23 : f32 to vector<32x1xf32>
    %42 = arith.addf %40, %41 : vector<32x1xf32>
    %cst_24 = arith.constant 1.000000e+00 : f32
    %43 = vector.broadcast %cst_24 : f32 to vector<32x1xf32>
    %44 = arith.divf %43, %42 : vector<32x1xf32>
    %45 = arith.mulf %10, %36 : vector<32x32xf32>
    %46 = vector.broadcast %44 : vector<32x1xf32> to vector<32x32xf32>
    %47 = arith.mulf %45, %46 : vector<32x32xf32>
    %48 = vector.broadcast %44 : vector<32x1xf32> to vector<32x32xf32>
    %49 = arith.mulf %38, %48 : vector<32x32xf32>
    %cst_25 = arith.constant dense<0.000000e+00> : vector<32xf32>
    %50 = vector.multi_reduction <add>, %47, %cst_25 [1] : vector<32x32xf32> to vector<32xf32>
    %51 = vector.shape_cast %50 : vector<32xf32> to vector<32x1xf32>
    %52 = tpu.concatenate %10, %47, %49 in 0 : vector<32x32xf32>, vector<32x32xf32>, vector<32x32xf32> -> vector<96x32xf32>
    %53 = vector.shape_cast %10 : vector<32x32xf32> to vector<32x32x1xf32>
    %54 = vector.shape_cast %53 : vector<32x32x1xf32> to vector<32x32x1xf32>
    %55 = vector.broadcast %54 : vector<32x32x1xf32> to vector<32x32x32xf32>
    %cst_26 = arith.constant 0.000000e+00 : f32
    %56 = vector.broadcast %cst_26 : f32 to vector<32x32x32xf32>
    %57 = arith.cmpf ogt, %55, %56 : vector<32x32x32xf32>
    %c0_27 = arith.constant 0 : index
    %c0_28 = arith.constant 0 : index
    %58 = vector.load %arg8[%c0_27, %c0_28] : memref<32x1xf32, #tpu.memory_space<vmem>>, vector<32x1xf32>
    %c0_i32 = arith.constant 0 : i32
    %c4_i32 = arith.constant 4 : i32
    %59 = arith.addi %c0_i32, %c4_i32 : i32
    %c1_i32 = arith.constant 1 : i32
    %60 = scf.for %arg20 = %c0_i32 to %59 step %c1_i32 iter_args(%arg21 = %9) -> (vector<32x32xf32>)  : i32 {
      %cst_52 = arith.constant dense<0.000000e+00> : vector<96x32xf32>
      %83 = tpu.matmul %52, %arg21, %cst_52 {dimension_numbers = #tpu.dot_dimension_numbers<[1], [0], [0], [1], [0, 0, 1, 1], [], []>} : vector<96x32xf32>, vector<32x32xf32>, vector<96x32xf32> -> vector<96x32xf32>
      %84 = vector.extract_strided_slice %83 {offsets = [0, 0], sizes = [32, 32], strides = [1, 1]} : vector<96x32xf32> to vector<32x32xf32>
      %85 = vector.broadcast %19 : vector<32x1xf32> to vector<32x32xf32>
      %86 = arith.mulf %84, %85 : vector<32x32xf32>
      %87 = vector.extract_strided_slice %83 {offsets = [32, 0], sizes = [32, 32], strides = [1, 1]} : vector<96x32xf32> to vector<32x32xf32>
      %88 = vector.broadcast %51 : vector<32x1xf32> to vector<32x32xf32>
      %89 = arith.mulf %88, %arg21 : vector<32x32xf32>
      %90 = arith.subf %87, %89 : vector<32x32xf32>
      %91 = math.absf %90 : vector<32x32xf32>
      %92 = vector.extract_strided_slice %83 {offsets = [64, 0], sizes = [32, 32], strides = [1, 1]} : vector<96x32xf32> to vector<32x32xf32>
      %93 = vector.shape_cast %arg21 : vector<32x32xf32> to vector<1x32x32xf32>
      %94 = vector.shape_cast %93 : vector<1x32x32xf32> to vector<1x32x32xf32>
      %95 = vector.broadcast %94 : vector<1x32x32xf32> to vector<32x32x32xf32>
      %cst_53 = arith.constant -1.000000e+30 : f32
      %96 = vector.broadcast %cst_53 : f32 to vector<32x32x32xf32>
      %97 = arith.select %57, %95, %96 : vector<32x32x32xi1>, vector<32x32x32xf32>
      %cst_54 = arith.constant dense<0xFF800000> : vector<32x32xf32>
      %98 = vector.multi_reduction <maximumf>, %97, %cst_54 [1] : vector<32x32x32xf32> to vector<32x32xf32>
      %cst_55 = arith.constant 0.000000e+00 : f32
      %99 = vector.shape_cast %14 : vector<32x1xi1> to vector<32x1xi1>
      %100 = vector.broadcast %99 : vector<32x1xi1> to vector<32x32xi1>
      %101 = vector.broadcast %cst_55 : f32 to vector<32x32xf32>
      %102 = arith.select %100, %98, %101 : vector<32x32xi1>, vector<32x32xf32>
      %cst_56 = arith.constant 1.000000e+30 : f32
      %103 = vector.broadcast %cst_56 : f32 to vector<32x32x32xf32>
      %104 = arith.select %57, %95, %103 : vector<32x32x32xi1>, vector<32x32x32xf32>
      %cst_57 = arith.constant dense<0x7F800000> : vector<32x32xf32>
      %105 = vector.multi_reduction <minimumf>, %104, %cst_57 [1] : vector<32x32x32xf32> to vector<32x32xf32>
      %cst_58 = arith.constant 0.000000e+00 : f32
      %106 = vector.shape_cast %14 : vector<32x1xi1> to vector<32x1xi1>
      %107 = vector.broadcast %106 : vector<32x1xi1> to vector<32x32xi1>
      %108 = vector.broadcast %cst_58 : f32 to vector<32x32xf32>
      %109 = arith.select %107, %105, %108 : vector<32x32xi1>, vector<32x32xf32>
      %110 = tpu.concatenate %86, %102, %109, %91, %92, %arg21 in 1 : vector<32x32xf32>, vector<32x32xf32>, vector<32x32xf32>, vector<32x32xf32>, vector<32x32xf32>, vector<32x32xf32> -> vector<32x192xf32>
      %111 = arith.index_cast %arg20 : i32 to index
      %c0_59 = arith.constant 0 : index
      %c0_60 = arith.constant 0 : index
      %112 = vector.load %arg9[%111, %c0_59, %c0_60] : memref<4x192x96xf32, #tpu.memory_space<vmem>>, vector<1x192x96xf32>
      %113 = vector.shape_cast %112 : vector<1x192x96xf32> to vector<192x96xf32>
      %cst_61 = arith.constant dense<0.000000e+00> : vector<32x96xf32>
      %114 = tpu.matmul %110, %113, %cst_61 {dimension_numbers = #tpu.dot_dimension_numbers<[1], [0], [0], [1], [0, 0, 1, 1], [], []>} : vector<32x192xf32>, vector<192x96xf32>, vector<32x96xf32> -> vector<32x96xf32>
      %115 = vector.extract_strided_slice %114 {offsets = [0, 0], sizes = [32, 32], strides = [1, 1]} : vector<32x96xf32> to vector<32x32xf32>
      %116 = vector.extract_strided_slice %114 {offsets = [0, 32], sizes = [32, 32], strides = [1, 1]} : vector<32x96xf32> to vector<32x32xf32>
      %117 = vector.broadcast %24 : vector<32x1xf32> to vector<32x32xf32>
      %118 = arith.mulf %117, %116 : vector<32x32xf32>
      %119 = arith.addf %115, %118 : vector<32x32xf32>
      %120 = vector.extract_strided_slice %114 {offsets = [0, 64], sizes = [32, 32], strides = [1, 1]} : vector<32x96xf32> to vector<32x32xf32>
      %121 = vector.broadcast %31 : vector<32x1xf32> to vector<32x32xf32>
      %122 = arith.mulf %121, %120 : vector<32x32xf32>
      %123 = arith.addf %119, %122 : vector<32x32xf32>
      %124 = arith.index_cast %arg20 : i32 to index
      %c0_62 = arith.constant 0 : index
      %c0_63 = arith.constant 0 : index
      %125 = vector.load %arg10[%124, %c0_62, %c0_63] : memref<4x1x32xf32, #tpu.memory_space<vmem>>, vector<1x1x32xf32>
      %126 = vector.shape_cast %125 : vector<1x1x32xf32> to vector<1x32xf32>
      %127 = vector.broadcast %126 : vector<1x32xf32> to vector<32x32xf32>
      %128 = arith.addf %123, %127 : vector<32x32xf32>
      %129 = vector.broadcast %58 : vector<32x1xf32> to vector<32x32xf32>
      %130 = arith.mulf %129, %128 : vector<32x32xf32>
      %131 = arith.index_cast %arg20 : i32 to index
      %c0_64 = arith.constant 0 : index
      %c0_65 = arith.constant 0 : index
      %132 = vector.load %arg11[%131, %c0_64, %c0_65] : memref<4x1x32xf32, #tpu.memory_space<vmem>>, vector<1x1x32xf32>
      %133 = vector.shape_cast %132 : vector<1x1x32xf32> to vector<1x32xf32>
      %134 = vector.broadcast %133 : vector<1x32xf32> to vector<32x32xf32>
      %135 = arith.addf %130, %134 : vector<32x32xf32>
      %cst_66 = arith.constant 0.000000e+00 : f32
      %136 = vector.broadcast %cst_66 : f32 to vector<32x32xf32>
      %137 = arith.maximumf %135, %136 : vector<32x32xf32>
      %138 = arith.addf %arg21, %137 : vector<32x32xf32>
      scf.yield %138 : vector<32x32xf32>
    }
    %c4_i32_29 = arith.constant 4 : i32
    %c0_30 = arith.constant 0 : index
    %c0_31 = arith.constant 0 : index
    %61 = vector.load %arg12[%c0_30, %c0_31] : memref<4x32xf32, #tpu.memory_space<vmem>>, vector<4x32xf32>
    %cst_32 = arith.constant dense<0.000000e+00> : vector<4x32xf32>
    %62 = tpu.matmul %61, %60, %cst_32 {dimension_numbers = #tpu.dot_dimension_numbers<[1], [0], [0], [1], [0, 0, 1, 1], [], []>} : vector<4x32xf32>, vector<32x32xf32>, vector<4x32xf32> -> vector<4x32xf32>
    %c0_33 = arith.constant 0 : index
    %c0_34 = arith.constant 0 : index
    %63 = vector.load %arg13[%c0_33, %c0_34] : memref<32x16xf32, #tpu.memory_space<vmem>>, vector<32x16xf32>
    %cst_35 = arith.constant dense<0.000000e+00> : vector<4x16xf32>
    %64 = tpu.matmul %62, %63, %cst_35 {dimension_numbers = #tpu.dot_dimension_numbers<[1], [0], [0], [1], [0, 0, 1, 1], [], []>} : vector<4x32xf32>, vector<32x16xf32>, vector<4x16xf32> -> vector<4x16xf32>
    %c0_36 = arith.constant 0 : index
    %c0_37 = arith.constant 0 : index
    %65 = vector.load %arg14[%c0_36, %c0_37] : memref<1x16xf32, #tpu.memory_space<vmem>>, vector<1x16xf32>
    %66 = vector.broadcast %65 : vector<1x16xf32> to vector<4x16xf32>
    %67 = arith.addf %64, %66 : vector<4x16xf32>
    %cst_38 = arith.constant 0.000000e+00 : f32
    %68 = vector.broadcast %cst_38 : f32 to vector<4x16xf32>
    %69 = arith.maximumf %67, %68 : vector<4x16xf32>
    %c0_39 = arith.constant 0 : index
    %c0_40 = arith.constant 0 : index
    %70 = vector.load %arg15[%c0_39, %c0_40] : memref<16x8xf32, #tpu.memory_space<vmem>>, vector<16x8xf32>
    %cst_41 = arith.constant dense<0.000000e+00> : vector<4x8xf32>
    %71 = tpu.matmul %69, %70, %cst_41 {dimension_numbers = #tpu.dot_dimension_numbers<[1], [0], [0], [1], [0, 0, 1, 1], [], []>} : vector<4x16xf32>, vector<16x8xf32>, vector<4x8xf32> -> vector<4x8xf32>
    %c0_42 = arith.constant 0 : index
    %c0_43 = arith.constant 0 : index
    %72 = vector.load %arg16[%c0_42, %c0_43] : memref<1x8xf32, #tpu.memory_space<vmem>>, vector<1x8xf32>
    %73 = vector.broadcast %72 : vector<1x8xf32> to vector<4x8xf32>
    %74 = arith.addf %71, %73 : vector<4x8xf32>
    %cst_44 = arith.constant 0.000000e+00 : f32
    %75 = vector.broadcast %cst_44 : f32 to vector<4x8xf32>
    %76 = arith.maximumf %74, %75 : vector<4x8xf32>
    %c0_45 = arith.constant 0 : index
    %c0_46 = arith.constant 0 : index
    %77 = vector.load %arg17[%c0_45, %c0_46] : memref<8x1xf32, #tpu.memory_space<vmem>>, vector<8x1xf32>
    %cst_47 = arith.constant dense<0.000000e+00> : vector<4x1xf32>
    %78 = tpu.matmul %76, %77, %cst_47 {dimension_numbers = #tpu.dot_dimension_numbers<[1], [0], [0], [1], [0, 0, 1, 1], [], []>} : vector<4x8xf32>, vector<8x1xf32>, vector<4x1xf32> -> vector<4x1xf32>
    %c0_48 = arith.constant 0 : index
    %c0_49 = arith.constant 0 : index
    %79 = vector.load %arg18[%c0_48, %c0_49] : memref<1x1xf32, #tpu.memory_space<vmem>>, vector<1x1xf32>
    %80 = vector.broadcast %79 : vector<1x1xf32> to vector<4x1xf32>
    %81 = arith.addf %78, %80 : vector<4x1xf32>
    %c0_50 = arith.constant 0 : index
    %c0_51 = arith.constant 0 : index
    %82 = vector.load %arg19[%c0_50, %c0_51] : memref<4x1xf32, #tpu.memory_space<vmem>>, vector<4x1xf32>
    tpu.vector_store %arg19[%c0_50, %c0_51], %81 {strides = array<i32>} : memref<4x1xf32, #tpu.memory_space<vmem>>, vector<4x1xf32>,
    return
  }
}

</mosaic_0001>

<bundles_post_ra>
// kernel: dgn_net_forward.1
= control target key start
LH: loop header
LB: loop body
LE: loop exit
PB: predicated region body
PF: predicated region fallthrough
CT: control target
= control target key end

     0   :  { %vm195_vm0 = vcmask 261120   ;;  %v3554_v3 = vmov 0   ;;  %v349_v12 = vlaneseq  ;;  %s6698_s5 = inlined_call_operand.vmem [shape: f32[32,32], index: 5, kind: input, shape index: {}]   ;;  %s6699_s0 = inlined_call_operand.<no memory space> [shape: f32[1], index: 0, kind: input, shape index: {}]   ;;  %s6700_s9 = inlined_call_operand.vmem [shape: f32[4,192,96], index: 9, kind: input, shape index: {}]   ;;  %s6701_s10 = inlined_call_operand.vmem [shape: f32[4,1,32], index: 10, kind: input, shape index: {}]   ;;  %s6702_s11 = inlined_call_operand.vmem [shape: f32[4,1,32], index: 11, kind: input, shape index: {}]   ;;  %s6703_s12 = inlined_call_operand.vmem [shape: f32[4,32], index: 12, kind: input, shape index: {}]   ;;  %s6704_s13 = inlined_call_operand.vmem [shape: f32[32,16], index: 13, kind: input, shape index: {}]   ;;  %s6705_s14 = inlined_call_operand.vmem [shape: f32[1,16], index: 14, kind: input, shape index: {}]   ;;  %s6706_s15 = inlined_call_operand.vmem [shape: f32[16,8], index: 15, kind: input, shape index: {}]   ;;  %s6707_s16 = inlined_call_operand.vmem [shape: f32[1,8], index: 16, kind: input, shape index: {}]   ;;  %s6708_s17 = inlined_call_operand.vmem [shape: f32[8,1], index: 17, kind: input, shape index: {}]   ;;  %s6709_s18 = inlined_call_operand.<no memory space> [shape: f32[1,1], index: 18, kind: input, shape index: {}]   ;;  %s6710_s19 = inlined_call_operand.vmem [shape: f32[4,1], index: 19, kind: output, shape index: {}]   ;;  %s6711_s6 = inlined_call_operand.vmem [shape: f32[32,1], index: 6, kind: input, shape index: {}]   ;;  %s6712_s7 = inlined_call_operand.vmem [shape: f32[1,32], index: 7, kind: input, shape index: {}]   ;;  %s6713_s3 = inlined_call_operand.vmem [shape: f32[8,32], index: 3, kind: input, shape index: {}]   ;;  %s6714_s2 = inlined_call_operand.vmem [shape: f32[32,8], index: 2, kind: input, shape index: {}]   ;;  %s6715_s1 = inlined_call_operand.vmem [shape: f32[32,32], index: 1, kind: input, shape index: {}]   ;;  %s6716_s4 = inlined_call_operand.vmem [shape: f32[1,32], index: 4, kind: input, shape index: {}]   ;;  %s6717_s8 = inlined_call_operand.vmem [shape: f32[32,1], index: 8, kind: input, shape index: {}]  }
   0x1   :  { %6965 = sst [smem:[#allocation181_spill]] %s6698_s5  ;;  %3447 = vset.pattern.permute.xlu1 %v3554_v3  ;;  %3446 = vset.pattern.permute.xlu0 %v3554_v3  ;;  %v25_v4 = vstv %s6709_s18  ;;  %v260_v13 = vld [vmem:[%s6711_s6 + $0x8] sm:$0xff]  ;;  %v261_v15 = vld [vmem:[%s6711_s6 + $0x10] sm:$0xff]  ;;  %v259_v16 = vld [vmem:[%s6711_s6] sm:$0xff] }
   0x2   :  { %6966 = sst [smem:[#allocation182_spill]] %s6699_s0  ;;  %s6969_s20 = sld [smem:[#allocation181_spill]]  ;;  %26 = vst [vmem:[#allocation3] sm:$0x1] %v25_v4  ;;  %v3703_v14 = vshrl.u32 %v349_v12, 7  ;;  %v262_v18 = vld [vmem:[%s6711_s6 + $0x18] sm:$0xff] }
   0x3   :  { %6967 = sst [smem:[#allocation183_spill]] %s6700_s9  ;;  %s6974_s28 = sld [smem:[#allocation182_spill]]  ;;  %v3766_v42 = vld [vmem:[%s6712_s7] ss:$0 sm:$0xff] }
   0x4   :  { %6968 = sst [smem:[#allocation184_spill]] %s6701_s10  ;;  %v3712_v17 = vsub.s32 0, %v3703_v14  ;;  %v3720_v20 = vsub.s32 1, %v3703_v14  ;;  %v3725_v22 = vsub.s32 2, %v3703_v14  ;;  %v3730_v24 = vsub.s32 3, %v3703_v14 }
   0x5   :  { %v3735_v26 = vsub.s32 4, %v3703_v14  ;;  %v3740_v28 = vsub.s32 5, %v3703_v14 }
   0x8   :  { %v3666_v0 = vld [vmem:[%s6969_s20 + $0x10] sm:$0xff]  ;;  %v3671_v1 = vld [vmem:[%s6969_s20] sm:$0xff]  ;;  %v3676_v2 = vld [vmem:[%s6969_s20 + $0x18] sm:$0xff] }
   0x9   :  { %6970 = vst [vmem:[#allocation4_spill] sm:$0xff] %v3666_v0  ;;  %6971 = vst [vmem:[#allocation5_spill] sm:$0xff] %v3671_v1  ;;  %v202_v5 = vsel %vm195_vm0, %v3666_v0, 0.0  ;;  %v196_v6 = vsel %vm195_vm0, %v3671_v1, 0.0  ;;  %v3688_v7 = vld [vmem:[%s6969_s20 + $0x8] sm:$0xff]  ;;  %v3693_v8 = vstv %s6974_s28  ;;  %v205_v9 = vsel %vm195_vm0, %v3676_v2, 0.0 }
   0xa   :  { %6972 = vst [vmem:[#allocation6_spill] sm:$0xff] %v3676_v2  ;;  %6973 = vst [vmem:[#allocation7_spill] sm:$0xff] %v3688_v7  ;;  %203 = vadd.xlane.f32.xlu1 %v202_v5  ;;  %197 = vadd.xlane.f32.xlu0 %v196_v6  ;;  %3448 = vrcp.f32 %v3693_v8  ;;  %v199_v10 = vsel %vm195_vm0, %v3688_v7, 0.0  ;;  %v352_v19 = vrot.slane %v3671_v1, %v3712_v17 }
   0xb   :  { %v371_v21 = vrot.slane %v3671_v1, %v3720_v20  ;;  %v390_v23 = vrot.slane %v3671_v1, %v3725_v22  ;;  %v409_v25 = vrot.slane %v3671_v1, %v3730_v24  ;;  %v428_v27 = vrot.slane %v3671_v1, %v3735_v26 }
   0xc   :  { %v3744_v29 = vrot.slane %v3671_v1, %v3740_v28 }
   0xe   :  { %206 = vadd.xlane.f32.xlu1 %v205_v9  ;;  %200 = vadd.xlane.f32.xlu0 %v199_v10 }
  0x14   :  { %v3449_v11 = vpop.eup %3448 }
  0x15   :  { %3395 = vpush %v3449_v11 }
  0x1f   :  { %276 = vperm.xlu1 %3447, %v260_v13  }
  0x23   :  { %281 = vperm.xlu1 %3447, %v261_v15  }
  0x24   :  { %271 = vperm.xlu0 %3446, %v259_v16  }
  0x27   :  { %286 = vperm.xlu1 %3447, %v262_v18  }
  0x28   :  { %354 = vbcast.lane.b32.xlu0 %v352_v19, 256 }
  0x2b   :  { %358 = vbcast.lane.b32.xlu1 %v352_v19, 264 }
  0x2c   :  { %366 = vbcast.lane.b32.xlu0 %v352_v19, 280 }
  0x2f   :  { %362 = vbcast.lane.b32.xlu1 %v352_v19, 272 }
  0x30   :  { %377 = vbcast.lane.b32.xlu0 %v371_v21, 264 }
  0x33   :  { %373 = vbcast.lane.b32.xlu1 %v371_v21, 256 }
  0x34   :  { %385 = vbcast.lane.b32.xlu0 %v371_v21, 280 }
  0x37   :  { %381 = vbcast.lane.b32.xlu1 %v371_v21, 272 }
  0x38   :  { %396 = vbcast.lane.b32.xlu0 %v390_v23, 264 }
  0x3b   :  { %392 = vbcast.lane.b32.xlu1 %v390_v23, 256 }
  0x3c   :  { %404 = vbcast.lane.b32.xlu0 %v390_v23, 280 }
  0x3f   :  { %400 = vbcast.lane.b32.xlu1 %v390_v23, 272 }
  0x40   :  { %415 = vbcast.lane.b32.xlu0 %v409_v25, 264 }
  0x43   :  { %411 = vbcast.lane.b32.xlu1 %v409_v25, 256 }
  0x44   :  { %423 = vbcast.lane.b32.xlu0 %v409_v25, 280 }
  0x46   :  { %s3396_s7 = spop %3395 }
  0x47   :  { %419 = vbcast.lane.b32.xlu1 %v409_v25, 272  ;;  %v236_v59 = vstv %s3396_s7 }
  0x48   :  { %434 = vbcast.lane.b32.xlu0 %v428_v27, 264 }
  0x4b   :  { %430 = vbcast.lane.b32.xlu1 %v428_v27, 256 }
  0x4c   :  { %442 = vbcast.lane.b32.xlu0 %v428_v27, 280 }
  0x4f   :  { %438 = vbcast.lane.b32.xlu1 %v428_v27, 272 }
  0x53   :  { %449 = vbcast.lane.b32.xlu1 %v3744_v29, 256 }
  0x97   :  { %v3747_v30 = vpop.xlane.xlu1 %203  ;;  %v3749_v31 = vpop.xlane.xlu0 %197 }
  0x98   :  { %6975 = vst [vmem:[#allocation8_spill] sm:$0xff] %v3747_v30  ;;  %6976 = vst [vmem:[#allocation9_spill] sm:$0xff] %v3749_v31  ;;  %v214_v32 = vmax.f32 %v3747_v30, 1.0  ;;  %v226_v33 = vadd.f32 1.0, %v3747_v30  ;;  %v212_v34 = vmax.f32 %v3749_v31, 1.0  ;;  %v224_v35 = vadd.f32 1.0, %v3749_v31 }
  0x99   :  { %vm6744_vm1 = vcmp.gt.f32.partialorder %v3747_v30, 0.0  ;;  %vm6720_vm2 = vcmp.gt.f32.partialorder %v3749_v31, 0.0 }
  0x9a   :  { %3450 = vrcp.f32 %v214_v32 }
  0x9b   :  { %3452 = vlog2.f32 %v226_v33  ;;  %v3755_v36 = vpop.xlane.xlu1 %206  ;;  %v3757_v37 = vpop.xlane.xlu0 %200 }
  0x9c   :  { %6977 = vst [vmem:[#allocation10_spill] sm:$0xff] %v3755_v36  ;;  %6978 = vst [vmem:[#allocation11_spill] sm:$0xff] %v3757_v37  ;;  %3454 = vrcp.f32 %v212_v34  ;;  %v215_v38 = vmax.f32 %v3755_v36, 1.0  ;;  %v227_v39 = vadd.f32 1.0, %v3755_v36  ;;  %v213_v40 = vmax.f32 %v3757_v37, 1.0 }
  0x9d   :  { %3456 = vlog2.f32 %v224_v35  ;;  %v225_v41 = vadd.f32 1.0, %v3757_v37  ;;  %vm6719_vm3 = vcmp.gt.f32.partialorder %v3755_v36, 0.0  ;;  %vm6747_vm4 = vcmp.gt.f32.partialorder %v3757_v37, 0.0 }
  0x9e   :  { %3458 = vrcp.f32 %v215_v38 }
  0x9f   :  { %3460 = vlog2.f32 %v227_v39  ;;  %v277_v43 = vpop.permute.xlu1 %276 }
  0xa0   :  { %3462 = vrcp.f32 %v213_v40  ;;  %v3769_v44 = vsub.f32 %v3766_v42, %v277_v43 }
  0xa1   :  { %3464 = vlog2.f32 %v225_v41 }
  0xa2   :  { %v294_v45 = vand.u32 2147483647, %v3769_v44 }
  0xa3   :  { %v272_v46 = vpop.permute.xlu0 %271  ;;  %v3773_v47 = vpop.permute.xlu1 %281 }
  0xa4   :  { %v3451_v48 = vpop.eup %3450  ;;  %v3776_v49 = vsub.f32 %v3766_v42, %v272_v46  ;;  %v3779_v50 = vmul.f32 %v294_v45, %v3688_v7 }
  0xa5   :  { %v3453_v51 = vpop.eup %3452  ;;  %v3783_v52 = vsel %vm6744_vm1, %v3451_v48, 0.0 }
  0xa6   :  { %6979 = vst [vmem:[#allocation12_spill] sm:$0xff] %v3783_v52  ;;  %v3455_v53 = vpop.eup %3454  ;;  %v293_v54 = vand.u32 2147483647, %v3776_v49  ;;  %v233_v55 = vmul.f32 0.6931472, %v3453_v51  ;;  %v304_v56 = vsel %vm195_vm0, %v3779_v50, 0.0 }
  0xa7   :  { %v3457_v57 = vpop.eup %3456  ;;  %v3792_v58 = vsel %vm6720_vm2, %v3455_v53, 0.0  ;;  %305 = vadd.xlane.f32.xlu0 %v304_v56  ;;  %v3794_v60 = vpop.permute.xlu1 %286 }
  0xa8   :  { %6980 = vst [vmem:[#allocation13_spill] sm:$0xff] %v3792_v58  ;;  %v3796_v61 = vpop.permute.xlu0 %354  ;;  %v3459_v62 = vpop.eup %3458  ;;  %v229_v63 = vmul.f32 0.6931472, %v3457_v57  ;;  %v3798_v3 = vmul.f32 %v236_v59, %v233_v55  ;;  %v243_v4 = vmax.f32 %v233_v55, 1e-12  ;;  %v3801_v5 = vmul.f32 %v293_v54, %v3671_v1 }
  0xa9   :  { %6981 = vst [vmem:[#allocation14_spill] sm:$0xff] %v3796_v61  ;;  %v3461_v6 = vpop.eup %3460  ;;  %v3805_v9 = vsel %vm6719_vm3, %v3459_v62, 0.0 }
  0xaa   :  { %6982 = vst [vmem:[#allocation15_spill] sm:$0xff] %v3798_v3  ;;  %6983 = vst [vmem:[#allocation16_spill] sm:$0xff] %v3805_v9  ;;  %v3463_v10 = vpop.eup %3462  ;;  %v235_v11 = vmul.f32 0.6931472, %v3461_v6  ;;  %v3809_v12 = vmul.f32 %v236_v59, %v229_v63  ;;  %v241_v13 = vmax.f32 %v229_v63, 1e-12  ;;  %3466 = vrcp.f32 %v243_v4 }
  0xab   :  { %v3465_v15 = vpop.eup %3464  ;;  %v3813_v16 = vsel %vm6747_vm4, %v3463_v10, 0.0  ;;  %v301_v18 = vsel %vm195_vm0, %v3801_v5, 0.0  ;;  %v3817_v19 = vpop.permute.xlu1 %358 }
  0xac   :  { %6984 = vst [vmem:[#allocation17_spill] sm:$0xff] %v3809_v12  ;;  %6985 = vst [vmem:[#allocation18_spill] sm:$0xff] %v3813_v16  ;;  %v3819_v21 = vpop.permute.xlu0 %366  ;;  %v231_v23 = vmul.f32 0.6931472, %v3465_v15  ;;  %v3821_v25 = vmul.f32 %v236_v59, %v235_v11  ;;  %v244_v27 = vmax.f32 %v235_v11, 1e-12  ;;  %3468 = vrcp.f32 %v241_v13  ;;  %302 = vadd.xlane.f32.xlu1 %v301_v18 }
  0xad   :  { %6986 = vst [vmem:[#allocation19_spill] sm:$0xff] %v3817_v19  ;;  %6987 = vst [vmem:[#allocation20_spill] sm:$0xff] %v3819_v21  ;;  %v3892_v18 = vsub.s32 7, %v3703_v14  ;;  %v713_v12 = vrot.slane %v3666_v0, %v3730_v24 }
  0xae   :  { %6988 = vst [vmem:[#allocation21_spill] sm:$0xff] %v3821_v25  ;;  %v3825_v32 = vmul.f32 %v236_v59, %v231_v23  ;;  %v242_v33 = vmax.f32 %v231_v23, 1e-12  ;;  %3470 = vrcp.f32 %v244_v27  ;;  %v76_v25 = vld [vmem:[%s6714_s2 + $0x18] sm:$0xff] }
  0xaf   :  { %v3827_v34 = vpop.permute.xlu1 %362 }
  0xb0   :  { %6989 = vst [vmem:[#allocation22_spill] sm:$0xff] %v3825_v32  ;;  %6990 = vst [vmem:[#allocation23_spill] sm:$0xff] %v3827_v34  ;;  %v3829_v35 = vpop.permute.xlu0 %377  ;;  %3472 = vrcp.f32 %v242_v33 }
  0xb1   :  { %6991 = vst [vmem:[#allocation24_spill] sm:$0xff] %v3829_v35 }
  0xb3   :  { %v3833_v38 = vpop.permute.xlu1 %373 }
  0xb4   :  { %6992 = vst [vmem:[#allocation25_spill] sm:$0xff] %v3833_v38  ;;  %v3835_v39 = vpop.permute.xlu0 %385  ;;  %v3467_v40 = vpop.eup %3466 }
  0xb5   :  { %6993 = vst [vmem:[#allocation26_spill] sm:$0xff] %v3835_v39  ;;  %v252_v41 = vmul.f32 %v3467_v40, %v3693_v8 }
  0xb6   :  { %v3469_v43 = vpop.eup %3468 }
  0xb7   :  { %v250_v45 = vmul.f32 %v3469_v43, %v3693_v8  ;;  %v3843_v46 = vsel %vm6744_vm1, %v252_v41, 0.0  ;;  %v3845_v48 = vpop.permute.xlu1 %381  ;;  %v504_v41 = vrot.slane %v3688_v7, %v3712_v17 }
  0xb8   :  { %6994 = vst [vmem:[#allocation27_spill] sm:$0xff] %v3843_v46  ;;  %6995 = vst [vmem:[#allocation28_spill] sm:$0xff] %v3845_v48  ;;  %v3847_v51 = vpop.permute.xlu0 %396  ;;  %v3471_v53 = vpop.eup %3470 }
  0xb9   :  { %6996 = vst [vmem:[#allocation29_spill] sm:$0xff] %v3847_v51  ;;  %v253_v54 = vmul.f32 %v3471_v53, %v3693_v8  ;;  %v3854_v55 = vsel %vm6720_vm2, %v250_v45, 0.0  ;;  %v3917_v45 = vsub.f32 %v3766_v42, %v3773_v47 }
  0xba   :  { %6997 = vst [vmem:[#allocation30_spill] sm:$0xff] %v3854_v55  ;;  %v3473_v56 = vpop.eup %3472  ;;  %v75_v55 = vld [vmem:[%s6714_s2 + $0x10] sm:$0xff] }
  0xbb   :  { %v251_v57 = vmul.f32 %v3473_v56, %v3693_v8  ;;  %v3859_v59 = vsel %vm6719_vm3, %v253_v54, 0.0  ;;  %v3861_v62 = vpop.permute.xlu1 %392  ;;  %v3874_v8 = vsub.s32 6, %v3703_v14  ;;  %v295_v53 = vand.u32 2147483647, %v3917_v45 }
  0xbc   :  { %6998 = vst [vmem:[#allocation31_spill] sm:$0xff] %v3859_v59  ;;  %6999 = vst [vmem:[#allocation32_spill] sm:$0xff] %v3861_v62  ;;  %v3863_v63 = vpop.permute.xlu0 %404  ;;  %v3923_v54 = vsub.f32 %v3766_v42, %v3794_v60  ;;  %v523_v56 = vrot.slane %v3688_v7, %v3720_v20  ;;  %v542_v42 = vrot.slane %v3688_v7, %v3725_v22  ;;  %vm6721_vm3 = vcmask 64512  }
  0xbd   :  { %7000 = vst [vmem:[#allocation33_spill] sm:$0xff] %v3863_v63  ;;  %v3869_v4 = vsel %vm6747_vm4, %v251_v57, 0.0  ;;  %457 = vbcast.lane.b32.xlu1 %v3744_v29, 272  ;;  %453 = vbcast.lane.b32.xlu0 %v3744_v29, 264  ;;  %v466_v11 = vrot.slane %v3671_v1, %v3874_v8  ;;  %v3929_v46 = vmul.f32 %v295_v53, %v3666_v0 }
  0xbe   :  { %7001 = vst [vmem:[#allocation34_spill] sm:$0xff] %v3869_v4  ;;  %v296_v57 = vand.u32 2147483647, %v3923_v54  ;;  %v561_v53 = vrot.slane %v3688_v7, %v3730_v24  ;;  %v3950_v59 = vrot.slane %v3688_v7, %v3892_v18  ;;  %3247 = vmatprep.mubr.msk.f32.mxu1 %vm6721_vm3, %v75_v55  ;;  %v325_v62 = vmul.f32 %v3776_v49, %v3671_v1 }
  0xbf   :  { %v3876_v6 = vpop.permute.xlu1 %400  ;;  %v307_v47 = vsel %vm195_vm0, %v3929_v46, 0.0 }
  0xc0   :  { %7002 = vst [vmem:[#allocation35_spill] sm:$0xff] %v3876_v6  ;;  %v3878_v10 = vpop.permute.xlu0 %415  ;;  %v3934_v3 = vmul.f32 %v296_v57, %v3676_v2  ;;  %v580_v57 = vrot.slane %v3688_v7, %v3735_v26 }
  0xc1   :  { %7003 = vst [vmem:[#allocation36_spill] sm:$0xff] %v3878_v10  ;;  %461 = vbcast.lane.b32.xlu0 %v3744_v29, 280  ;;  %v485_v29 = vrot.slane %v3671_v1, %v3892_v18 }
  0xc2   :  { %v310_v60 = vsel %vm195_vm0, %v3934_v3, 0.0 }
  0xc3   :  { %v3885_v13 = vpop.permute.xlu1 %411 }
  0xc4   :  { %7004 = vst [vmem:[#allocation37_spill] sm:$0xff] %v3885_v13  ;;  %v3887_v15 = vpop.permute.xlu0 %423 }
  0xc5   :  { %7005 = vst [vmem:[#allocation38_spill] sm:$0xff] %v3887_v15  ;;  %472 = vbcast.lane.b32.xlu0 %v466_v11, 264 }
  0xc7   :  { %v3894_v23 = vpop.permute.xlu1 %419 }
  0xc8   :  { %7006 = vst [vmem:[#allocation39_spill] sm:$0xff] %v3894_v23  ;;  %v3896_v27 = vpop.permute.xlu0 %434  ;;  %v4162_v23 = vrot.slane %v3676_v2, %v3720_v20 }
  0xc9   :  { %7007 = vst [vmem:[#allocation40_spill] sm:$0xff] %v3896_v27  ;;  %480 = vbcast.lane.b32.xlu0 %v466_v11, 280 }
  0xcb   :  { %v3902_v33 = vpop.permute.xlu1 %430 }
  0xcc   :  { %7008 = vst [vmem:[#allocation41_spill] sm:$0xff] %v3902_v33  ;;  %v3904_v40 = vpop.permute.xlu0 %442 }
  0xcd   :  { %7009 = vst [vmem:[#allocation42_spill] sm:$0xff] %v3904_v40  ;;  %491 = vbcast.lane.b32.xlu0 %v485_v29, 264 }
  0xcf   :  { %v3908_v14 = vpop.permute.xlu1 %438 }
  0xd0   :  { %7010 = vst [vmem:[#allocation43_spill] sm:$0xff] %v3908_v14 }
  0xd1   :  { %499 = vbcast.lane.b32.xlu0 %v485_v29, 280 }
  0xd3   :  { %v3913_v43 = vpop.permute.xlu1 %449 }
  0xd4   :  { %7011 = vst [vmem:[#allocation44_spill] sm:$0xff] %v3913_v43 }
  0xd5   :  { %510 = vbcast.lane.b32.xlu0 %v504_v41, 264 }
  0xd9   :  { %518 = vbcast.lane.b32.xlu0 %v504_v41, 280 }
  0xdd   :  { %529 = vbcast.lane.b32.xlu0 %v523_v56, 264 }
  0xe1   :  { %308 = vadd.xlane.f32.xlu1 %v307_v47  ;;  %537 = vbcast.lane.b32.xlu0 %v523_v56, 280  ;;  %v599_v47 = vrot.slane %v3688_v7, %v3740_v28 }
  0xe5   :  { %311 = vadd.xlane.f32.xlu1 %v310_v60  ;;  %548 = vbcast.lane.b32.xlu0 %v542_v42, 264  ;;  %v618_v60 = vrot.slane %v3688_v7, %v3874_v8 }
  0xe9   :  { %556 = vbcast.lane.b32.xlu0 %v542_v42, 280 }
  0xed   :  { %567 = vbcast.lane.b32.xlu0 %v561_v53, 264 }
  0xf1   :  { %575 = vbcast.lane.b32.xlu0 %v561_v53, 280 }
  0xf5   :  { %586 = vbcast.lane.b32.xlu0 %v580_v57, 264 }
  0xf6   :  { %468 = vbcast.lane.b32.xlu1 %v466_v11, 256 }
  0xf9   :  { %594 = vbcast.lane.b32.xlu0 %v580_v57, 280 }
  0xfa   :  { %476 = vbcast.lane.b32.xlu1 %v466_v11, 272  ;;  %v3956_v11 = vrot.slane %v3666_v0, %v3712_v17 }
  0xfd   :  { %605 = vbcast.lane.b32.xlu0 %v599_v47, 264 }
  0xfe   :  { %487 = vbcast.lane.b32.xlu1 %v485_v29, 256 }
 0x101   :  { %613 = vbcast.lane.b32.xlu0 %v599_v47, 280 }
 0x102   :  { %495 = vbcast.lane.b32.xlu1 %v485_v29, 272  ;;  %v3962_v29 = vrot.slane %v3666_v0, %v3720_v20  ;;  %v4180_v20 = vrot.slane %v3676_v2, %v3725_v22 }
 0x105   :  { %624 = vbcast.lane.b32.xlu0 %v618_v60, 264 }
 0x106   :  { %506 = vbcast.lane.b32.xlu1 %v504_v41, 256 }
 0x109   :  { %632 = vbcast.lane.b32.xlu0 %v618_v60, 280 }
 0x10a   :  { %514 = vbcast.lane.b32.xlu1 %v504_v41, 272  ;;  %v3968_v41 = vrot.slane %v3666_v0, %v3725_v22  ;;  %v326_v22 = vmul.f32 %v3769_v44, %v3688_v7 }
 0x10d   :  { %643 = vbcast.lane.b32.xlu0 %v3950_v59, 264 }
 0x10e   :  { %525 = vbcast.lane.b32.xlu1 %v523_v56, 256 }
 0x111   :  { %651 = vbcast.lane.b32.xlu0 %v3950_v59, 280 }
 0x112   :  { %533 = vbcast.lane.b32.xlu1 %v523_v56, 272  ;;  %v77_v56 = vld [vmem:[%s6713_s3] sm:$0xff] }
 0x113   :  { %3242 = vmatprep.subr.mxu0 %v77_v56  ;;  %3369 = vmatprep.subr.mxu1 %v77_v56 }
 0x114   :  { %3243 = vmatpush3.msra.mxu0 %v77_v56  ;;  %3370 = vmatpush3.msra.mxu1 %v77_v56  ;;  %v3995_v56 = vrot.slane %v3666_v0, %v3735_v26 }
 0x115   :  { %662 = vbcast.lane.b32.xlu0 %v3956_v11, 264  ;;  %3248 = vmatmul.mubr.msk.f32.vlgmr.msra.gmra.mrb[0].mxu1 %vm6721_vm3, %v76_v25 }
 0x116   :  { %544 = vbcast.lane.b32.xlu1 %v542_v42, 256 }
 0x119   :  { %670 = vbcast.lane.b32.xlu0 %v3956_v11, 280 }
 0x11a   :  { %552 = vbcast.lane.b32.xlu1 %v542_v42, 272  ;;  %v73_v42 = vld [vmem:[%s6714_s2] sm:$0xff] }
 0x11b   :  { %3244 = vmatprep.mubr.msk.f32.mxu0 %vm6721_vm3, %v73_v42 }
 0x11d   :  { %681 = vbcast.lane.b32.xlu0 %v3962_v29, 264 }
 0x11e   :  { %563 = vbcast.lane.b32.xlu1 %v561_v53, 256 }
 0x121   :  { %689 = vbcast.lane.b32.xlu0 %v3962_v29, 280 }
 0x122   :  { %571 = vbcast.lane.b32.xlu1 %v561_v53, 272  ;;  %v74_v53 = vld [vmem:[%s6714_s2 + $0x8] sm:$0xff] }
 0x123   :  { %3245 = vmatmul.mubr.msk.f32.vlgmr.msra.gmra.mrb[0].mxu0 %vm6721_vm3, %v74_v53 }
 0x125   :  { %700 = vbcast.lane.b32.xlu0 %v3968_v41, 264 }
 0x126   :  { %582 = vbcast.lane.b32.xlu1 %v580_v57, 256 }
 0x129   :  { %708 = vbcast.lane.b32.xlu0 %v3968_v41, 280 }
 0x12a   :  { %590 = vbcast.lane.b32.xlu1 %v580_v57, 272  ;;  %v751_v57 = vrot.slane %v3666_v0, %v3740_v28 }
 0x12d   :  { %719 = vbcast.lane.b32.xlu0 %v713_v12, 264 }
 0x12e   :  { %601 = vbcast.lane.b32.xlu1 %v599_v47, 256 }
 0x131   :  { %727 = vbcast.lane.b32.xlu0 %v713_v12, 280 }
 0x132   :  { %609 = vbcast.lane.b32.xlu1 %v599_v47, 272 }
 0x134   :  { %v306_v42 = vpop.xlane.xlu0 %305 }
 0x135   :  { %v314_v55 = vadd.f32 1e-30, %v306_v42  ;;  %738 = vbcast.lane.b32.xlu0 %v3995_v56, 264 }
 0x136   :  { %620 = vbcast.lane.b32.xlu1 %v618_v60, 256 }
 0x137   :  { %3474 = vrcp.f32 %v314_v55 }
 0x138   :  { %v3998_v25 = vpop.permute.xlu0 %453 }
 0x139   :  { %7012 = vst [vmem:[#allocation45_spill] sm:$0xff] %v3998_v25  ;;  %v303_v53 = vpop.xlane.xlu1 %302  ;;  %746 = vbcast.lane.b32.xlu0 %v3995_v56, 280 }
 0x13a   :  { %v313_v4 = vadd.f32 1e-30, %v303_v53  ;;  %628 = vbcast.lane.b32.xlu1 %v618_v60, 272  ;;  %v770_v60 = vrot.slane %v3666_v0, %v3874_v8 }
 0x13c   :  { %3476 = vrcp.f32 %v313_v4  ;;  %v4004_v47 = vpop.permute.xlu0 %461 }
 0x13d   :  { %7013 = vst [vmem:[#allocation46_spill] sm:$0xff] %v4004_v47  ;;  %v4006_v42 = vpop.permute.xlu1 %457  ;;  %757 = vbcast.lane.b32.xlu0 %v751_v57, 264 }
 0x13e   :  { %7014 = vst [vmem:[#allocation47_spill] sm:$0xff] %v4006_v42  ;;  %639 = vbcast.lane.b32.xlu1 %v3950_v59, 256 }
 0x140   :  { %v4011_v55 = vpop.permute.xlu0 %472 }
 0x141   :  { %7015 = vst [vmem:[#allocation48_spill] sm:$0xff] %v4011_v55  ;;  %v4013_v32 = vpop.eup %3474  ;;  %765 = vbcast.lane.b32.xlu0 %v751_v57, 280 }
 0x142   :  { %v4020_v4 = vmul.f32 %v4013_v32, %v3779_v50  ;;  %647 = vbcast.lane.b32.xlu1 %v3950_v59, 272  ;;  %v4037_v50 = vrot.slane %v3666_v0, %v3892_v18  ;;  %v4204_v21 = vmul.f32 %v4013_v32, %v326_v22 }
 0x144   :  { %7016 = vst [vmem:[#allocation49_spill] sm:$0xff] %v4020_v4  ;;  %v4023_v53 = vpop.permute.xlu0 %480  ;;  %7061 = vst [vmem:[#allocation94_spill] sm:$0xff] %v4204_v21  ;;  %v340_v32 = vsel %vm195_vm0, %v4204_v21, 0.0  ;;  %v70_v21 = vld [vmem:[%s6715_s1 + $0x8] sm:$0xff] }
 0x145   :  { %7017 = vst [vmem:[#allocation50_spill] sm:$0xff] %v4023_v53  ;;  %776 = vbcast.lane.b32.xlu0 %v770_v60, 264 }
 0x146   :  { %v4026_v9 = vpop.eup %3476  ;;  %658 = vbcast.lane.b32.xlu1 %v3956_v11, 256 }
 0x147   :  { %v4031_v58 = vmul.f32 %v4026_v9, %v3801_v5  ;;  %v4190_v48 = vmul.f32 %v4026_v9, %v325_v62  ;;  %v4210_v9 = vrot.slane %v3676_v2, %v3730_v24  ;;  %v328_v62 = vmul.f32 %v3923_v54, %v3676_v2 }
 0x148   :  { %v4033_v52 = vpop.permute.xlu0 %491 }
 0x149   :  { %7018 = vst [vmem:[#allocation51_spill] sm:$0xff] %v4031_v58  ;;  %7019 = vst [vmem:[#allocation52_spill] sm:$0xff] %v4033_v52  ;;  %784 = vbcast.lane.b32.xlu0 %v770_v60, 280  ;;  %v337_v49 = vsel %vm195_vm0, %v4190_v48, 0.0 }
 0x14a   :  { %666 = vbcast.lane.b32.xlu1 %v3956_v11, 272  ;;  %7058 = vst [vmem:[#allocation91_spill] sm:$0xff] %v4190_v48 }
 0x14c   :  { %v4041_v59 = vpop.permute.xlu0 %499 }
 0x14d   :  { %7020 = vst [vmem:[#allocation53_spill] sm:$0xff] %v4041_v59  ;;  %795 = vbcast.lane.b32.xlu0 %v4037_v50, 264 }
 0x14e   :  { %677 = vbcast.lane.b32.xlu1 %v3962_v29, 256 }
 0x150   :  { %v4046_v5 = vpop.permute.xlu0 %510 }
 0x151   :  { %7021 = vst [vmem:[#allocation54_spill] sm:$0xff] %v4046_v5  ;;  %803 = vbcast.lane.b32.xlu0 %v4037_v50, 280  ;;  %vm990_vm14 = vcmp.gt.f32.partialorder %v4046_v5, 0.0 }
 0x152   :  { %685 = vbcast.lane.b32.xlu1 %v3962_v29, 272 }
 0x154   :  { %v4051_v16 = vpop.permute.xlu0 %518 }
 0x155   :  { %7022 = vst [vmem:[#allocation55_spill] sm:$0xff] %v4051_v16 }
 0x156   :  { %696 = vbcast.lane.b32.xlu1 %v3968_v41, 256 }
 0x158   :  { %v4055_v11 = vpop.permute.xlu0 %529 }
 0x159   :  { %7023 = vst [vmem:[#allocation56_spill] sm:$0xff] %v4055_v11  ;;  %vm994_vm15 = vcmp.gt.f32.partialorder %v4055_v11, 0.0 }
 0x15a   :  { %704 = vbcast.lane.b32.xlu1 %v3968_v41, 272 }
 0x15c   :  { %v4059_v36 = vpop.permute.xlu0 %537 }
 0x15d   :  { %7024 = vst [vmem:[#allocation57_spill] sm:$0xff] %v4059_v36  ;;  %vm996_vm13 = vcmp.gt.f32.partialorder %v4059_v36, 0.0 }
 0x15e   :  { %715 = vbcast.lane.b32.xlu1 %v713_v12, 256 }
 0x160   :  { %v4062_v31 = vpop.permute.xlu0 %548 }
 0x161   :  { %7025 = vst [vmem:[#allocation58_spill] sm:$0xff] %v4062_v31 }
 0x162   :  { %723 = vbcast.lane.b32.xlu1 %v713_v12, 272 }
 0x164   :  { %v4065_v29 = vpop.permute.xlu0 %556 }
 0x165   :  { %7026 = vst [vmem:[#allocation59_spill] sm:$0xff] %v4065_v29 }
 0x166   :  { %734 = vbcast.lane.b32.xlu1 %v3995_v56, 256 }
 0x168   :  { %v4069_v59 = vpop.permute.xlu0 %567 }
 0x169   :  { %7027 = vst [vmem:[#allocation60_spill] sm:$0xff] %v4069_v59 }
 0x16a   :  { %742 = vbcast.lane.b32.xlu1 %v3995_v56, 272 }
 0x16c   :  { %v4073_v41 = vpop.permute.xlu0 %575 }
 0x16d   :  { %7028 = vst [vmem:[#allocation61_spill] sm:$0xff] %v4073_v41 }
 0x16e   :  { %753 = vbcast.lane.b32.xlu1 %v751_v57, 256  ;;  %v309_v52 = vpop.xlane.xlu1 %308 }
 0x16f   :  { %v315_v53 = vadd.f32 1e-30, %v309_v52  ;;  %v327_v52 = vmul.f32 %v3917_v45, %v3666_v0 }
 0x170   :  { %v4076_v12 = vpop.permute.xlu0 %586 }
 0x171   :  { %7029 = vst [vmem:[#allocation62_spill] sm:$0xff] %v4076_v12  ;;  %3478 = vrcp.f32 %v315_v53 }
 0x172   :  { %761 = vbcast.lane.b32.xlu1 %v751_v57, 272  ;;  %v312_v55 = vpop.xlane.xlu1 %311 }
 0x173   :  { %v316_v47 = vadd.f32 1e-30, %v312_v55 }
 0x174   :  { %v4079_v42 = vpop.permute.xlu0 %594 }
 0x175   :  { %7030 = vst [vmem:[#allocation63_spill] sm:$0xff] %v4079_v42  ;;  %3480 = vrcp.f32 %v316_v47 }
 0x176   :  { %772 = vbcast.lane.b32.xlu1 %v770_v60, 256  ;;  %v4082_v56 = vpop.permute.xlu1 %468 }
 0x177   :  { %7031 = vst [vmem:[#allocation64_spill] sm:$0xff] %v4082_v56 }
 0x178   :  { %v4085_v25 = vpop.permute.xlu0 %605 }
 0x179   :  { %7032 = vst [vmem:[#allocation65_spill] sm:$0xff] %v4085_v25 }
 0x17a   :  { %780 = vbcast.lane.b32.xlu1 %v770_v60, 272  ;;  %v4090_v57 = vpop.permute.xlu1 %476 }
 0x17b   :  { %7033 = vst [vmem:[#allocation66_spill] sm:$0xff] %v4090_v57  ;;  %v3479_v55 = vpop.eup %3478  ;;  %v4121_v57 = vrot.slane %v3676_v2, %v3712_v17 }
 0x17c   :  { %v4094_v47 = vmul.f32 %v3479_v55, %v3929_v46  ;;  %v4096_v53 = vmul.f32 %v3479_v55, %v327_v52  ;;  %v4098_v43 = vpop.permute.xlu0 %613 }
 0x17d   :  { %7036 = vst [vmem:[#allocation69_spill] sm:$0xff] %v4098_v43 }
 0x17e   :  { %7034 = vst [vmem:[#allocation67_spill] sm:$0xff] %v4094_v47  ;;  %7035 = vst [vmem:[#allocation68_spill] sm:$0xff] %v4096_v53  ;;  %791 = vbcast.lane.b32.xlu1 %v4037_v50, 256  ;;  %v4102_v56 = vpop.permute.xlu1 %487  ;;  %v343_v45 = vsel %vm195_vm0, %v4096_v53, 0.0 }
 0x17f   :  { %7037 = vst [vmem:[#allocation70_spill] sm:$0xff] %v4102_v56  ;;  %v4106_v60 = vpop.eup %3480  ;;  %344 = vadd.xlane.f32.xlu0 %v343_v45 }
 0x180   :  { %v4111_v46 = vmul.f32 %v4106_v60, %v3934_v3  ;;  %v4113_v52 = vpop.permute.xlu0 %624  ;;  %v4222_v22 = vmul.f32 %v4106_v60, %v328_v62  ;;  %v884_v60 = vrot.slane %v3676_v2, %v3735_v26  ;;  %v903_v26 = vrot.slane %v3676_v2, %v3740_v28 }
 0x181   :  { %7039 = vst [vmem:[#allocation72_spill] sm:$0xff] %v4113_v52  ;;  %v922_v28 = vrot.slane %v3676_v2, %v3874_v8  ;;  %v941_v8 = vrot.slane %v3676_v2, %v3892_v18 }
 0x182   :  { %7038 = vst [vmem:[#allocation71_spill] sm:$0xff] %v4111_v46  ;;  %799 = vbcast.lane.b32.xlu1 %v4037_v50, 272  ;;  %v4117_v55 = vpop.permute.xlu1 %495  ;;  %7064 = vst [vmem:[#allocation97_spill] sm:$0xff] %v4222_v22 }
 0x183   :  { %7040 = vst [vmem:[#allocation73_spill] sm:$0xff] %v4117_v55 }
 0x184   :  { %v4124_v56 = vpop.permute.xlu0 %632 }
 0x185   :  { %7041 = vst [vmem:[#allocation74_spill] sm:$0xff] %v4124_v56 }
 0x186   :  { %810 = vbcast.lane.b32.xlu1 %v4121_v57, 256  ;;  %v4128_v3 = vpop.permute.xlu1 %506 }
 0x187   :  { %7042 = vst [vmem:[#allocation75_spill] sm:$0xff] %v4128_v3 }
 0x188   :  { %v4131_v45 = vpop.permute.xlu0 %643 }
 0x189   :  { %7043 = vst [vmem:[#allocation76_spill] sm:$0xff] %v4131_v45 }
 0x18a   :  { %v4134_v50 = vpop.permute.xlu1 %514 }
 0x18b   :  { %7044 = vst [vmem:[#allocation77_spill] sm:$0xff] %v4134_v50 }
 0x18c   :  { %v4137_v17 = vpop.permute.xlu0 %651 }
 0x18d   :  { %7045 = vst [vmem:[#allocation78_spill] sm:$0xff] %v4137_v17 }
 0x18e   :  { %v4140_v55 = vpop.permute.xlu1 %525 }
 0x18f   :  { %7046 = vst [vmem:[#allocation79_spill] sm:$0xff] %v4140_v55 }
 0x190   :  { %v4143_v40 = vpop.permute.xlu0 %662 }
 0x191   :  { %7047 = vst [vmem:[#allocation80_spill] sm:$0xff] %v4143_v40 }
 0x192   :  { %v4146_v14 = vpop.permute.xlu1 %533 }
 0x193   :  { %7048 = vst [vmem:[#allocation81_spill] sm:$0xff] %v4146_v14 }
 0x194   :  { %v4149_v27 = vpop.permute.xlu0 %670 }
 0x195   :  { %7049 = vst [vmem:[#allocation82_spill] sm:$0xff] %v4149_v27  ;;  %814 = vbcast.lane.b32.xlu0 %v4121_v57, 264 }
 0x196   :  { %v4153_v33 = vpop.permute.xlu1 %544 }
 0x197   :  { %7050 = vst [vmem:[#allocation83_spill] sm:$0xff] %v4153_v33 }
 0x198   :  { %v4156_v15 = vpop.permute.xlu0 %681 }
 0x199   :  { %7051 = vst [vmem:[#allocation84_spill] sm:$0xff] %v4156_v15  ;;  %822 = vbcast.lane.b32.xlu0 %v4121_v57, 280 }
 0x19a   :  { %v4164_v10 = vpop.permute.xlu1 %552 }
 0x19b   :  { %7052 = vst [vmem:[#allocation85_spill] sm:$0xff] %v4164_v10 }
 0x19c   :  { %v4167_v13 = vpop.permute.xlu0 %689 }
 0x19d   :  { %7053 = vst [vmem:[#allocation86_spill] sm:$0xff] %v4167_v13  ;;  %833 = vbcast.lane.b32.xlu0 %v4162_v23, 264 }
 0x19e   :  { %v4171_v63 = vpop.permute.xlu1 %563 }
 0x19f   :  { %7054 = vst [vmem:[#allocation87_spill] sm:$0xff] %v4171_v63 }
 0x1a0   :  { %v4174_v6 = vpop.permute.xlu0 %700 }
 0x1a1   :  { %7055 = vst [vmem:[#allocation88_spill] sm:$0xff] %v4174_v6  ;;  %841 = vbcast.lane.b32.xlu0 %v4162_v23, 280 }
 0x1a2   :  { %v4182_v51 = vpop.permute.xlu1 %571 }
 0x1a3   :  { %7056 = vst [vmem:[#allocation89_spill] sm:$0xff] %v4182_v51 }
 0x1a4   :  { %v4187_v39 = vpop.permute.xlu0 %708 }
 0x1a5   :  { %7057 = vst [vmem:[#allocation90_spill] sm:$0xff] %v4187_v39  ;;  %852 = vbcast.lane.b32.xlu0 %v4180_v20, 264 }
 0x1a6   :  { %v4194_v35 = vpop.permute.xlu1 %582 }
 0x1a7   :  { %7059 = vst [vmem:[#allocation92_spill] sm:$0xff] %v4194_v35 }
 0x1a8   :  { %v4199_v38 = vpop.permute.xlu0 %719 }
 0x1a9   :  { %7060 = vst [vmem:[#allocation93_spill] sm:$0xff] %v4199_v38  ;;  %860 = vbcast.lane.b32.xlu0 %v4180_v20, 280  ;;  %v4346_v38 = vld [vmem:[%s6717_s8] sm:$0xff] }
 0x1aa   :  { %338 = vadd.xlane.f32.xlu1 %v337_v49  ;;  %v4212_v44 = vpop.permute.xlu1 %590  ;;  %v346_v49 = vsel %vm195_vm0, %v4222_v22, 0.0  ;;  %7093 = vst [vmem:[#allocation126_spill] sm:$0xff] %v4346_v38 }
 0x1ab   :  { %7062 = vst [vmem:[#allocation95_spill] sm:$0xff] %v4212_v44 }
 0x1ac   :  { %v4217_v34 = vpop.permute.xlu0 %727 }
 0x1ad   :  { %7063 = vst [vmem:[#allocation96_spill] sm:$0xff] %v4217_v34  ;;  %871 = vbcast.lane.b32.xlu0 %v4210_v9, 264 }
 0x1ae   :  { %v4226_v24 = vpop.permute.xlu1 %601  ;;  %341 = vadd.xlane.f32.xlu1 %v340_v32 }
 0x1af   :  { %7065 = vst [vmem:[#allocation98_spill] sm:$0xff] %v4226_v24 }
 0x1b0   :  { %v4229_v54 = vpop.permute.xlu0 %738 }
 0x1b1   :  { %7066 = vst [vmem:[#allocation99_spill] sm:$0xff] %v4229_v54  ;;  %879 = vbcast.lane.b32.xlu0 %v4210_v9, 280 }
 0x1b2   :  { %v4237_v62 = vpop.permute.xlu1 %609  ;;  %347 = vadd.xlane.f32.xlu1 %v346_v49 }
 0x1b3   :  { %7067 = vst [vmem:[#allocation100_spill] sm:$0xff] %v4237_v62 }
 0x1b4   :  { %v4240_v32 = vpop.permute.xlu0 %746 }
 0x1b5   :  { %7068 = vst [vmem:[#allocation101_spill] sm:$0xff] %v4240_v32  ;;  %890 = vbcast.lane.b32.xlu0 %v884_v60, 264  ;;  %v3179_v32 = vld [vmem:[%s6716_s4] ss:$0 sm:$0xff] }
 0x1b6   :  { %v4243_v19 = vpop.permute.xlu1 %620 }
 0x1b7   :  { %7069 = vst [vmem:[#allocation102_spill] sm:$0xff] %v4243_v19 }
 0x1b8   :  { %v4246_v61 = vpop.permute.xlu0 %757 }
 0x1b9   :  { %7070 = vst [vmem:[#allocation103_spill] sm:$0xff] %v4246_v61  ;;  %898 = vbcast.lane.b32.xlu0 %v884_v60, 280 }
 0x1ba   :  { %v4251_v49 = vpop.permute.xlu1 %628 }
 0x1bb   :  { %7071 = vst [vmem:[#allocation104_spill] sm:$0xff] %v4251_v49 }
 0x1bc   :  { %v4254_v30 = vpop.permute.xlu0 %765 }
 0x1bd   :  { %7072 = vst [vmem:[#allocation105_spill] sm:$0xff] %v4254_v30  ;;  %909 = vbcast.lane.b32.xlu0 %v903_v26, 264 }
 0x1be   :  { %v4257_v37 = vpop.permute.xlu1 %639 }
 0x1bf   :  { %7073 = vst [vmem:[#allocation106_spill] sm:$0xff] %v4257_v37 }
 0x1c0   :  { %v4260_v46 = vpop.permute.xlu0 %776 }
 0x1c1   :  { %7074 = vst [vmem:[#allocation107_spill] sm:$0xff] %v4260_v46  ;;  %917 = vbcast.lane.b32.xlu0 %v903_v26, 280 }
 0x1c2   :  { %v4265_v47 = vpop.permute.xlu1 %647 }
 0x1c3   :  { %7075 = vst [vmem:[#allocation108_spill] sm:$0xff] %v4265_v47  ;;  %818 = vbcast.lane.b32.xlu1 %v4121_v57, 272 }
 0x1c4   :  { %v4269_v4 = vpop.permute.xlu0 %784 }
 0x1c5   :  { %7076 = vst [vmem:[#allocation109_spill] sm:$0xff] %v4269_v4  ;;  %928 = vbcast.lane.b32.xlu0 %v922_v28, 264 }
 0x1c6   :  { %v4272_v58 = vpop.permute.xlu1 %658 }
 0x1c7   :  { %7077 = vst [vmem:[#allocation110_spill] sm:$0xff] %v4272_v58  ;;  %829 = vbcast.lane.b32.xlu1 %v4162_v23, 256 }
 0x1c8   :  { %v4276_v22 = vpop.permute.xlu0 %795 }
 0x1c9   :  { %7078 = vst [vmem:[#allocation111_spill] sm:$0xff] %v4276_v22  ;;  %936 = vbcast.lane.b32.xlu0 %v922_v28, 280 }
 0x1ca   :  { %v4281_v57 = vpop.permute.xlu1 %666 }
 0x1cb   :  { %7079 = vst [vmem:[#allocation112_spill] sm:$0xff] %v4281_v57  ;;  %837 = vbcast.lane.b32.xlu1 %v4162_v23, 272 }
 0x1cc   :  { %v4285_v4 = vpop.permute.xlu0 %803 }
 0x1cd   :  { %7080 = vst [vmem:[#allocation113_spill] sm:$0xff] %v4285_v4  ;;  %947 = vbcast.lane.b32.xlu0 %v941_v8, 264 }
 0x1ce   :  { %v4288_v46 = vpop.permute.xlu1 %677 }
 0x1cf   :  { %7081 = vst [vmem:[#allocation114_spill] sm:$0xff] %v4288_v46  ;;  %848 = vbcast.lane.b32.xlu1 %v4180_v20, 256 }
 0x1d1   :  { %955 = vbcast.lane.b32.xlu0 %v941_v8, 280 }
 0x1d2   :  { %v4292_v22 = vpop.permute.xlu1 %685 }
 0x1d3   :  { %7082 = vst [vmem:[#allocation115_spill] sm:$0xff] %v4292_v22  ;;  %856 = vbcast.lane.b32.xlu1 %v4180_v20, 272 }
 0x1d6   :  { %v4296_v18 = vpop.permute.xlu1 %696 }
 0x1d7   :  { %7083 = vst [vmem:[#allocation116_spill] sm:$0xff] %v4296_v18  ;;  %867 = vbcast.lane.b32.xlu1 %v4210_v9, 256 }
 0x1da   :  { %v4300_v23 = vpop.permute.xlu1 %704 }
 0x1db   :  { %7084 = vst [vmem:[#allocation117_spill] sm:$0xff] %v4300_v23  ;;  %875 = vbcast.lane.b32.xlu1 %v4210_v9, 272 }
 0x1de   :  { %v4304_v4 = vpop.permute.xlu1 %715 }
 0x1df   :  { %7085 = vst [vmem:[#allocation118_spill] sm:$0xff] %v4304_v4  ;;  %886 = vbcast.lane.b32.xlu1 %v884_v60, 256 }
 0x1e2   :  { %v4307_v30 = vpop.permute.xlu1 %723 }
 0x1e3   :  { %7086 = vst [vmem:[#allocation119_spill] sm:$0xff] %v4307_v30  ;;  %894 = vbcast.lane.b32.xlu1 %v884_v60, 272 }
 0x1e6   :  { %v4310_v20 = vpop.permute.xlu1 %734 }
 0x1e7   :  { %7087 = vst [vmem:[#allocation120_spill] sm:$0xff] %v4310_v20  ;;  %905 = vbcast.lane.b32.xlu1 %v903_v26, 256 }
 0x1ea   :  { %v4313_v53 = vpop.permute.xlu1 %742 }
 0x1eb   :  { %7088 = vst [vmem:[#allocation121_spill] sm:$0xff] %v4313_v53  ;;  %913 = vbcast.lane.b32.xlu1 %v903_v26, 272  ;;  %v72_v26 = vld [vmem:[%s6715_s1 + $0x18] sm:$0xff]  ;;  %v3249_v53 = vpop.f32.mrb[0].mxu1 }
 0x1ec   :  { %v179_v20 = vadd.f32 %v3249_v53, %v72_v26  ;;  %v167_v30 = vpop.f32.mrb[1].mxu1  ;;  %v4361_v53 = vld [vmem:[%s6717_s8 + $0x18] sm:$0xff] }
 0x1ed   :  { %7096 = vst [vmem:[#allocation129_spill] sm:$0xff] %v4361_v53 }
 0x1ee   :  { %v4316_v9 = vpop.permute.xlu1 %753  ;;  %v4367_v38 = vadd.f32 %v3179_v32, %v179_v20  }
 0x1ef   :  { %7089 = vst [vmem:[#allocation122_spill] sm:$0xff] %v4316_v9  ;;  %924 = vbcast.lane.b32.xlu1 %v922_v28, 256 }
 0x1f2   :  { %v4319_v61 = vpop.permute.xlu1 %761 }
 0x1f3   :  { %7090 = vst [vmem:[#allocation123_spill] sm:$0xff] %v4319_v61  ;;  %932 = vbcast.lane.b32.xlu1 %v922_v28, 272  ;;  %v69_v61 = vld [vmem:[%s6715_s1] sm:$0xff]  ;;  %v71_v28 = vld [vmem:[%s6715_s1 + $0x10] sm:$0xff] }
 0x1f6   :  { %v4322_v60 = vpop.permute.xlu1 %772 }
 0x1f7   :  { %7091 = vst [vmem:[#allocation124_spill] sm:$0xff] %v4322_v60  ;;  %943 = vbcast.lane.b32.xlu1 %v941_v8, 256  ;;  %v3246_v60 = vpop.f32.mrb[0].mxu0 }
 0x1f8   :  { %v177_v54 = vadd.f32 %v3246_v60, %v70_v21  ;;  %v157_v34 = vpop.f32.mrb[1].mxu0  ;;  %v178_v21 = vadd.f32 %v167_v30, %v71_v28 }
 0x1f9   :  { %v176_v4 = vadd.f32 %v157_v34, %v69_v61 }
 0x1fa   :  { %v4331_v9 = vpop.permute.xlu1 %780  ;;  %v4365_v26 = vadd.f32 %v3179_v32, %v177_v54   ;;  %v4372_v39 = vadd.f32 %v3179_v32, %v178_v21  }
 0x1fb   :  { %7092 = vst [vmem:[#allocation125_spill] sm:$0xff] %v4331_v9  ;;  %951 = vbcast.lane.b32.xlu1 %v941_v8, 272  ;;  %v4351_v9 = vld [vmem:[%s6717_s8 + $0x8] sm:$0xff]  ;;  %v4356_v8 = vld [vmem:[%s6717_s8 + $0x10] sm:$0xff]  ;;  %s4493_s8 = smov 0  }
 0x1fc   :  { %7094 = vst [vmem:[#allocation127_spill] sm:$0xff] %v4351_v9  ;;  %7095 = vst [vmem:[#allocation128_spill] sm:$0xff] %v4356_v8  ;;  %v4370_v9 = vadd.f32 %v3179_v32, %v176_v4  }
 0x1fe   :  { %v4363_v60 = vpop.permute.xlu1 %791 }
 0x1ff   :  { %7097 = vst [vmem:[#allocation130_spill] sm:$0xff] %v4363_v60 }
 0x202   :  { %v4374_v8 = vpop.permute.xlu1 %799 }
 0x203   :  { %7098 = vst [vmem:[#allocation131_spill] sm:$0xff] %v4374_v8 }
 0x206   :  { %v4377_v30 = vpop.permute.xlu1 %810 }
 0x207   :  { %7099 = vst [vmem:[#allocation132_spill] sm:$0xff] %v4377_v30 }
 0x20c   :  { %v4380_v61 = vpop.xlane.xlu0 %344 }
 0x20d   :  { %7100 = vst [vmem:[#allocation133_spill] sm:$0xff] %v4380_v61 }
 0x210   :  { %v4382_v34 = vpop.permute.xlu0 %814 }
 0x211   :  { %7101 = vst [vmem:[#allocation134_spill] sm:$0xff] %v4382_v34 }
 0x214   :  { %v4385_v54 = vpop.permute.xlu0 %822 }
 0x215   :  { %7102 = vst [vmem:[#allocation135_spill] sm:$0xff] %v4385_v54 }
 0x218   :  { %v4388_v4 = vpop.permute.xlu0 %833 }
 0x219   :  { %7103 = vst [vmem:[#allocation136_spill] sm:$0xff] %v4388_v4 }
 0x21c   :  { %v4391_v32 = vpop.permute.xlu0 %841 }
 0x21d   :  { %7104 = vst [vmem:[#allocation137_spill] sm:$0xff] %v4391_v32 }
 0x220   :  { %v4394_v20 = vpop.permute.xlu0 %852 }
 0x221   :  { %7105 = vst [vmem:[#allocation138_spill] sm:$0xff] %v4394_v20 }
 0x224   :  { %v4397_v28 = vpop.permute.xlu0 %860 }
 0x225   :  { %7106 = vst [vmem:[#allocation139_spill] sm:$0xff] %v4397_v28 }
 0x228   :  { %v4400_v21 = vpop.permute.xlu0 %871 }
 0x229   :  { %7107 = vst [vmem:[#allocation140_spill] sm:$0xff] %v4400_v21 }
 0x22c   :  { %v4403_v53 = vpop.permute.xlu0 %879 }
 0x22d   :  { %7108 = vst [vmem:[#allocation141_spill] sm:$0xff] %v4403_v53 }
 0x230   :  { %v4406_v61 = vpop.permute.xlu0 %890 }
 0x231   :  { %7109 = vst [vmem:[#allocation142_spill] sm:$0xff] %v4406_v61 }
 0x234   :  { %v4409_v32 = vpop.permute.xlu0 %898 }
 0x235   :  { %7110 = vst [vmem:[#allocation143_spill] sm:$0xff] %v4409_v32 }
 0x237   :  { %v4412_v20 = vpop.xlane.xlu1 %338 }
 0x238   :  { %7111 = vst [vmem:[#allocation144_spill] sm:$0xff] %v4412_v20  ;;  %v4414_v4 = vpop.permute.xlu0 %909 }
 0x239   :  { %7112 = vst [vmem:[#allocation145_spill] sm:$0xff] %v4414_v4 }
 0x23b   :  { %v4417_v28 = vpop.xlane.xlu1 %341 }
 0x23c   :  { %7113 = vst [vmem:[#allocation146_spill] sm:$0xff] %v4417_v28  ;;  %v4419_v21 = vpop.permute.xlu0 %917 }
 0x23d   :  { %7114 = vst [vmem:[#allocation147_spill] sm:$0xff] %v4419_v21 }
 0x23f   :  { %v4422_v53 = vpop.xlane.xlu1 %347 }
 0x240   :  { %7115 = vst [vmem:[#allocation148_spill] sm:$0xff] %v4422_v53  ;;  %v4424_v54 = vpop.permute.xlu0 %928 }
 0x241   :  { %7116 = vst [vmem:[#allocation149_spill] sm:$0xff] %v4424_v54 }
 0x243   :  { %v4427_v61 = vpop.permute.xlu1 %818 }
 0x244   :  { %7117 = vst [vmem:[#allocation150_spill] sm:$0xff] %v4427_v61  ;;  %v4430_v20 = vpop.permute.xlu0 %936 }
 0x245   :  { %7118 = vst [vmem:[#allocation151_spill] sm:$0xff] %v4430_v20 }
 0x247   :  { %v4433_v4 = vpop.permute.xlu1 %829 }
 0x248   :  { %7119 = vst [vmem:[#allocation152_spill] sm:$0xff] %v4433_v4  ;;  %v4436_v28 = vpop.permute.xlu0 %947 }
 0x249   :  { %7120 = vst [vmem:[#allocation153_spill] sm:$0xff] %v4436_v28 }
 0x24b   :  { %v4439_v53 = vpop.permute.xlu1 %837 }
 0x24c   :  { %7121 = vst [vmem:[#allocation154_spill] sm:$0xff] %v4439_v53  ;;  %v4442_v54 = vpop.permute.xlu0 %955 }
 0x24d   :  { %7122 = vst [vmem:[#allocation155_spill] sm:$0xff] %v4442_v54 }
 0x24f   :  { %v4445_v21 = vpop.permute.xlu1 %848 }
 0x250   :  { %7123 = vst [vmem:[#allocation156_spill] sm:$0xff] %v4445_v21 }
 0x253   :  { %v4448_v20 = vpop.permute.xlu1 %856 }
 0x254   :  { %7124 = vst [vmem:[#allocation157_spill] sm:$0xff] %v4448_v20 }
 0x257   :  { %v4451_v32 = vpop.permute.xlu1 %867 }
 0x258   :  { %7125 = vst [vmem:[#allocation158_spill] sm:$0xff] %v4451_v32 }
 0x25b   :  { %v4454_v28 = vpop.permute.xlu1 %875 }
 0x25c   :  { %7126 = vst [vmem:[#allocation159_spill] sm:$0xff] %v4454_v28 }
 0x25f   :  { %v4457_v53 = vpop.permute.xlu1 %886 }
 0x260   :  { %7127 = vst [vmem:[#allocation160_spill] sm:$0xff] %v4457_v53 }
 0x263   :  { %v4460_v54 = vpop.permute.xlu1 %894 }
 0x264   :  { %7128 = vst [vmem:[#allocation161_spill] sm:$0xff] %v4460_v54 }
 0x267   :  { %v4463_v21 = vpop.permute.xlu1 %905 }
 0x268   :  { %7129 = vst [vmem:[#allocation162_spill] sm:$0xff] %v4463_v21 }
 0x26b   :  { %v4466_v20 = vpop.permute.xlu1 %913 }
 0x26c   :  { %7130 = vst [vmem:[#allocation163_spill] sm:$0xff] %v4466_v20 }
 0x26f   :  { %v4469_v32 = vpop.permute.xlu1 %924 }
 0x270   :  { %7131 = vst [vmem:[#allocation164_spill] sm:$0xff] %v4469_v32 }
 0x273   :  { %v4472_v28 = vpop.permute.xlu1 %932 }
 0x274   :  { %7132 = vst [vmem:[#allocation165_spill] sm:$0xff] %v4472_v28 }
 0x277   :  { %v4475_v53 = vpop.permute.xlu1 %943 }
 0x278   :  { %7133 = vst [vmem:[#allocation166_spill] sm:$0xff] %v4475_v53 }
 0x27b   :  { %v4478_v54 = vpop.permute.xlu1 %951 }
 0x27c   :  { %7134 = vst [vmem:[#allocation167_spill] sm:$0xff] %v4478_v54 }
 0x27d LB: > { %7135 = vst [vmem:[#allocation168_spill] sm:$0xff] %v3536_v38  ;;  %7136 = vst [vmem:[#allocation169_spill] sm:$0xff] %v3540_v39  ;;  %v7139_v1 = vld [vmem:[#allocation5_spill] sm:$0xff]  ;;  %v3310_v54 = vpack.c.bf16 %v3544_v26, %v3548_v9  ;;  %v3314_v53 = vpack.c.bf16 %v3536_v38, %v3540_v39  ;;  %s3555_s28 = smov 32   ;;  %v7140_v3 = vld [vmem:[#allocation75_spill] sm:$0xff]  ;;  %s3556_s18 = smov 64   ;;  %s3552_s8 = sphi %s4493_s8, %s1094_s8   ;;  %v3548_v9 = vphi %v4370_v9, %v7775_v9   ;;  %v3544_v26 = vphi %v4365_v26, %v7774_v26   ;;  %v3540_v39 = vphi %v4372_v39, %v7773_v39   ;;  %v3536_v38 = vphi %v4367_v38, %v7772_v38  }
 0x27e   : > { %7137 = vst [vmem:[#allocation170_spill] sm:$0xff] %v3544_v26  ;;  %7138 = vst [vmem:[#allocation171_spill] sm:$0xff] %v3548_v9  ;;  %3258 = vmatprep.mubr.msk.f32.mxu0 %vm195_vm0, %v7139_v1  ;;  %2571 = vrot.lane.b32.xlu0 %v3540_v39, %s3555_s28  ;;  %vm7141_vm1 = vcmp.gt.f32.partialorder %v7140_v3, 0.0  ;;  %v4528_v1 = vsel %vm990_vm14, %v3544_v26, -1e+30  ;;  %v7143_v50 = vld [vmem:[#allocation77_spill] sm:$0xff]  ;;  %s2804_s23 = scalar_lea.vmem %s6702_s11, %s3552_s8 }
 0x27f   : > { %v4521_v28 = vsel %vm7141_vm1, %v3548_v9, -1e+30  ;;  %2569 = vrot.lane.b32.xlu1 %v3544_v26, %s3555_s28  ;;  %vm7144_vm6 = vcmp.gt.f32.partialorder %v7143_v50, 0.0  ;;  %v7145_v16 = vld [vmem:[#allocation55_spill] sm:$0xff]  ;;  %3311 = vmatprep.subr.bf16.mxu0 %v3310_v54  ;;  %v4548_v4 = vsel %vm994_vm15, %v3544_v26, -1e+30 }
 0x280   : > { %v4533_v32 = vsel %vm7144_vm6, %v3540_v39, -1e+30  ;;  %vm7146_vm3 = vcmp.gt.f32.partialorder %v7145_v16, 0.0  ;;  %v7147_v55 = vld [vmem:[#allocation79_spill] sm:$0xff]  ;;  %v7150_v14 = vld [vmem:[#allocation81_spill] sm:$0xff]  ;;  %3313 = vmatpush3.bf16.msra.mxu0 %v3310_v54  ;;  %v7155_v31 = vld [vmem:[#allocation58_spill] sm:$0xff] }
 0x281   : > { %v4538_v20 = vsel %vm7146_vm3, %v3536_v38, -1e+30  ;;  %vm7148_vm5 = vcmp.gt.f32.partialorder %v7147_v55, 0.0  ;;  %vm7151_vm8 = vcmp.gt.f32.partialorder %v7150_v14, 0.0  ;;  %v4558_v34 = vsel %vm996_vm13, %v3536_v38, -1e+30  ;;  %3315 = vmatprep.subr.bf16.mxu0 %v3314_v53 }
 0x282   : > { %v4543_v21 = vsel %vm7148_vm5, %v3548_v9, -1e+30  ;;  %v4553_v61 = vsel %vm7151_vm8, %v3540_v39, -1e+30  ;;  %v7153_v33 = vld [vmem:[#allocation83_spill] sm:$0xff]  ;;  %vm7156_vm2 = vcmp.gt.f32.partialorder %v7155_v31, 0.0 }
 0x283   : > { %vm7154_vm4 = vcmp.gt.f32.partialorder %v7153_v33, 0.0  ;;  %v4568_v11 = vsel %vm7156_vm2, %v3544_v26, -1e+30  ;;  %v7157_v10 = vld [vmem:[#allocation85_spill] sm:$0xff]  ;;  %v7159_v29 = vld [vmem:[#allocation59_spill] sm:$0xff]  ;;  %v7163_v59 = vld [vmem:[#allocation60_spill] sm:$0xff] }
 0x284   : > { %v4563_v30 = vsel %vm7154_vm4, %v3548_v9, -1e+30  ;;  %vm7158_vm7 = vcmp.gt.f32.partialorder %v7157_v10, 0.0  ;;  %vm7160_vm9 = vcmp.gt.f32.partialorder %v7159_v29, 0.0  ;;  %v7161_v63 = vld [vmem:[#allocation87_spill] sm:$0xff]  ;;  %vm7164_vm12 = vcmp.gt.f32.partialorder %v7163_v59, 0.0  ;;  %3317 = vmatpush3.bf16.msra.mxu0 %v3314_v53 }
 0x285   : > { %v4573_v54 = vsel %vm7158_vm7, %v3540_v39, -1e+30  ;;  %v4578_v36 = vsel %vm7160_vm9, %v3536_v38, -1e+30  ;;  %vm7162_vm11 = vcmp.gt.f32.partialorder %v7161_v63, 0.0  ;;  %v7165_v51 = vld [vmem:[#allocation89_spill] sm:$0xff] }
 0x286   : > { %v4583_v33 = vsel %vm7162_vm11, %v3548_v9, -1e+30  ;;  %v4588_v31 = vsel %vm7164_vm12, %v3544_v26, -1e+30  ;;  %vm7166_vm10 = vcmp.gt.f32.partialorder %v7165_v51, 0.0  ;;  %v7167_v41 = vld [vmem:[#allocation61_spill] sm:$0xff] }
 0x287   : > { %v4593_v10 = vsel %vm7166_vm10, %v3540_v39, -1e+30  ;;  %vm7168_vm7 = vcmp.gt.f32.partialorder %v7167_v41, 0.0  ;;  %v7169_v35 = vld [vmem:[#allocation92_spill] sm:$0xff]  ;;  %v7171_v12 = vld [vmem:[#allocation62_spill] sm:$0xff]  ;;  %v7173_v44 = vld [vmem:[#allocation95_spill] sm:$0xff] }
 0x288   : > { %v4598_v29 = vsel %vm7168_vm7, %v3536_v38, -1e+30  ;;  %vm7170_vm9 = vcmp.gt.f32.partialorder %v7169_v35, 0.0  ;;  %vm7172_vm11 = vcmp.gt.f32.partialorder %v7171_v12, 0.0  ;;  %vm7174_vm12 = vcmp.gt.f32.partialorder %v7173_v44, 0.0  ;;  %v7175_v42 = vld [vmem:[#allocation63_spill] sm:$0xff] }
 0x289   : > { %v4603_v63 = vsel %vm7170_vm9, %v3548_v9, -1e+30  ;;  %v4608_v59 = vsel %vm7172_vm11, %v3544_v26, -1e+30  ;;  %v4613_v51 = vsel %vm7174_vm12, %v3540_v39, -1e+30 }
 0x28a   : > { %vm7176_vm10 = vcmp.gt.f32.partialorder %v7175_v42, 0.0  ;;  %v7177_v24 = vld [vmem:[#allocation98_spill] sm:$0xff]  ;;  %v7179_v25 = vld [vmem:[#allocation65_spill] sm:$0xff]  ;;  %v7181_v62 = vld [vmem:[#allocation100_spill] sm:$0xff]  ;;  %vm1870_vm2 = vcmask 1046534   ;;  %vm1872_vm4 = vcmask 1047559  }
 0x28b   : > { %v4618_v41 = vsel %vm7176_vm10, %v3536_v38, -1e+30  ;;  %vm7178_vm7 = vcmp.gt.f32.partialorder %v7177_v24, 0.0  ;;  %vm7180_vm9 = vcmp.gt.f32.partialorder %v7179_v25, 0.0  ;;  %vm7182_vm11 = vcmp.gt.f32.partialorder %v7181_v62, 0.0  ;;  %v7183_v43 = vld [vmem:[#allocation69_spill] sm:$0xff] }
 0x28c   : > { %v4623_v35 = vsel %vm7178_vm7, %v3548_v9, -1e+30  ;;  %v4628_v12 = vsel %vm7180_vm9, %v3544_v26, -1e+30  ;;  %v4633_v44 = vsel %vm7182_vm11, %v3540_v39, -1e+30 }
 0x28d   : > { %vm7184_vm12 = vcmp.gt.f32.partialorder %v7183_v43, 0.0  ;;  %v7185_v19 = vld [vmem:[#allocation102_spill] sm:$0xff]  ;;  %v7187_v52 = vld [vmem:[#allocation72_spill] sm:$0xff]  ;;  %v7193_v7 = vld [vmem:[#allocation7_spill] sm:$0xff]  ;;  %s2597_s29 = smul.u32 192, %s3552_s8  ;;  %s7748_s5 = sld [smem:[#allocation183_spill]] }
 0x28e   : > { %v4638_v53 = vsel %vm7184_vm12, %v3536_v38, -1e+30  ;;  %vm7186_vm10 = vcmp.gt.f32.partialorder %v7185_v19, 0.0  ;;  %vm7188_vm7 = vcmp.gt.f32.partialorder %v7187_v52, 0.0  ;;  %v7189_v49 = vld [vmem:[#allocation104_spill] sm:$0xff]  ;;  %v7191_v56 = vld [vmem:[#allocation74_spill] sm:$0xff]  ;;  %3259 = vmatmul.mubr.msk.f32.vlgmr.msra.gmra.mrb[0].mxu0 %vm195_vm0, %v7193_v7 }
 0x28f   : > { %v4643_v24 = vsel %vm7186_vm10, %v3548_v9, -1e+30  ;;  %v4648_v25 = vsel %vm7188_vm7, %v3544_v26, -1e+30  ;;  %vm7190_vm9 = vcmp.gt.f32.partialorder %v7189_v49, 0.0  ;;  %vm7192_vm11 = vcmp.gt.f32.partialorder %v7191_v56, 0.0 }
 0x290   : > { %v4653_v62 = vsel %vm7190_vm9, %v3540_v39, -1e+30  ;;  %v4658_v43 = vsel %vm7192_vm11, %v3536_v38, -1e+30  ;;  %v7194_v37 = vld [vmem:[#allocation106_spill] sm:$0xff]  ;;  %v7196_v45 = vld [vmem:[#allocation76_spill] sm:$0xff] }
 0x291   : > { %vm7195_vm12 = vcmp.gt.f32.partialorder %v7194_v37, 0.0  ;;  %vm7197_vm10 = vcmp.gt.f32.partialorder %v7196_v45, 0.0  ;;  %v7198_v47 = vld [vmem:[#allocation108_spill] sm:$0xff]  ;;  %v7201_v17 = vld [vmem:[#allocation78_spill] sm:$0xff]  ;;  %v7215_v22 = vld [vmem:[#allocation115_spill] sm:$0xff]  ;;  %s3559_s20 = smov 96  }
 0x292   : > { %v4665_v19 = vsel %vm7195_vm12, %v3548_v9, -1e+30  ;;  %v4670_v52 = vsel %vm7197_vm10, %v3544_v26, -1e+30  ;;  %vm7199_vm7 = vcmp.gt.f32.partialorder %v7198_v47, 0.0  ;;  %v7200_v0 = vld [vmem:[#allocation4_spill] sm:$0xff] }
 0x293   : > { %v4675_v49 = vsel %vm7199_vm7, %v3540_v39, -1e+30  ;;  %3261 = vmatprep.mubr.msk.f32.mxu0 %vm195_vm0, %v7200_v0  ;;  %vm7202_vm9 = vcmp.gt.f32.partialorder %v7201_v17, 0.0  ;;  %v7203_v58 = vld [vmem:[#allocation110_spill] sm:$0xff]  ;;  %v7205_v40 = vld [vmem:[#allocation80_spill] sm:$0xff]  ;;  %v7224_v23 = vld [vmem:[#allocation117_spill] sm:$0xff]  ;;  %s6518_s30 = scalar_lea.vmem %s7748_s5, %s2597_s29 }
 0x294   : > { %v4682_v7 = vsel %vm7202_vm9, %v3536_v38, -1e+30  ;;  %vm7204_vm11 = vcmp.gt.f32.partialorder %v7203_v58, 0.0  ;;  %vm7206_vm12 = vcmp.gt.f32.partialorder %v7205_v40, 0.0  ;;  %v7207_v57 = vld [vmem:[#allocation112_spill] sm:$0xff]  ;;  %v7209_v27 = vld [vmem:[#allocation82_spill] sm:$0xff] }
 0x295   : > { %v4687_v37 = vsel %vm7204_vm11, %v3548_v9, -1e+30  ;;  %v4692_v45 = vsel %vm7206_vm12, %v3544_v26, -1e+30  ;;  %vm7208_vm10 = vcmp.gt.f32.partialorder %v7207_v57, 0.0  ;;  %vm7210_vm7 = vcmp.gt.f32.partialorder %v7209_v27, 0.0 }
 0x296   : > { %v4697_v47 = vsel %vm7208_vm10, %v3540_v39, -1e+30  ;;  %v4702_v0 = vsel %vm7210_vm7, %v3536_v38, -1e+30  ;;  %v7211_v46 = vld [vmem:[#allocation114_spill] sm:$0xff]  ;;  %v7213_v15 = vld [vmem:[#allocation84_spill] sm:$0xff] }
 0x297   : > { %vm7212_vm9 = vcmp.gt.f32.partialorder %v7211_v46, 0.0  ;;  %vm7214_vm11 = vcmp.gt.f32.partialorder %v7213_v15, 0.0  ;;  %vm7216_vm12 = vcmp.gt.f32.partialorder %v7215_v22, 0.0  ;;  %v7217_v13 = vld [vmem:[#allocation86_spill] sm:$0xff]  ;;  %v7220_v18 = vld [vmem:[#allocation116_spill] sm:$0xff]  ;;  %v7226_v48 = vld [vmem:[#allocation91_spill] sm:$0xff] }
 0x298   : > { %v4707_v58 = vsel %vm7212_vm9, %v3548_v9, -1e+30  ;;  %v4712_v40 = vsel %vm7214_vm11, %v3544_v26, -1e+30  ;;  %v4717_v57 = vsel %vm7216_vm12, %v3540_v39, -1e+30 }
 0x299   : > { %vm7218_vm10 = vcmp.gt.f32.partialorder %v7217_v13, 0.0  ;;  %v7219_v2 = vld [vmem:[#allocation6_spill] sm:$0xff]  ;;  %vm7221_vm7 = vcmp.gt.f32.partialorder %v7220_v18, 0.0  ;;  %v7222_v6 = vld [vmem:[#allocation88_spill] sm:$0xff]  ;;  %vm7225_vm11 = vcmp.gt.f32.partialorder %v7224_v23, 0.0  ;;  %v7233_v23 = vld [vmem:[#allocation119_spill] sm:$0xff] }
 0x29a   : > { %v4722_v27 = vsel %vm7218_vm10, %v3536_v38, -1e+30  ;;  %3262 = vmatmul.mubr.msk.f32.gmra.mrb[2].mxu0 %vm195_vm0, %v7219_v2  ;;  %v4729_v46 = vsel %vm7221_vm7, %v3548_v9, -1e+30  ;;  %vm7223_vm9 = vcmp.gt.f32.partialorder %v7222_v6, 0.0  ;;  %v7227_v2 = vld [vmem:[#allocation90_spill] sm:$0xff] }
 0x29b   : > { %v4734_v15 = vsel %vm7223_vm9, %v3544_v26, -1e+30  ;;  %v4739_v22 = vsel %vm7225_vm11, %v3540_v39, -1e+30  ;;  %3264 = vmatprep.mubr.msk.f32.mxu0 %vm195_vm0, %v7226_v48  ;;  %vm7228_vm12 = vcmp.gt.f32.partialorder %v7227_v2, 0.0  ;;  %v7229_v18 = vld [vmem:[#allocation118_spill] sm:$0xff] }
 0x29c   : > { %v4746_v13 = vsel %vm7228_vm12, %v3536_v38, -1e+30  ;;  %vm7230_vm10 = vcmp.gt.f32.partialorder %v7229_v18, 0.0  ;;  %v7231_v6 = vld [vmem:[#allocation93_spill] sm:$0xff]  ;;  %vm7234_vm9 = vcmp.gt.f32.partialorder %v7233_v23, 0.0  ;;  %v7235_v48 = vld [vmem:[#allocation96_spill] sm:$0xff] }
 0x29d   : > { %v4751_v17 = vsel %vm7230_vm10, %v3548_v9, -1e+30  ;;  %vm7232_vm7 = vcmp.gt.f32.partialorder %v7231_v6, 0.0  ;;  %v4761_v42 = vsel %vm7234_vm9, %v3540_v39, -1e+30  ;;  %vm7236_vm11 = vcmp.gt.f32.partialorder %v7235_v48, 0.0 }
 0x29e   : > { %v4756_v56 = vsel %vm7232_vm7, %v3544_v26, -1e+30  ;;  %v4766_v2 = vsel %vm7236_vm11, %v3536_v38, -1e+30  ;;  %v7237_v14 = vld [vmem:[#allocation120_spill] sm:$0xff]  ;;  %v7239_v55 = vld [vmem:[#allocation99_spill] sm:$0xff] }
 0x29f   : > { %vm7238_vm12 = vcmp.gt.f32.partialorder %v7237_v14, 0.0  ;;  %vm7240_vm10 = vcmp.gt.f32.partialorder %v7239_v55, 0.0  ;;  %v7242_v16 = vld [vmem:[#allocation121_spill] sm:$0xff]  ;;  %v7248_v5 = vld [vmem:[#allocation94_spill] sm:$0xff]  ;;  %v7252_v55 = vld [vmem:[#allocation103_spill] sm:$0xff]  ;;  %s7771_s22 = sld [smem:[#allocation184_spill]] }
 0x2a0   : > { %v4771_v18 = vsel %vm7238_vm12, %v3548_v9, -1e+30  ;;  %v4776_v6 = vsel %vm7240_vm10, %v3544_v26, -1e+30  ;;  %vm7243_vm7 = vcmp.gt.f32.partialorder %v7242_v16, 0.0  ;;  %v7245_v50 = vld [vmem:[#allocation101_spill] sm:$0xff]  ;;  %3265 = vmatmul.mubr.msk.f32.gmra.mrb[4].mxu0 %vm195_vm0, %v7248_v5 }
 0x2a1   : > { %7241 = vst [vmem:[#allocation172_spill] sm:$0xff] %v4776_v6  ;;  %v4781_v23 = vsel %vm7243_vm7, %v3540_v39, -1e+30  ;;  %vm7246_vm9 = vcmp.gt.f32.partialorder %v7245_v50, 0.0  ;;  %v7249_v14 = vld [vmem:[#allocation122_spill] sm:$0xff]  ;;  %vm7253_vm12 = vcmp.gt.f32.partialorder %v7252_v55, 0.0 }
 0x2a2   : > { %7244 = vst [vmem:[#allocation173_spill] sm:$0xff] %v4781_v23  ;;  %v4786_v48 = vsel %vm7246_vm9, %v3536_v38, -1e+30  ;;  %vm7250_vm11 = vcmp.gt.f32.partialorder %v7249_v14, 0.0  ;;  %v4798_v6 = vsel %vm7253_vm12, %v3544_v26, -1e+30 }
 0x2a3   : > { %7247 = vst [vmem:[#allocation174_spill] sm:$0xff] %v4786_v48  ;;  %v4793_v3 = vsel %vm7250_vm11, %v3548_v9, -1e+30  ;;  %7254 = vst [vmem:[#allocation176_spill] sm:$0xff] %v4798_v6  ;;  %v7255_v16 = vld [vmem:[#allocation123_spill] sm:$0xff]  ;;  %v7258_v50 = vld [vmem:[#allocation68_spill] sm:$0xff] }
 0x2a4   : > { %7251 = vst [vmem:[#allocation175_spill] sm:$0xff] %v4793_v3  ;;  %vm7256_vm10 = vcmp.gt.f32.partialorder %v7255_v16, 0.0  ;;  %3267 = vmatprep.mubr.msk.f32.mxu0 %vm195_vm0, %v7258_v50  ;;  %v7259_v5 = vld [vmem:[#allocation105_spill] sm:$0xff]  ;;  %v7261_v14 = vld [vmem:[#allocation124_spill] sm:$0xff]  ;;  %v7264_v55 = vld [vmem:[#allocation107_spill] sm:$0xff] }
 0x2a5   : > { %v4803_v23 = vsel %vm7256_vm10, %v3540_v39, -1e+30  ;;  %vm7260_vm7 = vcmp.gt.f32.partialorder %v7259_v5, 0.0  ;;  %vm7262_vm9 = vcmp.gt.f32.partialorder %v7261_v14, 0.0  ;;  %vm7265_vm11 = vcmp.gt.f32.partialorder %v7264_v55, 0.0  ;;  %v7266_v16 = vld [vmem:[#allocation125_spill] sm:$0xff]  ;;  %s2768_s6 = scalar_lea.vmem %s7771_s22, %s3552_s8 }
 0x2a6   : > { %7257 = vst [vmem:[#allocation177_spill] sm:$0xff] %v4803_v23  ;;  %v4810_v48 = vsel %vm7260_vm7, %v3536_v38, -1e+30  ;;  %v4815_v3 = vsel %vm7262_vm9, %v3548_v9, -1e+30  ;;  %vm7267_vm12 = vcmp.gt.f32.partialorder %v7266_v16, 0.0 }
 0x2a7   : > { %7263 = vst [vmem:[#allocation178_spill] sm:$0xff] %v4815_v3  ;;  %v4820_v6 = vsel %vm7265_vm11, %v3544_v26, -1e+30  ;;  %v4825_v23 = vsel %vm7267_vm12, %v3540_v39, -1e+30  ;;  %v7269_v50 = vld [vmem:[#allocation109_spill] sm:$0xff] }
 0x2a8   : > { %7268 = vst [vmem:[#allocation179_spill] sm:$0xff] %v4825_v23  ;;  %vm7270_vm10 = vcmp.gt.f32.partialorder %v7269_v50, 0.0  ;;  %v7272_v60 = vld [vmem:[#allocation130_spill] sm:$0xff]  ;;  %v7274_v3 = vld [vmem:[#allocation111_spill] sm:$0xff]  ;;  %v1508_v50 = vsel %vm195_vm0, %v4521_v28, -inf  ;;  %v7278_v23 = vld [vmem:[#allocation97_spill] sm:$0xff] }
 0x2a9   : > { %v4830_v5 = vsel %vm7270_vm10, %v3536_v38, -1e+30  ;;  %vm7273_vm7 = vcmp.gt.f32.partialorder %v7272_v60, 0.0  ;;  %vm7275_vm9 = vcmp.gt.f32.partialorder %v7274_v3, 0.0  ;;  %v7276_v8 = vld [vmem:[#allocation131_spill] sm:$0xff]  ;;  %3268 = vmatmul.mubr.msk.f32.gmra.mrb[6].mxu0 %vm195_vm0, %v7278_v23  ;;  %v1511_v3 = vsel %vm195_vm0, %v4533_v32, -inf }
 0x2aa   : > { %7271 = vst [vmem:[#allocation180_spill] sm:$0xff] %v4830_v5  ;;  %v4835_v14 = vsel %vm7273_vm7, %v3548_v9, -1e+30  ;;  %v4840_v55 = vsel %vm7275_vm9, %v3544_v26, -1e+30  ;;  %vm7277_vm11 = vcmp.gt.f32.partialorder %v7276_v8, 0.0 }
 0x2ab   : > { %v4845_v16 = vsel %vm7277_vm11, %v3540_v39, -1e+30  ;;  %v1509_v5 = vsel %vm195_vm0, %v4528_v1, -inf  ;;  %v1513_v26 = vsel %vm195_vm0, %v4538_v20, -inf  ;;  %v1521_v8 = vsel %vm195_vm0, %v4543_v21, -inf  ;;  %s1094_s8 = sadd.s32 1, %s3552_s8  }
 0x2ac   : > { %v1510_v60 = vmax.f32 %v1508_v50, %v1509_v5  ;;  %v1522_v39 = vsel %vm195_vm0, %v4548_v4, -inf  ;;  %v1524_v28 = vsel %vm195_vm0, %v4553_v61, -inf  ;;  %v1526_v1 = vsel %vm195_vm0, %v4558_v34, -inf  ;;  %v7279_v5 = vld [vmem:[#allocation51_spill] sm:$0xff]  ;;  %p1091_p0 = scmp.ge.s32.totalorder %s1094_s8, 4  }
 0x2ad   : > { %v1534_v23 = vsel %vm195_vm0, %v4563_v30, -inf  ;;  %3270 = vmatprep.mubr.msk.f32.mxu0 %vm195_vm0, %v7279_v5  ;;  %v1523_v20 = vmax.f32 %v1521_v8, %v1522_v39  ;;  %v1535_v21 = vsel %vm195_vm0, %v4568_v11, -inf  ;;  %v1537_v4 = vsel %vm195_vm0, %v4573_v54, -inf  ;;  %v7280_v11 = vld [vmem:[#allocation49_spill] sm:$0xff] }
 0x2ae   : > { %v1512_v32 = vmax.f32 %v1510_v60, %v1511_v3  ;;  %v1536_v50 = vmax.f32 %v1534_v23, %v1535_v21  ;;  %v1539_v61 = vsel %vm195_vm0, %v4578_v36, -inf  ;;  %v1547_v34 = vsel %vm195_vm0, %v4583_v33, -inf  ;;  %3271 = vmatmul.mubr.msk.f32.gmra.mrb[8].mxu0 %vm195_vm0, %v7280_v11 }
 0x2af   : > { %v1548_v30 = vsel %vm195_vm0, %v4588_v31, -inf  ;;  %v1525_v5 = vmax.f32 %v1523_v20, %v1524_v28  ;;  %v1550_v39 = vsel %vm195_vm0, %v4593_v10, -inf  ;;  %v1552_v60 = vsel %vm195_vm0, %v4598_v29, -inf  ;;  %v7281_v31 = vld [vmem:[#allocation67_spill] sm:$0xff] }
 0x2b0   : > { %v1514_v9 = vmax.f32 %v1512_v32, %v1513_v26  ;;  %v1549_v3 = vmax.f32 %v1547_v34, %v1548_v30  ;;  %v1538_v8 = vmax.f32 %v1536_v50, %v1537_v4  ;;  %v1560_v36 = vsel %vm195_vm0, %v4603_v63, -inf  ;;  %3273 = vmatprep.mubr.msk.f32.mxu0 %vm195_vm0, %v7281_v31  ;;  %v7282_v50 = vld [vmem:[#allocation71_spill] sm:$0xff] }
 0x2b1   : > { %v1561_v33 = vsel %vm195_vm0, %v4608_v59, -inf  ;;  %v1527_v54 = vmax.f32 %v1525_v5, %v1526_v1  ;;  %v1563_v32 = vsel %vm195_vm0, %v4613_v51, -inf  ;;  %v1565_v29 = vsel %vm195_vm0, %v4618_v41, -inf }
 0x2b2   : > { %v1515_v26 = vrot.slane %v1514_v9, 4  ;;  %v1551_v28 = vmax.f32 %v1549_v3, %v1550_v39  ;;  %v1562_v10 = vmax.f32 %v1560_v36, %v1561_v33  ;;  %v1540_v23 = vmax.f32 %v1538_v8, %v1539_v61  ;;  %3274 = vmatmul.mubr.msk.f32.gmra.mrb[10].mxu0 %vm195_vm0, %v7282_v50 }
 0x2b3   : > { %v1573_v63 = vsel %vm195_vm0, %v4623_v35, -inf  ;;  %v1528_v21 = vrot.slane %v1527_v54, 4  ;;  %v1574_v61 = vsel %vm195_vm0, %v4628_v12, -inf  ;;  %v1576_v51 = vsel %vm195_vm0, %v4633_v44, -inf }
 0x2b4   : > { %v1516_v20 = vmax.f32 %v1514_v9, %v1515_v26  ;;  %v1553_v59 = vmax.f32 %v1551_v28, %v1552_v60  ;;  %v1564_v4 = vmax.f32 %v1562_v10, %v1563_v32  ;;  %v1541_v1 = vrot.slane %v1540_v23, 4 }
 0x2b5   : > { %v1578_v41 = vsel %vm195_vm0, %v4638_v53, -inf  ;;  %v1529_v30 = vmax.f32 %v1527_v54, %v1528_v21  ;;  %v1575_v3 = vmax.f32 %v1573_v63, %v1574_v61  ;;  %v1586_v39 = vsel %vm195_vm0, %v4643_v24, -inf }
 0x2b6   : > { %v1517_v34 = vrot.slane %v1516_v20, 2  ;;  %v1554_v35 = vrot.slane %v1553_v59, 4  ;;  %v1566_v9 = vmax.f32 %v1564_v4, %v1565_v29  ;;  %v1542_v5 = vmax.f32 %v1540_v23, %v1541_v1  ;;  %v7283_v29 = vld [vmem:[#allocation113_spill] sm:$0xff] }
 0x2b7   : > { %v1587_v11 = vsel %vm195_vm0, %v4648_v25, -inf  ;;  %v1530_v12 = vrot.slane %v1529_v30, 2  ;;  %v1577_v33 = vmax.f32 %v1575_v3, %v1576_v51  ;;  %v1589_v53 = vsel %vm195_vm0, %v4653_v62, -inf }
 0x2b8   : > { %v1518_v8 = vmax.f32 %v1516_v20, %v1517_v34  ;;  %v1555_v60 = vmax.f32 %v1553_v59, %v1554_v35  ;;  %v1567_v36 = vrot.slane %v1566_v9, 4  ;;  %v1543_v44 = vrot.slane %v1542_v5, 2 }
 0x2b9   : > { %v1588_v31 = vmax.f32 %v1586_v39, %v1587_v11  ;;  %v1531_v54 = vmax.f32 %v1529_v30, %v1530_v12  ;;  %v1579_v32 = vmax.f32 %v1577_v33, %v1578_v41  ;;  %v1591_v25 = vsel %vm195_vm0, %v4658_v43, -inf }
 0x2ba   : > { %v1519_v26 = vrot.slane %v1518_v8, 1  ;;  %v1556_v28 = vrot.slane %v1555_v60, 2  ;;  %v1568_v10 = vmax.f32 %v1566_v9, %v1567_v36  ;;  %v1544_v23 = vmax.f32 %v1542_v5, %v1543_v44 }
 0x2bb   : > { %v1590_v24 = vmax.f32 %v1588_v31, %v1589_v53  ;;  %vm7284_vm12 = vcmp.gt.f32.partialorder %v7283_v29, 0.0  ;;  %v1532_v20 = vrot.slane %v1531_v54, 1  ;;  %v1580_v62 = vrot.slane %v1579_v32, 4 }
 0x2bc   : > { %v4916_v63 = vsel %vm7284_vm12, %v3536_v38, -1e+30  ;;  %v1557_v21 = vmax.f32 %v1555_v60, %v1556_v28  ;;  %v1569_v59 = vrot.slane %v1568_v10, 2  ;;  %v1545_v4 = vrot.slane %v1544_v23, 1 }
 0x2bd   : > { %v1592_v50 = vmax.f32 %v1590_v24, %v1591_v25  ;;  %v1599_v1 = vsel %vm195_vm0, %v4665_v19, -inf  ;;  %v4920_v61 = vmax.f32 %v1518_v8, %v1519_v26  ;;  %v1600_v43 = vsel %vm195_vm0, %v4670_v52, -inf }
 0x2be   : > { %v1558_v51 = vrot.slane %v1557_v21, 1  ;;  %v1570_v41 = vmax.f32 %v1568_v10, %v1569_v59  ;;  %v4924_v34 = vmax.f32 %v1531_v54, %v1532_v20  ;;  %v1581_v30 = vmax.f32 %v1579_v32, %v1580_v62 }
 0x2bf   : > { %v1593_v35 = vrot.slane %v1592_v50, 4  ;;  %v1601_v9 = vmax.f32 %v1599_v1, %v1600_v43  ;;  %v4926_v5 = vmax.f32 %v1544_v23, %v1545_v4  ;;  %v1602_v39 = vsel %vm195_vm0, %v4675_v49, -inf }
 0x2c0   : > { %v1571_v3 = vrot.slane %v1570_v41, 1  ;;  %v1604_v19 = vsel %vm195_vm0, %v4682_v7, -inf  ;;  %v1582_v11 = vrot.slane %v1581_v30, 2  ;;  %v1612_v52 = vsel %vm195_vm0, %v4687_v37, -inf }
 0x2c1   : > { %v1594_v8 = vmax.f32 %v1592_v50, %v1593_v35  ;;  %v1603_v12 = vmax.f32 %v1601_v9, %v1602_v39  ;;  %v4934_v60 = vmax.f32 %v1557_v21, %v1558_v51  ;;  %v1613_v44 = vsel %vm195_vm0, %v4692_v45, -inf  ;;  %v7285_v39 = vld [vmem:[#allocation172_spill] sm:$0xff] }
 0x2c2   : > { %v4936_v36 = vmax.f32 %v1570_v41, %v1571_v3  ;;  %v1615_v33 = vsel %vm195_vm0, %v4697_v47, -inf  ;;  %v1583_v49 = vmax.f32 %v1581_v30, %v1582_v11  ;;  %v1614_v7 = vmax.f32 %v1612_v52, %v1613_v44 }
 0x2c3   : > { %v1595_v31 = vrot.slane %v1594_v8, 2  ;;  %v1605_v53 = vmax.f32 %v1603_v12, %v1604_v19  ;;  %v1617_v26 = vsel %vm195_vm0, %v4702_v0, -inf  ;;  %v1625_v37 = vsel %vm195_vm0, %v4707_v58, -inf  ;;  %v7286_v12 = vld [vmem:[#allocation173_spill] sm:$0xff] }
 0x2c4   : > { %v1626_v54 = vsel %vm195_vm0, %v4712_v40, -inf  ;;  %v1628_v28 = vsel %vm195_vm0, %v4717_v57, -inf  ;;  %v1584_v45 = vrot.slane %v1583_v49, 1  ;;  %v1616_v47 = vmax.f32 %v1614_v7, %v1615_v33  ;;  %v7288_v7 = vld [vmem:[#allocation175_spill] sm:$0xff] }
 0x2c5   : > { %v1596_v10 = vmax.f32 %v1594_v8, %v1595_v31  ;;  %v1606_v23 = vrot.slane %v1605_v53, 4  ;;  %v1627_v32 = vmax.f32 %v1625_v37, %v1626_v54  ;;  %v1630_v24 = vsel %vm195_vm0, %v4722_v27, -inf }
 0x2c6   : > { %v1638_v0 = vsel %vm195_vm0, %v4729_v46, -inf  ;;  %v1639_v58 = vsel %vm195_vm0, %v4734_v15, -inf  ;;  %v4956_v25 = vmax.f32 %v1583_v49, %v1584_v45  ;;  %v1618_v20 = vmax.f32 %v1616_v47, %v1617_v26  ;;  %v7289_v45 = vld [vmem:[#allocation176_spill] sm:$0xff] }
 0x2c7   : > { %v1607_v40 = vmax.f32 %v1605_v53, %v1606_v23  ;;  %v1641_v57 = vsel %vm195_vm0, %v4739_v22, -inf  ;;  %v1597_v21 = vrot.slane %v1596_v10, 1  ;;  %v1629_v59 = vmax.f32 %v1627_v32, %v1628_v28 }
 0x2c8   : > { %v1640_v4 = vmax.f32 %v1638_v0, %v1639_v58  ;;  %v1651_v62 = vsel %vm195_vm0, %v4751_v17, -inf  ;;  %v1619_v50 = vrot.slane %v1618_v20, 4  ;;  %v1643_v46 = vsel %vm195_vm0, %v4746_v13, -inf }
 0x2c9   : > { %v1608_v27 = vrot.slane %v1607_v40, 2  ;;  %v1652_v15 = vsel %vm195_vm0, %v4756_v56, -inf  ;;  %v1631_v1 = vmax.f32 %v1629_v59, %v1630_v24  ;;  %v1654_v22 = vsel %vm195_vm0, %v4761_v42, -inf  ;;  %v7290_v24 = vld [vmem:[#allocation177_spill] sm:$0xff] }
 0x2ca   : > { %v1642_v51 = vmax.f32 %v1640_v4, %v1641_v57  ;;  %v1653_v41 = vmax.f32 %v1651_v62, %v1652_v15  ;;  %v1620_v30 = vmax.f32 %v1618_v20, %v1619_v50  ;;  %v1656_v35 = vsel %vm195_vm0, %v4766_v2, -inf  ;;  %v7287_v2 = vld [vmem:[#allocation174_spill] sm:$0xff] }
 0x2cb   : > { %v1609_v43 = vmax.f32 %v1607_v40, %v1608_v27  ;;  %v1664_v17 = vsel %vm195_vm0, %v4771_v18, -inf  ;;  %v1632_v9 = vrot.slane %v1631_v1, 4  ;;  %v1665_v56 = vsel %vm195_vm0, %v7285_v39, -inf  ;;  %v7291_v62 = vld [vmem:[#allocation178_spill] sm:$0xff] }
 0x2cc   : > { %v1644_v3 = vmax.f32 %v1642_v51, %v1643_v46  ;;  %v1655_v13 = vmax.f32 %v1653_v41, %v1654_v22  ;;  %v4974_v19 = vmax.f32 %v1596_v10, %v1597_v21  ;;  %v1621_v11 = vrot.slane %v1620_v30, 2 }
 0x2cd   : > { %v1666_v8 = vmax.f32 %v1664_v17, %v1665_v56  ;;  %v1667_v42 = vsel %vm195_vm0, %v7286_v12, -inf  ;;  %v1633_v52 = vmax.f32 %v1631_v1, %v1632_v9  ;;  %v1669_v49 = vsel %vm195_vm0, %v7287_v2, -inf  ;;  %v7293_v9 = vld [vmem:[#allocation180_spill] sm:$0xff] }
 0x2ce   : > { %v1645_v44 = vrot.slane %v1644_v3, 4  ;;  %v1657_v33 = vmax.f32 %v1655_v13, %v1656_v35  ;;  %v1610_v18 = vrot.slane %v1609_v43, 1  ;;  %v1622_v31 = vmax.f32 %v1620_v30, %v1621_v11  ;;  %v7292_v30 = vld [vmem:[#allocation179_spill] sm:$0xff] }
 0x2cf   : > { %v1668_v53 = vmax.f32 %v1666_v8, %v1667_v42  ;;  %v1677_v26 = vsel %vm195_vm0, %v7288_v7, -inf  ;;  %v1634_v37 = vrot.slane %v1633_v52, 2  ;;  %v1678_v10 = vsel %vm195_vm0, %v7289_v45, -inf }
 0x2d0   : > { %v1646_v54 = vmax.f32 %v1644_v3, %v1645_v44  ;;  %v1658_v28 = vrot.slane %v1657_v33, 4  ;;  %v1623_v23 = vrot.slane %v1622_v31, 1  ;;  %v1679_v32 = vmax.f32 %v1677_v26, %v1678_v10 }
 0x2d1   : > { %v1670_v47 = vmax.f32 %v1668_v53, %v1669_v49  ;;  %v1680_v0 = vsel %vm195_vm0, %v7290_v24, -inf  ;;  %v1635_v58 = vmax.f32 %v1633_v52, %v1634_v37  ;;  %v1682_v57 = vsel %vm195_vm0, %v4810_v48, -inf }
 0x2d2   : > { %v1647_v40 = vrot.slane %v1646_v54, 2  ;;  %v1659_v20 = vmax.f32 %v1657_v33, %v1658_v28  ;;  %v4988_v21 = vmax.f32 %v1609_v43, %v1610_v18  ;;  %v1681_v4 = vmax.f32 %v1679_v32, %v1680_v0  ;;  %v7294_v0 = vld [vmem:[#allocation171_spill] sm:$0xff] }
 0x2d3   : > { %v1671_v59 = vrot.slane %v1670_v47, 4  ;;  %v1690_v27 = vsel %vm195_vm0, %v7291_v62, -inf  ;;  %v1636_v50 = vrot.slane %v1635_v58, 1  ;;  %v1691_v1 = vsel %vm195_vm0, %v4820_v6, -inf }
 0x2d4   : > { %v1648_v46 = vmax.f32 %v1646_v54, %v1647_v40  ;;  %v1660_v15 = vrot.slane %v1659_v20, 2  ;;  %v1683_v41 = vmax.f32 %v1681_v4, %v1682_v57  ;;  %v1692_v22 = vmax.f32 %v1690_v27, %v1691_v1  ;;  %v7298_v27 = vld [vmem:[#allocation169_spill] sm:$0xff] }
 0x2d5   : > { %v1672_v51 = vmax.f32 %v1670_v47, %v1671_v59  ;;  %v1693_v35 = vsel %vm195_vm0, %v7292_v30, -inf  ;;  %v1624_v48 = vmax.f32 %v1622_v31, %v1623_v23  ;;  %v1695_v3 = vsel %vm195_vm0, %v7293_v9, -inf }
 0x2d6   : > { %v1649_v43 = vrot.slane %v1648_v46, 1  ;;  %v1661_v17 = vmax.f32 %v1659_v20, %v1660_v15  ;;  %v1684_v39 = vrot.slane %v1683_v41, 4  ;;  %v1694_v56 = vmax.f32 %v1692_v22, %v1693_v35  ;;  %v7296_v20 = vld [vmem:[#allocation170_spill] sm:$0xff] }
 0x2d7   : > { %v1673_v13 = vrot.slane %v1672_v51, 2  ;;  %v1703_v11 = vsel %vm195_vm0, %v4835_v14, -inf  ;;  %v1637_v8 = vmax.f32 %v1635_v58, %v1636_v50  ;;  %v1704_v12 = vsel %vm195_vm0, %v4840_v55, -inf  ;;  %v7331_v58 = vld [vmem:[#allocation98_spill] sm:$0xff] }
 0x2d8   : > { %v1662_v6 = vrot.slane %v1661_v17, 1  ;;  %v1706_v42 = vsel %vm195_vm0, %v4845_v16, -inf  ;;  %v1685_v44 = vmax.f32 %v1683_v41, %v1684_v39  ;;  %v1696_v33 = vmax.f32 %v1694_v56, %v1695_v3  ;;  %v7305_v56 = vld [vmem:[#allocation83_spill] sm:$0xff]  ;;  %v7339_v15 = vld [vmem:[#allocation102_spill] sm:$0xff] }
 0x2d9   : > { %v1674_v52 = vmax.f32 %v1672_v51, %v1673_v13  ;;  %v1705_v2 = vmax.f32 %v1703_v11, %v1704_v12  ;;  %v1650_v49 = vmax.f32 %v1648_v46, %v1649_v43  ;;  %v1708_v31 = vsel %vm195_vm0, %v4916_v63, -inf  ;;  %v7309_v12 = vld [vmem:[#allocation85_spill] sm:$0xff] }
 0x2da   : > { %v1663_v18 = vmax.f32 %v1661_v17, %v1662_v6  ;;  %vm1860_vm10 = vcmask 1041409   ;;  %v1686_v14 = vrot.slane %v1685_v44, 2  ;;  %v1697_v7 = vrot.slane %v1696_v33, 4 }
 0x2db   : > { %v1675_v53 = vrot.slane %v1674_v52, 1  ;;  %v1707_v26 = vmax.f32 %v1705_v2, %v1706_v42  ;;  %vm1862_vm7 = vcmask 1042434   ;;  %vm1864_vm9 = vcmask 1043459   ;;  %v7313_v2 = vld [vmem:[#allocation59_spill] sm:$0xff] }
 0x2dc   : > { %vm1866_vm11 = vcmask 1044484   ;;  %vm1868_vm12 = vcmask 1045509   ;;  %v1687_v55 = vmax.f32 %v1685_v44, %v1686_v14  ;;  %v1698_v16 = vmax.f32 %v1696_v33, %v1697_v7  ;;  %v7311_v44 = vld [vmem:[#allocation11_spill] sm:$0xff]  ;;  %v7317_v14 = vld [vmem:[#allocation60_spill] sm:$0xff] }
 0x2dd   : > { %v1709_v37 = vmax.f32 %v1707_v26, %v1708_v31  ;;  %v1676_v54 = vmax.f32 %v1674_v52, %v1675_v53  ;;  %v1874_v28 = vsel %vm1860_vm10, %v4924_v34, %v4920_v61  ;;  %v1881_v63 = vsel %vm1860_vm10, %v1637_v8, %v1624_v48  ;;  %v7307_v8 = vld [vmem:[#allocation58_spill] sm:$0xff]  ;;  %v7319_v26 = vld [vmem:[#allocation89_spill] sm:$0xff] }
 0x2de   : > { %v1688_v45 = vrot.slane %v1687_v55, 1  ;;  %v1699_v10 = vrot.slane %v1698_v16, 2  ;;  %v1875_v47 = vsel %vm1862_vm7, %v4926_v5, %v1874_v28  ;;  %v1882_v24 = vsel %vm1862_vm7, %v1650_v49, %v1881_v63  ;;  %v7323_v28 = vld [vmem:[#allocation92_spill] sm:$0xff] }
 0x2df   : > { %v1710_v23 = vrot.slane %v1709_v37, 4  ;;  %v1876_v32 = vsel %vm1864_vm9, %v4934_v60, %v1875_v47  ;;  %v1935_v40 = vsel %vm7141_vm1, %v7294_v0, 1e+30  ;;  %v5021_v61 = vsel %vm990_vm14, %v7296_v20, 1e+30 }
 0x2e0   : > { %v1689_v34 = vmax.f32 %v1687_v55, %v1688_v45  ;;  %v1700_v59 = vmax.f32 %v1698_v16, %v1699_v10  ;;  %v1877_v5 = vsel %vm1866_vm11, %v4936_v36, %v1876_v32  ;;  %v1883_v62 = vsel %vm1864_vm9, %v1663_v18, %v1882_v24  ;;  %v7315_v18 = vld [vmem:[#allocation87_spill] sm:$0xff]  ;;  %v7321_v16 = vld [vmem:[#allocation61_spill] sm:$0xff]  ;;  %v7325_v45 = vld [vmem:[#allocation62_spill] sm:$0xff] }
 0x2e1   : > { %v1711_v4 = vmax.f32 %v1709_v37, %v1710_v23  ;;  %v1878_v60 = vsel %vm1868_vm12, %v4956_v25, %v1877_v5  ;;  %v5031_v46 = vsel %vm7144_vm6, %v7298_v27, 1e+30  ;;  %v5036_v1 = vsel %vm7146_vm3, %v3536_v38, 1e+30  ;;  %v7327_v23 = vld [vmem:[#allocation95_spill] sm:$0xff]  ;;  %v7335_v5 = vld [vmem:[#allocation100_spill] sm:$0xff] }
 0x2e2   : > { %v1701_v51 = vrot.slane %v1700_v59, 1  ;;  %v1879_v36 = vsel %vm1870_vm2, %v4974_v19, %v1878_v60  ;;  %v1884_v22 = vsel %vm1866_vm11, %v1676_v54, %v1883_v62  ;;  %v5047_v48 = vsel %vm7148_vm5, %v7294_v0, 1e+30  ;;  %v7329_v32 = vld [vmem:[#allocation63_spill] sm:$0xff]  ;;  %v7337_v62 = vld [vmem:[#allocation69_spill] sm:$0xff] }
 0x2e3   : > { %v1712_v41 = vrot.slane %v1711_v4, 2  ;;  %v1880_v25 = vsel %vm1872_vm4, %v4988_v21, %v1879_v36  ;;  %v1885_v30 = vsel %vm1868_vm12, %v1689_v34, %v1884_v22  ;;  %v5052_v17 = vsel %vm994_vm15, %v7296_v20, 1e+30  ;;  %v7333_v34 = vld [vmem:[#allocation65_spill] sm:$0xff]  ;;  %v7343_v22 = vld [vmem:[#allocation72_spill] sm:$0xff]  ;;  %v7349_v21 = vld [vmem:[#allocation106_spill] sm:$0xff] }
 0x2e4   : > { %v1702_v9 = vmax.f32 %v1700_v59, %v1701_v51  ;;  %v5057_v13 = vsel %vm7151_vm8, %v7298_v27, 1e+30  ;;  %v5062_v39 = vsel %vm996_vm13, %v3536_v38, 1e+30  ;;  %vm7306_vm1 = vcmp.gt.f32.partialorder %v7305_v56, 0.0 }
 0x2e5   : > { %v1713_v3 = vmax.f32 %v1711_v4, %v1712_v41  ;;  %v5067_v11 = vsel %vm7306_vm1, %v7294_v0, 1e+30  ;;  %vm7308_vm3 = vcmp.gt.f32.partialorder %v7307_v8, 0.0  ;;  %vm7310_vm5 = vcmp.gt.f32.partialorder %v7309_v12, 0.0  ;;  %v7341_v41 = vld [vmem:[#allocation8_spill] sm:$0xff] }
 0x2e6   : > { %v5072_v6 = vsel %vm7308_vm3, %v7296_v20, 1e+30  ;;  %v5077_v42 = vsel %vm7310_vm5, %v7298_v27, 1e+30  ;;  %vm7312_vm6 = vcmp.gt.f32.partialorder %v7311_v44, 0.0  ;;  %vm7314_vm8 = vcmp.gt.f32.partialorder %v7313_v2, 0.0 }
 0x2e7   : > { %v1714_v52 = vrot.slane %v1713_v3, 1  ;;  %v1900_v33 = vsel %vm7312_vm6, %v1880_v25, 0.0  ;;  %v5084_v49 = vsel %vm7314_vm8, %v3536_v38, 1e+30  ;;  %vm7316_vm1 = vcmp.gt.f32.partialorder %v7315_v18, 0.0  ;;  %v7351_v8 = vld [vmem:[#allocation76_spill] sm:$0xff] }
 0x2e8   : > { %v5089_v31 = vsel %vm7316_vm1, %v7294_v0, 1e+30  ;;  %v1886_v53 = vsel %vm1870_vm2, %v1702_v9, %v1885_v30  ;;  %vm7318_vm3 = vcmp.gt.f32.partialorder %v7317_v14, 0.0  ;;  %vm7320_vm5 = vcmp.gt.f32.partialorder %v7319_v26, 0.0  ;;  %v7345_v30 = vld [vmem:[#allocation104_spill] sm:$0xff]  ;;  %v7357_v18 = vld [vmem:[#allocation110_spill] sm:$0xff] }
 0x2e9   : > { %v5095_v7 = vsel %vm7318_vm3, %v7296_v20, 1e+30  ;;  %v5100_v55 = vsel %vm7320_vm5, %v7298_v27, 1e+30  ;;  %vm7322_vm6 = vcmp.gt.f32.partialorder %v7321_v16, 0.0  ;;  %v1715_v54 = vmax.f32 %v1713_v3, %v1714_v52  ;;  %v7347_v3 = vld [vmem:[#allocation74_spill] sm:$0xff] }
 0x2ea   : > { %v5105_v37 = vsel %vm7322_vm6, %v3536_v38, 1e+30  ;;  %vm7324_vm8 = vcmp.gt.f32.partialorder %v7323_v28, 0.0  ;;  %vm7326_vm1 = vcmp.gt.f32.partialorder %v7325_v45, 0.0  ;;  %vm7328_vm3 = vcmp.gt.f32.partialorder %v7327_v23, 0.0  ;;  %v7353_v52 = vld [vmem:[#allocation108_spill] sm:$0xff] }
 0x2eb   : > { %v5110_v63 = vsel %vm7324_vm8, %v7294_v0, 1e+30  ;;  %v5115_v10 = vsel %vm7326_vm1, %v7296_v20, 1e+30  ;;  %v5120_v47 = vsel %vm7328_vm3, %v7298_v27, 1e+30  ;;  %v1887_v4 = vsel %vm1872_vm4, %v1715_v54, %v1886_v53 }
 0x2ec   : > { %vm7330_vm5 = vcmp.gt.f32.partialorder %v7329_v32, 0.0  ;;  %vm7332_vm6 = vcmp.gt.f32.partialorder %v7331_v58, 0.0  ;;  %vm7334_vm8 = vcmp.gt.f32.partialorder %v7333_v34, 0.0  ;;  %vm7336_vm1 = vcmp.gt.f32.partialorder %v7335_v5, 0.0  ;;  %v7359_v14 = vld [vmem:[#allocation80_spill] sm:$0xff]  ;;  %v7363_v28 = vld [vmem:[#allocation82_spill] sm:$0xff] }
 0x2ed   : > { %v5125_v24 = vsel %vm7330_vm5, %v3536_v38, 1e+30  ;;  %v5130_v57 = vsel %vm7332_vm6, %v7294_v0, 1e+30  ;;  %v5135_v59 = vsel %vm7334_vm8, %v7296_v20, 1e+30 }
 0x2ee   : > { %v5141_v60 = vsel %vm7336_vm1, %v7298_v27, 1e+30  ;;  %vm7338_vm3 = vcmp.gt.f32.partialorder %v7337_v62, 0.0  ;;  %vm7340_vm5 = vcmp.gt.f32.partialorder %v7339_v15, 0.0  ;;  %vm7342_vm6 = vcmp.gt.f32.partialorder %v7341_v41, 0.0  ;;  %v7361_v16 = vld [vmem:[#allocation112_spill] sm:$0xff] }
 0x2ef   : > { %v5146_v50 = vsel %vm7338_vm3, %v3536_v38, 1e+30  ;;  %v5151_v51 = vsel %vm7340_vm5, %v7294_v0, 1e+30  ;;  %v1901_v36 = vsel %vm7342_vm6, %v1887_v4, 0.0  ;;  %vm7344_vm8 = vcmp.gt.f32.partialorder %v7343_v22, 0.0 }
 0x2f0   : > { %v5158_v25 = vsel %vm7344_vm8, %v7296_v20, 1e+30  ;;  %vm7346_vm1 = vcmp.gt.f32.partialorder %v7345_v30, 0.0  ;;  %v2135_v43 = vsel %vm195_vm0, %v1935_v40, inf  ;;  %v3482_v9 = vpack.i.bf16 %v1901_v36, %v1900_v33  ;;  %v7355_v33 = vld [vmem:[#allocation78_spill] sm:$0xff]  ;;  %v7367_v58 = vld [vmem:[#allocation84_spill] sm:$0xff] }
 0x2f1   : > { %v5163_v35 = vsel %vm7346_vm1, %v7298_v27, 1e+30  ;;  %vm7348_vm3 = vcmp.gt.f32.partialorder %v7347_v3, 0.0  ;;  %vm7350_vm5 = vcmp.gt.f32.partialorder %v7349_v21, 0.0  ;;  %vm7352_vm6 = vcmp.gt.f32.partialorder %v7351_v8, 0.0  ;;  %v7365_v23 = vld [vmem:[#allocation114_spill] sm:$0xff] }
 0x2f2   : > { %v5169_v19 = vsel %vm7348_vm3, %v3536_v38, 1e+30  ;;  %v5174_v56 = vsel %vm7350_vm5, %v7294_v0, 1e+30  ;;  %v5179_v12 = vsel %vm7352_vm6, %v7296_v20, 1e+30  ;;  %3483 = vrot.lane.b32.xlu0 %v3482_v9, %s3555_s28 }
 0x2f3   : > { %vm7354_vm8 = vcmp.gt.f32.partialorder %v7353_v52, 0.0  ;;  %vm7356_vm1 = vcmp.gt.f32.partialorder %v7355_v33, 0.0  ;;  %vm7358_vm3 = vcmp.gt.f32.partialorder %v7357_v18, 0.0  ;;  %vm7360_vm5 = vcmp.gt.f32.partialorder %v7359_v14, 0.0  ;;  %v7369_v4 = vld [vmem:[#allocation115_spill] sm:$0xff]  ;;  %v7371_v62 = vld [vmem:[#allocation86_spill] sm:$0xff] }
 0x2f4   : > { %v5184_v40 = vsel %vm7354_vm8, %v7298_v27, 1e+30  ;;  %v5189_v2 = vsel %vm7356_vm1, %v3536_v38, 1e+30  ;;  %v5194_v53 = vsel %vm7358_vm3, %v7294_v0, 1e+30 }
 0x2f5   : > { %v5200_v26 = vsel %vm7360_vm5, %v7296_v20, 1e+30  ;;  %vm7362_vm6 = vcmp.gt.f32.partialorder %v7361_v16, 0.0  ;;  %vm7364_vm8 = vcmp.gt.f32.partialorder %v7363_v28, 0.0  ;;  %vm7366_vm1 = vcmp.gt.f32.partialorder %v7365_v23, 0.0  ;;  %v7373_v36 = vld [vmem:[#allocation116_spill] sm:$0xff] }
 0x2f6   : > { %v5205_v54 = vsel %vm7362_vm6, %v7298_v27, 1e+30  ;;  %v5210_v45 = vsel %vm7364_vm8, %v3536_v38, 1e+30  ;;  %v5215_v32 = vsel %vm7366_vm1, %v7294_v0, 1e+30 }
 0x2f7   : > { %vm7368_vm3 = vcmp.gt.f32.partialorder %v7367_v58, 0.0  ;;  %vm7370_vm5 = vcmp.gt.f32.partialorder %v7369_v4, 0.0  ;;  %vm7372_vm6 = vcmp.gt.f32.partialorder %v7371_v62, 0.0  ;;  %vm7374_vm8 = vcmp.gt.f32.partialorder %v7373_v36, 0.0  ;;  %v7375_v30 = vld [vmem:[#allocation88_spill] sm:$0xff]  ;;  %v7377_v3 = vld [vmem:[#allocation117_spill] sm:$0xff] }
 0x2f8   : > { %v5220_v34 = vsel %vm7368_vm3, %v7296_v20, 1e+30  ;;  %v5225_v5 = vsel %vm7370_vm5, %v7298_v27, 1e+30  ;;  %v5230_v15 = vsel %vm7372_vm6, %v3536_v38, 1e+30 }
 0x2f9   : > { %v5235_v22 = vsel %vm7374_vm8, %v7294_v0, 1e+30  ;;  %vm7376_vm1 = vcmp.gt.f32.partialorder %v7375_v30, 0.0  ;;  %vm7378_vm3 = vcmp.gt.f32.partialorder %v7377_v3, 0.0  ;;  %v7379_v8 = vld [vmem:[#allocation90_spill] sm:$0xff]  ;;  %v7383_v14 = vld [vmem:[#allocation93_spill] sm:$0xff] }
 0x2fa   : > { %v5240_v9 = vsel %vm7376_vm1, %v7296_v20, 1e+30  ;;  %v5245_v21 = vsel %vm7378_vm3, %v7298_v27, 1e+30  ;;  %vm7380_vm5 = vcmp.gt.f32.partialorder %v7379_v8, 0.0  ;;  %v7381_v33 = vld [vmem:[#allocation118_spill] sm:$0xff] }
 0x2fb   : > { %v5250_v52 = vsel %vm7380_vm5, %v3536_v38, 1e+30  ;;  %vm7382_vm6 = vcmp.gt.f32.partialorder %v7381_v33, 0.0  ;;  %vm7384_vm8 = vcmp.gt.f32.partialorder %v7383_v14, 0.0  ;;  %v7385_v28 = vld [vmem:[#allocation119_spill] sm:$0xff]  ;;  %v7387_v58 = vld [vmem:[#allocation96_spill] sm:$0xff] }
 0x2fc   : > { %v5255_v18 = vsel %vm7382_vm6, %v7294_v0, 1e+30  ;;  %v5260_v16 = vsel %vm7384_vm8, %v7296_v20, 1e+30  ;;  %vm7386_vm1 = vcmp.gt.f32.partialorder %v7385_v28, 0.0  ;;  %vm7388_vm3 = vcmp.gt.f32.partialorder %v7387_v58, 0.0 }
 0x2fd   : > { %v5265_v23 = vsel %vm7386_vm1, %v7298_v27, 1e+30  ;;  %v5270_v4 = vsel %vm7388_vm3, %v3536_v38, 1e+30  ;;  %v7389_v62 = vld [vmem:[#allocation120_spill] sm:$0xff]  ;;  %v7391_v30 = vld [vmem:[#allocation99_spill] sm:$0xff] }
 0x2fe   : > { %vm7390_vm5 = vcmp.gt.f32.partialorder %v7389_v62, 0.0  ;;  %vm7392_vm6 = vcmp.gt.f32.partialorder %v7391_v30, 0.0  ;;  %v7393_v8 = vld [vmem:[#allocation121_spill] sm:$0xff]  ;;  %v7399_v58 = vld [vmem:[#allocation122_spill] sm:$0xff]  ;;  %v7402_v41 = vld [vmem:[#allocation103_spill] sm:$0xff]  ;;  %vm3561_vm13 = vmmov (%p1091_p0), 0  }
 0x2ff   : > { %v5275_v36 = vsel %vm7390_vm5, %v7294_v0, 1e+30  ;;  %v5280_v3 = vsel %vm7392_vm6, %v7296_v20, 1e+30  ;;  %vm7394_vm8 = vcmp.gt.f32.partialorder %v7393_v8, 0.0  ;;  %v7396_v14 = vld [vmem:[#allocation101_spill] sm:$0xff] }
 0x300   : > { %v5285_v33 = vsel %vm7394_vm8, %v7298_v27, 1e+30  ;;  %vm7397_vm1 = vcmp.gt.f32.partialorder %v7396_v14, 0.0  ;;  %vm7400_vm3 = vcmp.gt.f32.partialorder %v7399_v58, 0.0  ;;  %vm7403_vm5 = vcmp.gt.f32.partialorder %v7402_v41, 0.0  ;;  %v7405_v44 = vld [vmem:[#allocation123_spill] sm:$0xff] }
 0x301   : > { %7395 = vst [vmem:[#allocation172_spill] sm:$0xff] %v5285_v33  ;;  %v5290_v28 = vsel %vm7397_vm1, %v3536_v38, 1e+30  ;;  %v5295_v62 = vsel %vm7400_vm3, %v7294_v0, 1e+30  ;;  %vm7406_vm6 = vcmp.gt.f32.partialorder %v7405_v44, 0.0 }
 0x302   : > { %7398 = vst [vmem:[#allocation173_spill] sm:$0xff] %v5290_v28  ;;  %7401 = vst [vmem:[#allocation174_spill] sm:$0xff] %v5295_v62  ;;  %v5300_v30 = vsel %vm7403_vm5, %v7296_v20, 1e+30  ;;  %v5305_v8 = vsel %vm7406_vm6, %v7298_v27, 1e+30 }
 0x303   : > { %7404 = vst [vmem:[#allocation175_spill] sm:$0xff] %v5300_v30  ;;  %7407 = vst [vmem:[#allocation176_spill] sm:$0xff] %v5305_v8  ;;  %v7408_v33 = vld [vmem:[#allocation105_spill] sm:$0xff]  ;;  %v7411_v28 = vld [vmem:[#allocation124_spill] sm:$0xff]  ;;  %vm7776_vm14 = vcmask (%p1091_p0), 64512   ;;  %vm3148_vm15 = vcmask (%p1091_p0), 3072  }
 0x304   : > { %vm7409_vm8 = vcmp.gt.f32.partialorder %v7408_v33, 0.0  ;;  %vm7412_vm1 = vcmp.gt.f32.partialorder %v7411_v28, 0.0  ;;  %v7414_v62 = vld [vmem:[#allocation107_spill] sm:$0xff]  ;;  %v7417_v30 = vld [vmem:[#allocation125_spill] sm:$0xff] }
 0x305   : > { %v5310_v14 = vsel %vm7409_vm8, %v3536_v38, 1e+30  ;;  %v5315_v58 = vsel %vm7412_vm1, %v7294_v0, 1e+30  ;;  %vm7415_vm3 = vcmp.gt.f32.partialorder %v7414_v62, 0.0  ;;  %vm7418_vm5 = vcmp.gt.f32.partialorder %v7417_v30, 0.0 }
 0x306   : > { %7410 = vst [vmem:[#allocation177_spill] sm:$0xff] %v5310_v14  ;;  %7413 = vst [vmem:[#allocation178_spill] sm:$0xff] %v5315_v58  ;;  %v5320_v41 = vsel %vm7415_vm3, %v7296_v20, 1e+30  ;;  %v5325_v44 = vsel %vm7418_vm5, %v7298_v27, 1e+30 }
 0x307   : > { %7416 = vst [vmem:[#allocation179_spill] sm:$0xff] %v5320_v41  ;;  %v7419_v8 = vld [vmem:[#allocation109_spill] sm:$0xff]  ;;  %v7421_v14 = vld [vmem:[#allocation130_spill] sm:$0xff]  ;;  %v7423_v58 = vld [vmem:[#allocation111_spill] sm:$0xff]  ;;  %vm7427_vm5 = vcmp.gt.f32.partialorder %v7283_v29, 0.0  ;;  %v2151_v29 = vsel %vm195_vm0, %v5057_v13, inf }
 0x308   : > { %vm7420_vm6 = vcmp.gt.f32.partialorder %v7419_v8, 0.0  ;;  %vm7422_vm8 = vcmp.gt.f32.partialorder %v7421_v14, 0.0  ;;  %vm7424_vm1 = vcmp.gt.f32.partialorder %v7423_v58, 0.0  ;;  %v7425_v41 = vld [vmem:[#allocation131_spill] sm:$0xff]  ;;  %v5350_v8 = vsel %vm7427_vm5, %v3536_v38, 1e+30 }
 0x309   : > { %v5330_v33 = vsel %vm7420_vm6, %v3536_v38, 1e+30  ;;  %v5335_v28 = vsel %vm7422_vm8, %v7294_v0, 1e+30  ;;  %v5340_v62 = vsel %vm7424_vm1, %v7296_v20, 1e+30 }
 0x30a   : > { %vm7426_vm3 = vcmp.gt.f32.partialorder %v7425_v41, 0.0  ;;  %7428 = vst [vmem:[#allocation180_spill] sm:$0xff] %v5350_v8  ;;  %v2136_v14 = vsel %vm195_vm0, %v5021_v61, inf  ;;  %v2138_v0 = vsel %vm195_vm0, %v5031_v46, inf  ;;  %v2140_v58 = vsel %vm195_vm0, %v5036_v1, inf }
 0x30b   : > { %v5345_v30 = vsel %vm7426_vm3, %v7298_v27, 1e+30  ;;  %v2137_v20 = vmin.f32 %v2135_v43, %v2136_v14  ;;  %v2148_v41 = vsel %vm195_vm0, %v5047_v48, inf  ;;  %v2149_v27 = vsel %vm195_vm0, %v5052_v17, inf }
 0x30c   : > { %v2150_v38 = vmin.f32 %v2148_v41, %v2149_v27  ;;  %v2153_v61 = vsel %vm195_vm0, %v5062_v39, inf  ;;  %v2161_v46 = vsel %vm195_vm0, %v5067_v11, inf  ;;  %v2162_v1 = vsel %vm195_vm0, %v5072_v6, inf }
 0x30d   : > { %v2139_v43 = vmin.f32 %v2137_v20, %v2138_v0  ;;  %v2163_v14 = vmin.f32 %v2161_v46, %v2162_v1  ;;  %v2164_v48 = vsel %vm195_vm0, %v5077_v42, inf  ;;  %v2166_v17 = vsel %vm195_vm0, %v5084_v49, inf }
 0x30e   : > { %v2152_v8 = vmin.f32 %v2150_v38, %v2151_v29  ;;  %v2174_v27 = vsel %vm195_vm0, %v5089_v31, inf  ;;  %v2175_v13 = vsel %vm195_vm0, %v5095_v7, inf  ;;  %v2177_v39 = vsel %vm195_vm0, %v5100_v55, inf }
 0x30f   : > { %v2141_v11 = vmin.f32 %v2139_v43, %v2140_v58  ;;  %v2165_v6 = vmin.f32 %v2163_v14, %v2164_v48  ;;  %v2176_v0 = vmin.f32 %v2174_v27, %v2175_v13  ;;  %v2179_v20 = vsel %vm195_vm0, %v5105_v37, inf }
 0x310   : > { %v2154_v42 = vmin.f32 %v2152_v8, %v2153_v61  ;;  %v2187_v49 = vsel %vm195_vm0, %v5110_v63, inf  ;;  %v2188_v38 = vsel %vm195_vm0, %v5115_v10, inf  ;;  %v2190_v29 = vsel %vm195_vm0, %v5120_v47, inf }
 0x311   : > { %v2142_v31 = vrot.slane %v2141_v11, 4  ;;  %v2167_v7 = vmin.f32 %v2165_v6, %v2166_v17  ;;  %v2178_v41 = vmin.f32 %v2176_v0, %v2177_v39  ;;  %v2189_v55 = vmin.f32 %v2187_v49, %v2188_v38 }
 0x312   : > { %v2155_v58 = vrot.slane %v2154_v42, 4  ;;  %v2192_v46 = vsel %vm195_vm0, %v5125_v24, inf  ;;  %v2200_v37 = vsel %vm195_vm0, %v5130_v57, inf  ;;  %v2201_v63 = vsel %vm195_vm0, %v5135_v59, inf }
 0x313   : > { %v2143_v8 = vmin.f32 %v2141_v11, %v2142_v31  ;;  %v2168_v61 = vrot.slane %v2167_v7, 4  ;;  %v2180_v10 = vmin.f32 %v2178_v41, %v2179_v20  ;;  %v2191_v1 = vmin.f32 %v2189_v55, %v2190_v29 }
 0x314   : > { %v2156_v43 = vmin.f32 %v2154_v42, %v2155_v58  ;;  %v2202_v47 = vmin.f32 %v2200_v37, %v2201_v63  ;;  %v2203_v14 = vsel %vm195_vm0, %v5141_v60, inf  ;;  %v2205_v48 = vsel %vm195_vm0, %v5146_v50, inf }
 0x315   : > { %v2144_v17 = vrot.slane %v2143_v8, 2  ;;  %v2169_v24 = vmin.f32 %v2167_v7, %v2168_v61  ;;  %v2181_v27 = vrot.slane %v2180_v10, 4  ;;  %v2193_v13 = vmin.f32 %v2191_v1, %v2192_v46 }
 0x316   : > { %v2157_v57 = vrot.slane %v2156_v43, 2  ;;  %v2204_v39 = vmin.f32 %v2202_v47, %v2203_v14  ;;  %v2213_v59 = vsel %vm195_vm0, %v5151_v51, inf  ;;  %v2214_v11 = vsel %vm195_vm0, %v5158_v25, inf }
 0x317   : > { %v2145_v6 = vmin.f32 %v2143_v8, %v2144_v17  ;;  %v2170_v0 = vrot.slane %v2169_v24, 2  ;;  %v2182_v20 = vmin.f32 %v2180_v10, %v2181_v27  ;;  %v2194_v42 = vrot.slane %v2193_v13, 4 }
 0x318   : > { %v2158_v60 = vmin.f32 %v2156_v43, %v2157_v57  ;;  %v2206_v49 = vmin.f32 %v2204_v39, %v2205_v48  ;;  %v2215_v38 = vmin.f32 %v2213_v59, %v2214_v11  ;;  %v2216_v50 = vsel %vm195_vm0, %v5163_v35, inf }
 0x319   : > { %v2146_v29 = vrot.slane %v2145_v6, 1  ;;  %v2171_v31 = vmin.f32 %v2169_v24, %v2170_v0  ;;  %v2183_v7 = vrot.slane %v2182_v20, 2  ;;  %v2195_v41 = vmin.f32 %v2193_v13, %v2194_v42 }
 0x31a   : > { %v2159_v55 = vrot.slane %v2158_v60, 1  ;;  %v2207_v58 = vrot.slane %v2206_v49, 4  ;;  %v2217_v51 = vmin.f32 %v2215_v38, %v2216_v50  ;;  %v2218_v25 = vsel %vm195_vm0, %v5169_v19, inf }
 0x31b   : > { %v5406_v46 = vmin.f32 %v2145_v6, %v2146_v29  ;;  %v2172_v37 = vrot.slane %v2171_v31, 1  ;;  %v2184_v63 = vmin.f32 %v2182_v20, %v2183_v7  ;;  %v2196_v8 = vrot.slane %v2195_v41, 2 }
 0x31c   : > { %v5408_v61 = vmin.f32 %v2158_v60, %v2159_v55  ;;  %v2208_v10 = vmin.f32 %v2206_v49, %v2207_v58  ;;  %v2219_v1 = vmin.f32 %v2217_v51, %v2218_v25  ;;  %v2226_v35 = vsel %vm195_vm0, %v5174_v56, inf }
 0x31d   : > { %v5412_v43 = vmin.f32 %v2171_v31, %v2172_v37  ;;  %v2185_v47 = vrot.slane %v2184_v63, 1  ;;  %v2197_v14 = vmin.f32 %v2195_v41, %v2196_v8  ;;  %v2227_v48 = vsel %vm195_vm0, %v5179_v12, inf }
 0x31e   : > { %v2209_v19 = vrot.slane %v2208_v10, 2  ;;  %v2220_v17 = vrot.slane %v2219_v1, 4  ;;  %v2228_v24 = vmin.f32 %v2226_v35, %v2227_v48  ;;  %v2229_v27 = vsel %vm195_vm0, %v5184_v40, inf }
 0x31f   : > { %v5418_v13 = vmin.f32 %v2184_v63, %v2185_v47  ;;  %v2198_v57 = vrot.slane %v2197_v14, 1  ;;  %v2231_v39 = vsel %vm195_vm0, %v5189_v2, inf  ;;  %v2239_v56 = vsel %vm195_vm0, %v5194_v53, inf }
 0x320   : > { %v2210_v59 = vmin.f32 %v2208_v10, %v2209_v19  ;;  %v2221_v11 = vmin.f32 %v2219_v1, %v2220_v17  ;;  %v2230_v6 = vmin.f32 %v2228_v24, %v2229_v27  ;;  %v2240_v12 = vsel %vm195_vm0, %v5200_v26, inf  ;;  %v7429_v27 = vld [vmem:[#allocation172_spill] sm:$0xff] }
 0x321   : > { %v5426_v0 = vmin.f32 %v2197_v14, %v2198_v57  ;;  %v2241_v20 = vmin.f32 %v2239_v56, %v2240_v12  ;;  %v2242_v40 = vsel %vm195_vm0, %v5205_v54, inf  ;;  %v2244_v42 = vsel %vm195_vm0, %v5210_v45, inf }
 0x322   : > { %v2211_v60 = vrot.slane %v2210_v59, 1  ;;  %v2222_v2 = vrot.slane %v2221_v11, 2  ;;  %v2232_v49 = vmin.f32 %v2230_v6, %v2231_v39  ;;  %v2252_v53 = vsel %vm195_vm0, %v5215_v32, inf  ;;  %v7430_v6 = vld [vmem:[#allocation173_spill] sm:$0xff] }
 0x323   : > { %v2243_v38 = vmin.f32 %v2241_v20, %v2242_v40  ;;  %v2253_v50 = vsel %vm195_vm0, %v5220_v34, inf  ;;  %v2255_v26 = vsel %vm195_vm0, %v5225_v5, inf  ;;  %v2257_v29 = vsel %vm195_vm0, %v5230_v15, inf  ;;  %v7431_v20 = vld [vmem:[#allocation174_spill] sm:$0xff] }
 0x324   : > { %v5440_v54 = vmin.f32 %v2210_v59, %v2211_v60  ;;  %v2223_v31 = vmin.f32 %v2221_v11, %v2222_v2  ;;  %v2233_v45 = vrot.slane %v2232_v49, 4  ;;  %v2254_v7 = vmin.f32 %v2252_v53, %v2253_v50  ;;  %v7432_v53 = vld [vmem:[#allocation175_spill] sm:$0xff]  ;;  %v7433_v50 = vld [vmem:[#allocation176_spill] sm:$0xff] }
 0x325   : > { %v2245_v41 = vmin.f32 %v2243_v38, %v2244_v42  ;;  %v2265_v55 = vsel %vm195_vm0, %v5235_v22, inf  ;;  %v2266_v32 = vsel %vm195_vm0, %v5240_v9, inf  ;;  %v2268_v34 = vsel %vm195_vm0, %v5245_v21, inf }
 0x326   : > { %v2224_v58 = vrot.slane %v2223_v31, 1  ;;  %v2234_v5 = vmin.f32 %v2232_v49, %v2233_v45  ;;  %v2256_v51 = vmin.f32 %v2254_v7, %v2255_v26  ;;  %v2267_v25 = vmin.f32 %v2265_v55, %v2266_v32  ;;  %v7434_v32 = vld [vmem:[#allocation177_spill] sm:$0xff] }
 0x327   : > { %v2246_v15 = vrot.slane %v2245_v41, 4  ;;  %v2270_v37 = vsel %vm195_vm0, %v5250_v52, inf  ;;  %v2278_v63 = vsel %vm195_vm0, %v5255_v18, inf  ;;  %v2279_v22 = vsel %vm195_vm0, %v5260_v16, inf }
 0x328   : > { %v5454_v8 = vmin.f32 %v2223_v31, %v2224_v58  ;;  %v2235_v9 = vrot.slane %v2234_v5, 2  ;;  %v2258_v10 = vmin.f32 %v2256_v51, %v2257_v29  ;;  %v2269_v1 = vmin.f32 %v2267_v25, %v2268_v34  ;;  %v7435_v58 = vld [vmem:[#allocation178_spill] sm:$0xff] }
 0x329   : > { %v2247_v21 = vmin.f32 %v2245_v41, %v2246_v15  ;;  %v2280_v35 = vmin.f32 %v2278_v63, %v2279_v22  ;;  %v2281_v47 = vsel %vm195_vm0, %v5265_v23, inf  ;;  %v2283_v14 = vsel %vm195_vm0, %v5270_v4, inf  ;;  %v7436_v22 = vld [vmem:[#allocation179_spill] sm:$0xff] }
 0x32a   : > { %v2236_v52 = vmin.f32 %v2234_v5, %v2235_v9  ;;  %v2259_v48 = vrot.slane %v2258_v10, 4  ;;  %v2271_v19 = vmin.f32 %v2269_v1, %v2270_v37  ;;  %v2291_v18 = vsel %vm195_vm0, %v5275_v36, inf }
 0x32b   : > { %v2248_v16 = vrot.slane %v2247_v21, 2  ;;  %v2282_v17 = vmin.f32 %v2280_v35, %v2281_v47  ;;  %v2292_v24 = vsel %vm195_vm0, %v5280_v3, inf  ;;  %v2294_v57 = vsel %vm195_vm0, %v7429_v27, inf }
 0x32c   : > { %v2237_v39 = vrot.slane %v2236_v52, 1  ;;  %v2260_v56 = vmin.f32 %v2258_v10, %v2259_v48  ;;  %v2272_v23 = vrot.slane %v2271_v19, 4  ;;  %v2293_v59 = vmin.f32 %v2291_v18, %v2292_v24 }
 0x32d   : > { %v2249_v11 = vmin.f32 %v2247_v21, %v2248_v16  ;;  %v2284_v4 = vmin.f32 %v2282_v17, %v2283_v14  ;;  %v2296_v12 = vsel %vm195_vm0, %v7430_v6, inf  ;;  %v2304_v36 = vsel %vm195_vm0, %v7431_v20, inf }
 0x32e   : > { %v5470_v40 = vmin.f32 %v2236_v52, %v2237_v39  ;;  %v2261_v42 = vrot.slane %v2260_v56, 2  ;;  %v2273_v60 = vmin.f32 %v2271_v19, %v2272_v23  ;;  %v2295_v3 = vmin.f32 %v2293_v59, %v2294_v57  ;;  %v7437_v39 = vld [vmem:[#allocation180_spill] sm:$0xff] }
 0x32f   : > { %v2250_v2 = vrot.slane %v2249_v11, 1  ;;  %v2285_v49 = vrot.slane %v2284_v4, 4  ;;  %v2305_v38 = vsel %vm195_vm0, %v7432_v53, inf  ;;  %v2307_v26 = vsel %vm195_vm0, %v7433_v50, inf }
 0x330   : > { %v2262_v29 = vmin.f32 %v2260_v56, %v2261_v42  ;;  %v2274_v31 = vrot.slane %v2273_v60, 2  ;;  %v2297_v45 = vmin.f32 %v2295_v3, %v2296_v12  ;;  %v2306_v7 = vmin.f32 %v2304_v36, %v2305_v38 }
 0x331   : > { %v2251_v41 = vmin.f32 %v2249_v11, %v2250_v2  ;;  %v2286_v55 = vmin.f32 %v2284_v4, %v2285_v49  ;;  %v2309_v34 = vsel %vm195_vm0, %v7434_v32, inf  ;;  %v2317_v5 = vsel %vm195_vm0, %v7435_v58, inf  ;;  %v7444_v58 = vld [vmem:[#allocation11_spill] sm:$0xff] }
 0x332   : > { %v2263_v51 = vrot.slane %v2262_v29, 1  ;;  %v2275_v25 = vmin.f32 %v2273_v60, %v2274_v31  ;;  %v2298_v15 = vrot.slane %v2297_v45, 4  ;;  %v2308_v37 = vmin.f32 %v2306_v7, %v2307_v26  ;;  %v7439_v7 = vld [vmem:[#allocation14_spill] sm:$0xff] }
 0x333   : > { %v2287_v63 = vrot.slane %v2286_v55, 2  ;;  %v2318_v9 = vsel %vm195_vm0, %v7436_v22, inf  ;;  %v2320_v10 = vsel %vm195_vm0, %v5325_v44, inf  ;;  %v2322_v1 = vsel %vm195_vm0, %v5330_v33, inf }
 0x334   : > { %v2264_v21 = vmin.f32 %v2262_v29, %v2263_v51  ;;  %v2276_v35 = vrot.slane %v2275_v25, 1  ;;  %v2299_v47 = vmin.f32 %v2297_v45, %v2298_v15  ;;  %v2310_v14 = vmin.f32 %v2308_v37, %v2309_v34  ;;  %v7438_v45 = vld [vmem:[#allocation171_spill] sm:$0xff]  ;;  %v7446_v51 = vld [vmem:[#allocation169_spill] sm:$0xff]  ;;  %v7449_v37 = vld [vmem:[#allocation168_spill] sm:$0xff] }
 0x335   : > { %v2288_v52 = vmin.f32 %v2286_v55, %v2287_v63  ;;  %v2319_v48 = vmin.f32 %v2317_v5, %v2318_v9  ;;  %v2330_v19 = vsel %vm195_vm0, %v5335_v28, inf  ;;  %v2331_v18 = vsel %vm195_vm0, %v5340_v62, inf  ;;  %v7441_v55 = vld [vmem:[#allocation170_spill] sm:$0xff]  ;;  %v7450_v63 = vld [vmem:[#allocation20_spill] sm:$0xff]  ;;  %v7452_v9 = vld [vmem:[#allocation25_spill] sm:$0xff] }
 0x336   : > { %v2277_v16 = vmin.f32 %v2275_v25, %v2276_v35  ;;  %v2300_v17 = vrot.slane %v2299_v47, 2  ;;  %v2311_v24 = vrot.slane %v2310_v14, 4  ;;  %v2332_v27 = vmin.f32 %v2330_v19, %v2331_v18  ;;  %v7447_v25 = vld [vmem:[#allocation23_spill] sm:$0xff]  ;;  %v7460_v18 = vld [vmem:[#allocation32_spill] sm:$0xff] }
 0x337   : > { %v2289_v44 = vrot.slane %v2288_v52, 1  ;;  %v2321_v57 = vmin.f32 %v2319_v48, %v2320_v10  ;;  %v2333_v33 = vsel %vm195_vm0, %v5345_v30, inf  ;;  %v2335_v56 = vsel %vm195_vm0, %v7437_v39, inf  ;;  %v7458_v48 = vld [vmem:[#allocation26_spill] sm:$0xff]  ;;  %v7548_v10 = vld [vmem:[#allocation143_spill] sm:$0xff] }
 0x338   : > { %v2301_v23 = vmin.f32 %v2299_v47, %v2300_v17  ;;  %v2312_v59 = vmin.f32 %v2310_v14, %v2311_v24  ;;  %v2334_v11 = vmin.f32 %v2332_v27, %v2333_v33  ;;  %v2486_v28 = vsel %vm1860_vm10, %v5408_v61, %v5406_v46  ;;  %v7456_v14 = vld [vmem:[#allocation28_spill] sm:$0xff]  ;;  %v7462_v27 = vld [vmem:[#allocation29_spill] sm:$0xff] }
 0x339   : > { %v2290_v62 = vmin.f32 %v2288_v52, %v2289_v44  ;;  %v2323_v4 = vmin.f32 %v2321_v57, %v2322_v1  ;;  %v2487_v6 = vsel %vm1862_vm7, %v5412_v43, %v2486_v28  ;;  %v2493_v12 = vsel %vm1860_vm10, %v2264_v21, %v2251_v41  ;;  %v7454_v21 = vld [vmem:[#allocation24_spill] sm:$0xff]  ;;  %v7464_v57 = vld [vmem:[#allocation35_spill] sm:$0xff] }
 0x33a   : > { %v2302_v20 = vrot.slane %v2301_v23, 1  ;;  %v2313_v36 = vrot.slane %v2312_v59, 2  ;;  %v2336_v30 = vmin.f32 %v2334_v11, %v2335_v56  ;;  %v2488_v42 = vsel %vm1864_vm9, %v5418_v13, %v2487_v6  ;;  %v7466_v56 = vld [vmem:[#allocation33_spill] sm:$0xff] }
 0x33b   : > { %v2324_v60 = vrot.slane %v2323_v4, 4  ;;  %v2489_v3 = vsel %vm1866_vm11, %v5426_v0, %v2488_v42  ;;  %v2494_v2 = vsel %vm1862_vm7, %v2277_v16, %v2493_v12  ;;  %vm7440_vm6 = vcmp.gt.f32.partialorder %v7439_v7, 0.0  ;;  %v7472_v12 = vld [vmem:[#allocation39_spill] sm:$0xff] }
 0x33c   : > { %v2303_v46 = vmin.f32 %v2301_v23, %v2302_v20  ;;  %v2314_v61 = vmin.f32 %v2312_v59, %v2313_v36  ;;  %v2337_v49 = vrot.slane %v2336_v30, 4  ;;  %v2490_v43 = vsel %vm1868_vm12, %v5440_v54, %v2489_v3  ;;  %v7442_v54 = vld [vmem:[#allocation19_spill] sm:$0xff]  ;;  %v7468_v59 = vld [vmem:[#allocation37_spill] sm:$0xff]  ;;  %v7474_v36 = vld [vmem:[#allocation38_spill] sm:$0xff] }
 0x33d   : > { %v2325_v53 = vmin.f32 %v2323_v4, %v2324_v60  ;;  %v2491_v38 = vsel %vm1870_vm2, %v5454_v8, %v2490_v43  ;;  %v2495_v50 = vsel %vm1864_vm9, %v2290_v62, %v2494_v2  ;;  %v1276_v41 = vsel %vm7440_vm6, %v7438_v45, -1e+30  ;;  %v7470_v4 = vld [vmem:[#allocation36_spill] sm:$0xff]  ;;  %v7476_v60 = vld [vmem:[#allocation41_spill] sm:$0xff] }
 0x33e   : > { %v2315_v26 = vrot.slane %v2314_v61, 1  ;;  %v2338_v13 = vmin.f32 %v2336_v30, %v2337_v49  ;;  %v2492_v29 = vsel %vm1872_vm4, %v5470_v40, %v2491_v38  ;;  %v2496_v31 = vsel %vm1866_vm11, %v2303_v46, %v2495_v50  ;;  %v7478_v2 = vld [vmem:[#allocation40_spill] sm:$0xff] }
 0x33f   : > { %v2326_v0 = vrot.slane %v2325_v53, 2  ;;  %vm7443_vm8 = vcmp.gt.f32.partialorder %v7442_v54, 0.0  ;;  %vm7445_vm1 = vcmp.gt.f32.partialorder %v7444_v58, 0.0  ;;  %vm7448_vm3 = vcmp.gt.f32.partialorder %v7447_v25, 0.0  ;;  %v7484_v50 = vld [vmem:[#allocation44_spill] sm:$0xff]  ;;  %v7554_v25 = vld [vmem:[#allocation145_spill] sm:$0xff] }
 0x340   : > { %v1277_v32 = vsel %vm7443_vm8, %v7441_v55, -1e+30  ;;  %v2316_v34 = vmin.f32 %v2314_v61, %v2315_v26  ;;  %v2339_v8 = vrot.slane %v2338_v13, 2  ;;  %v2512_v5 = vsel %vm7445_vm1, %v2492_v29, 0.0  ;;  %v7480_v61 = vld [vmem:[#allocation43_spill] sm:$0xff]  ;;  %v7492_v58 = vld [vmem:[#allocation64_spill] sm:$0xff] }
 0x341   : > { %v5524_v40 = vsel %vm7448_vm3, %v7446_v51, -1e+30  ;;  %v2327_v15 = vmin.f32 %v2325_v53, %v2326_v0  ;;  %vm7451_vm5 = vcmp.gt.f32.partialorder %v7450_v63, 0.0  ;;  %vm7453_vm6 = vcmp.gt.f32.partialorder %v7452_v9, 0.0  ;;  %v7482_v53 = vld [vmem:[#allocation42_spill] sm:$0xff]  ;;  %v7494_v9 = vld [vmem:[#allocation8_spill] sm:$0xff] }
 0x342   : > { %v5529_v22 = vsel %vm7451_vm5, %v7449_v37, -1e+30  ;;  %v5534_v1 = vsel %vm7453_vm6, %v7438_v45, -1e+30  ;;  %vm7455_vm8 = vcmp.gt.f32.partialorder %v7454_v21, 0.0  ;;  %v2340_v47 = vmin.f32 %v2338_v13, %v2339_v8  ;;  %v7486_v13 = vld [vmem:[#allocation45_spill] sm:$0xff] }
 0x343   : > { %v5539_v35 = vsel %vm7455_vm8, %v7441_v55, -1e+30  ;;  %vm7457_vm1 = vcmp.gt.f32.partialorder %v7456_v14, 0.0  ;;  %vm7459_vm3 = vcmp.gt.f32.partialorder %v7458_v48, 0.0  ;;  %vm7461_vm5 = vcmp.gt.f32.partialorder %v7460_v18, 0.0  ;;  %v7540_v18 = vld [vmem:[#allocation141_spill] sm:$0xff] }
 0x344   : > { %v5544_v52 = vsel %vm7457_vm1, %v7446_v51, -1e+30  ;;  %v5549_v19 = vsel %vm7459_vm3, %v7449_v37, -1e+30  ;;  %v5554_v16 = vsel %vm7461_vm5, %v7438_v45, -1e+30  ;;  %v2497_v24 = vsel %vm1868_vm12, %v2316_v34, %v2496_v31 }
 0x345   : > { %v2328_v17 = vrot.slane %v2327_v15, 1  ;;  %vm7463_vm6 = vcmp.gt.f32.partialorder %v7462_v27, 0.0  ;;  %vm7465_vm8 = vcmp.gt.f32.partialorder %v7464_v57, 0.0  ;;  %v2341_v39 = vrot.slane %v2340_v47, 1  ;;  %v7488_v31 = vld [vmem:[#allocation47_spill] sm:$0xff]  ;;  %v7490_v34 = vld [vmem:[#allocation46_spill] sm:$0xff] }
 0x346   : > { %v5560_v44 = vsel %vm7463_vm6, %v7441_v55, -1e+30  ;;  %v5565_v33 = vsel %vm7465_vm8, %v7446_v51, -1e+30  ;;  %vm7467_vm1 = vcmp.gt.f32.partialorder %v7466_v56, 0.0  ;;  %vm7469_vm3 = vcmp.gt.f32.partialorder %v7468_v59, 0.0 }
 0x347   : > { %v5570_v23 = vsel %vm7467_vm1, %v7449_v37, -1e+30  ;;  %v5575_v11 = vsel %vm7469_vm3, %v7438_v45, -1e+30  ;;  %v5578_v28 = vsel %vm195_vm0, %v1276_v41, -inf  ;;  %v2329_v62 = vmin.f32 %v2327_v15, %v2328_v17  ;;  %v7496_v17 = vld [vmem:[#allocation48_spill] sm:$0xff] }
 0x348   : > { %vm7471_vm5 = vcmp.gt.f32.partialorder %v7470_v4, 0.0  ;;  %vm7473_vm6 = vcmp.gt.f32.partialorder %v7472_v12, 0.0  ;;  %vm7475_vm8 = vcmp.gt.f32.partialorder %v7474_v36, 0.0  ;;  %v2342_v42 = vmin.f32 %v2340_v47, %v2341_v39  ;;  %v7498_v39 = vld [vmem:[#allocation66_spill] sm:$0xff]  ;;  %v7526_v36 = vld [vmem:[#allocation156_spill] sm:$0xff]  ;;  %v7530_v4 = vld [vmem:[#allocation157_spill] sm:$0xff] }
 0x349   : > { %v5583_v6 = vsel %vm7471_vm5, %v7441_v55, -1e+30  ;;  %v5588_v20 = vsel %vm7473_vm6, %v7446_v51, -1e+30  ;;  %v5593_v30 = vsel %vm7475_vm8, %v7449_v37, -1e+30  ;;  %v2498_v43 = vsel %vm1870_vm2, %v2329_v62, %v2497_v24 }
 0x34a   : > { %vm7477_vm1 = vcmp.gt.f32.partialorder %v7476_v60, 0.0  ;;  %vm7479_vm3 = vcmp.gt.f32.partialorder %v7478_v2, 0.0  ;;  %vm7481_vm5 = vcmp.gt.f32.partialorder %v7480_v61, 0.0  ;;  %vm7483_vm6 = vcmp.gt.f32.partialorder %v7482_v53, 0.0  ;;  %v7524_v60 = vld [vmem:[#allocation137_spill] sm:$0xff]  ;;  %v7528_v12 = vld [vmem:[#allocation138_spill] sm:$0xff] }
 0x34b   : > { %v5598_v3 = vsel %vm7477_vm1, %v7438_v45, -1e+30  ;;  %v5603_v46 = vsel %vm7479_vm3, %v7441_v55, -1e+30  ;;  %v5608_v49 = vsel %vm7481_vm5, %v7446_v51, -1e+30  ;;  %v2499_v0 = vsel %vm1872_vm4, %v2342_v42, %v2498_v43 }
 0x34c   : > { %v5614_v38 = vsel %vm7483_vm6, %v7449_v37, -1e+30  ;;  %vm7485_vm8 = vcmp.gt.f32.partialorder %v7484_v50, 0.0  ;;  %vm7487_vm1 = vcmp.gt.f32.partialorder %v7486_v13, 0.0  ;;  %vm7489_vm3 = vcmp.gt.f32.partialorder %v7488_v31, 0.0  ;;  %v7522_v50 = vld [vmem:[#allocation154_spill] sm:$0xff] }
 0x34d   : > { %v5619_v26 = vsel %vm7485_vm8, %v7438_v45, -1e+30  ;;  %v5624_v29 = vsel %vm7487_vm1, %v7441_v55, -1e+30  ;;  %v5630_v41 = vsel %vm7489_vm3, %v7446_v51, -1e+30 }
 0x34e   : > { %vm7491_vm5 = vcmp.gt.f32.partialorder %v7490_v34, 0.0  ;;  %vm7493_vm6 = vcmp.gt.f32.partialorder %v7492_v58, 0.0  ;;  %vm7495_vm8 = vcmp.gt.f32.partialorder %v7494_v9, 0.0  ;;  %vm7497_vm1 = vcmp.gt.f32.partialorder %v7496_v17, 0.0  ;;  %v7500_v58 = vld [vmem:[#allocation50_spill] sm:$0xff]  ;;  %v7504_v17 = vld [vmem:[#allocation52_spill] sm:$0xff] }
 0x34f   : > { %v5635_v8 = vsel %vm7491_vm5, %v7449_v37, -1e+30  ;;  %v5640_v15 = vsel %vm7493_vm6, %v7438_v45, -1e+30  ;;  %v2513_v47 = vsel %vm7495_vm8, %v2499_v0, 0.0  ;;  %vm7499_vm3 = vcmp.gt.f32.partialorder %v7498_v39, 0.0 }
 0x350   : > { %v5647_v24 = vsel %vm7497_vm1, %v7441_v55, -1e+30  ;;  %v5652_v42 = vsel %vm7499_vm3, %v7446_v51, -1e+30  ;;  %v1405_v43 = vsel %vm195_vm0, %v1277_v32, -inf  ;;  %v3487_v34 = vpack.i.bf16 %v2513_v47, %v2512_v5  ;;  %v7502_v0 = vld [vmem:[#allocation70_spill] sm:$0xff] }
 0x351   : > { %vm7501_vm5 = vcmp.gt.f32.partialorder %v7500_v58, 0.0  ;;  %vm7503_vm6 = vcmp.gt.f32.partialorder %v7502_v0, 0.0  ;;  %vm7505_vm8 = vcmp.gt.f32.partialorder %v7504_v17, 0.0  ;;  %v7506_v39 = vld [vmem:[#allocation73_spill] sm:$0xff]  ;;  %v7510_v58 = vld [vmem:[#allocation132_spill] sm:$0xff]  ;;  %v7512_v17 = vld [vmem:[#allocation134_spill] sm:$0xff]  ;;  %v1406_v54 = vmax.f32 %v5578_v28, %v1405_v43 }
 0x352   : > { %v5658_v31 = vsel %vm7501_vm5, %v7449_v37, -1e+30  ;;  %v5663_v9 = vsel %vm7503_vm6, %v7438_v45, -1e+30  ;;  %v5668_v62 = vsel %vm7505_vm8, %v7441_v55, -1e+30  ;;  %3488 = vrot.lane.b32.xlu0 %v3487_v34, %s3556_s18 }
 0x353   : > { %vm7507_vm1 = vcmp.gt.f32.partialorder %v7506_v39, 0.0  ;;  %v7508_v5 = vld [vmem:[#allocation53_spill] sm:$0xff]  ;;  %vm7511_vm5 = vcmp.gt.f32.partialorder %v7510_v58, 0.0  ;;  %vm7513_vm6 = vcmp.gt.f32.partialorder %v7512_v17, 0.0  ;;  %v7514_v39 = vld [vmem:[#allocation150_spill] sm:$0xff]  ;;  %v7518_v58 = vld [vmem:[#allocation152_spill] sm:$0xff] }
 0x354   : > { %v5673_v32 = vsel %vm7507_vm1, %v7446_v51, -1e+30  ;;  %vm7509_vm3 = vcmp.gt.f32.partialorder %v7508_v5, 0.0  ;;  %v5683_v0 = vsel %vm7511_vm5, %v7438_v45, -1e+30  ;;  %vm7515_vm8 = vcmp.gt.f32.partialorder %v7514_v39, 0.0 }
 0x355   : > { %v5678_v47 = vsel %vm7509_vm3, %v7449_v37, -1e+30  ;;  %v5689_v13 = vsel %vm7513_vm6, %v7441_v55, -1e+30  ;;  %v5694_v53 = vsel %vm7515_vm8, %v7446_v51, -1e+30 }
 0x356   : > { %v7516_v5 = vld [vmem:[#allocation135_spill] sm:$0xff]  ;;  %vm7519_vm3 = vcmp.gt.f32.partialorder %v7518_v58, 0.0  ;;  %v7520_v34 = vld [vmem:[#allocation136_spill] sm:$0xff]  ;;  %vm7523_vm6 = vcmp.gt.f32.partialorder %v7522_v50, 0.0  ;;  %vm7525_vm8 = vcmp.gt.f32.partialorder %v7524_v60, 0.0  ;;  %v7534_v56 = vld [vmem:[#allocation158_spill] sm:$0xff] }
 0x357   : > { %vm7517_vm1 = vcmp.gt.f32.partialorder %v7516_v5, 0.0  ;;  %v5704_v2 = vsel %vm7519_vm3, %v7438_v45, -1e+30  ;;  %vm7521_vm5 = vcmp.gt.f32.partialorder %v7520_v34, 0.0  ;;  %v5714_v39 = vsel %vm7523_vm6, %v7446_v51, -1e+30 }
 0x358   : > { %v5699_v61 = vsel %vm7517_vm1, %v7449_v37, -1e+30  ;;  %v5709_v17 = vsel %vm7521_vm5, %v7441_v55, -1e+30  ;;  %v5719_v5 = vsel %vm7525_vm8, %v7449_v37, -1e+30 }
 0x359   : > { %vm7527_vm1 = vcmp.gt.f32.partialorder %v7526_v36, 0.0  ;;  %vm7529_vm3 = vcmp.gt.f32.partialorder %v7528_v12, 0.0  ;;  %vm7531_vm5 = vcmp.gt.f32.partialorder %v7530_v4, 0.0  ;;  %v7532_v59 = vld [vmem:[#allocation139_spill] sm:$0xff]  ;;  %vm7535_vm8 = vcmp.gt.f32.partialorder %v7534_v56, 0.0  ;;  %v7536_v57 = vld [vmem:[#allocation140_spill] sm:$0xff] }
 0x35a   : > { %v5724_v58 = vsel %vm7527_vm1, %v7438_v45, -1e+30  ;;  %v5729_v34 = vsel %vm7529_vm3, %v7441_v55, -1e+30  ;;  %v5734_v50 = vsel %vm7531_vm5, %v7446_v51, -1e+30 }
 0x35b   : > { %vm7533_vm6 = vcmp.gt.f32.partialorder %v7532_v59, 0.0  ;;  %v5744_v36 = vsel %vm7535_vm8, %v7438_v45, -1e+30  ;;  %vm7537_vm1 = vcmp.gt.f32.partialorder %v7536_v57, 0.0  ;;  %v7538_v27 = vld [vmem:[#allocation159_spill] sm:$0xff]  ;;  %vm7541_vm5 = vcmp.gt.f32.partialorder %v7540_v18, 0.0 }
 0x35c   : > { %v5739_v60 = vsel %vm7533_vm6, %v7449_v37, -1e+30  ;;  %v5749_v12 = vsel %vm7537_vm1, %v7441_v55, -1e+30  ;;  %vm7539_vm3 = vcmp.gt.f32.partialorder %v7538_v27, 0.0  ;;  %v7542_v48 = vld [vmem:[#allocation160_spill] sm:$0xff] }
 0x35d   : > { %v5754_v4 = vsel %vm7539_vm3, %v7446_v51, -1e+30  ;;  %v5759_v59 = vsel %vm7541_vm5, %v7449_v37, -1e+30  ;;  %vm7543_vm6 = vcmp.gt.f32.partialorder %v7542_v48, 0.0  ;;  %v7544_v14 = vld [vmem:[#allocation142_spill] sm:$0xff] }
 0x35e   : > { %v5764_v56 = vsel %vm7543_vm6, %v7438_v45, -1e+30  ;;  %vm7545_vm8 = vcmp.gt.f32.partialorder %v7544_v14, 0.0  ;;  %v7546_v21 = vld [vmem:[#allocation161_spill] sm:$0xff]  ;;  %vm7549_vm3 = vcmp.gt.f32.partialorder %v7548_v10, 0.0  ;;  %v7551_v63 = vld [vmem:[#allocation162_spill] sm:$0xff] }
 0x35f   : > { %v5769_v57 = vsel %vm7545_vm8, %v7441_v55, -1e+30  ;;  %vm7547_vm1 = vcmp.gt.f32.partialorder %v7546_v21, 0.0  ;;  %v5779_v18 = vsel %vm7549_vm3, %v7449_v37, -1e+30  ;;  %vm7552_vm5 = vcmp.gt.f32.partialorder %v7551_v63, 0.0 }
 0x360   : > { %v5774_v27 = vsel %vm7547_vm1, %v7446_v51, -1e+30  ;;  %7550 = vst [vmem:[#allocation172_spill] sm:$0xff] %v5779_v18  ;;  %v5784_v48 = vsel %vm7552_vm5, %v7438_v45, -1e+30  ;;  %vm7555_vm6 = vcmp.gt.f32.partialorder %v7554_v25, 0.0 }
 0x361   : > { %7553 = vst [vmem:[#allocation173_spill] sm:$0xff] %v5784_v48  ;;  %v5789_v14 = vsel %vm7555_vm6, %v7441_v55, -1e+30  ;;  %v7557_v21 = vld [vmem:[#allocation163_spill] sm:$0xff]  ;;  %v7562_v63 = vld [vmem:[#allocation164_spill] sm:$0xff]  ;;  %v7565_v25 = vld [vmem:[#allocation149_spill] sm:$0xff] }
 0x362   : > { %7556 = vst [vmem:[#allocation174_spill] sm:$0xff] %v5789_v14  ;;  %vm7558_vm8 = vcmp.gt.f32.partialorder %v7557_v21, 0.0  ;;  %v7559_v10 = vld [vmem:[#allocation147_spill] sm:$0xff]  ;;  %vm7563_vm3 = vcmp.gt.f32.partialorder %v7562_v63, 0.0  ;;  %vm7566_vm5 = vcmp.gt.f32.partialorder %v7565_v25, 0.0  ;;  %v7568_v28 = vld [vmem:[#allocation165_spill] sm:$0xff] }
 0x363   : > { %v5795_v7 = vsel %vm7558_vm8, %v7446_v51, -1e+30  ;;  %vm7560_vm1 = vcmp.gt.f32.partialorder %v7559_v10, 0.0  ;;  %v5805_v48 = vsel %vm7563_vm3, %v7438_v45, -1e+30  ;;  %vm7569_vm6 = vcmp.gt.f32.partialorder %v7568_v28, 0.0 }
 0x364   : > { %v5800_v18 = vsel %vm7560_vm1, %v7449_v37, -1e+30  ;;  %7564 = vst [vmem:[#allocation176_spill] sm:$0xff] %v5805_v48  ;;  %v5810_v14 = vsel %vm7566_vm5, %v7441_v55, -1e+30  ;;  %v7571_v21 = vld [vmem:[#allocation151_spill] sm:$0xff] }
 0x365   : > { %7561 = vst [vmem:[#allocation175_spill] sm:$0xff] %v5800_v18  ;;  %7567 = vst [vmem:[#allocation177_spill] sm:$0xff] %v5810_v14  ;;  %v5815_v43 = vsel %vm7569_vm6, %v7446_v51, -1e+30  ;;  %vm7572_vm8 = vcmp.gt.f32.partialorder %v7571_v21, 0.0  ;;  %v7573_v18 = vld [vmem:[#allocation166_spill] sm:$0xff] }
 0x366   : > { %7570 = vst [vmem:[#allocation178_spill] sm:$0xff] %v5815_v43  ;;  %v5820_v10 = vsel %vm7572_vm8, %v7449_v37, -1e+30  ;;  %vm7574_vm1 = vcmp.gt.f32.partialorder %v7573_v18, 0.0  ;;  %v7576_v48 = vld [vmem:[#allocation153_spill] sm:$0xff]  ;;  %v1407_v28 = vsel %vm195_vm0, %v5524_v40, -inf }
 0x367   : > { %v5825_v63 = vsel %vm7574_vm1, %v7438_v45, -1e+30  ;;  %vm7577_vm3 = vcmp.gt.f32.partialorder %v7576_v48, 0.0  ;;  %v1409_v43 = vsel %vm195_vm0, %v5529_v22, -inf  ;;  %v1408_v14 = vmax.f32 %v1406_v54, %v1407_v28 }
 0x368   : > { %7575 = vst [vmem:[#allocation179_spill] sm:$0xff] %v5825_v63  ;;  %v5830_v25 = vsel %vm7577_vm3, %v7441_v55, -1e+30  ;;  %v1417_v21 = vsel %vm195_vm0, %v5534_v1, -inf  ;;  %v1418_v18 = vsel %vm195_vm0, %v5539_v35, -inf  ;;  %v1420_v45 = vsel %vm195_vm0, %v5544_v52, -inf }
 0x369   : > { %v1419_v63 = vmax.f32 %v1417_v21, %v1418_v18  ;;  %v1422_v48 = vsel %vm195_vm0, %v5549_v19, -inf  ;;  %v1430_v40 = vsel %vm195_vm0, %v5554_v16, -inf  ;;  %v1431_v22 = vsel %vm195_vm0, %v5560_v44, -inf }
 0x36a   : > { %v1410_v54 = vmax.f32 %v1408_v14, %v1409_v43  ;;  %v1432_v28 = vmax.f32 %v1430_v40, %v1431_v22  ;;  %v1433_v1 = vsel %vm195_vm0, %v5565_v33, -inf  ;;  %v1435_v35 = vsel %vm195_vm0, %v5570_v23, -inf }
 0x36b   : > { %v1421_v55 = vmax.f32 %v1419_v63, %v1420_v45  ;;  %v1443_v21 = vsel %vm195_vm0, %v5575_v11, -inf  ;;  %v1444_v52 = vsel %vm195_vm0, %v5583_v6, -inf  ;;  %v1446_v19 = vsel %vm195_vm0, %v5588_v20, -inf }
 0x36c   : > { %v1411_v18 = vrot.slane %v1410_v54, 4  ;;  %v1434_v16 = vmax.f32 %v1432_v28, %v1433_v1  ;;  %v1445_v14 = vmax.f32 %v1443_v21, %v1444_v52  ;;  %v1448_v44 = vsel %vm195_vm0, %v5593_v30, -inf }
 0x36d   : > { %v1423_v33 = vmax.f32 %v1421_v55, %v1422_v48  ;;  %v1456_v23 = vsel %vm195_vm0, %v5598_v3, -inf  ;;  %v1457_v45 = vsel %vm195_vm0, %v5603_v46, -inf  ;;  %v1459_v63 = vsel %vm195_vm0, %v5608_v49, -inf }
 0x36e   : > { %v1412_v11 = vmax.f32 %v1410_v54, %v1411_v18  ;;  %v1436_v6 = vmax.f32 %v1434_v16, %v1435_v35  ;;  %v1447_v43 = vmax.f32 %v1445_v14, %v1446_v19  ;;  %v1458_v20 = vmax.f32 %v1456_v23, %v1457_v45 }
 0x36f   : > { %v1424_v40 = vrot.slane %v1423_v33, 4  ;;  %v1461_v22 = vsel %vm195_vm0, %v5614_v38, -inf  ;;  %v1469_v55 = vsel %vm195_vm0, %v5619_v26, -inf  ;;  %v1470_v48 = vsel %vm195_vm0, %v5624_v29, -inf }
 0x370   : > { %v1413_v30 = vrot.slane %v1412_v11, 2  ;;  %v1437_v3 = vrot.slane %v1436_v6, 4  ;;  %v1449_v46 = vmax.f32 %v1447_v43, %v1448_v44  ;;  %v1460_v28 = vmax.f32 %v1458_v20, %v1459_v63 }
 0x371   : > { %v1425_v1 = vmax.f32 %v1423_v33, %v1424_v40  ;;  %v1471_v49 = vmax.f32 %v1469_v55, %v1470_v48  ;;  %v1472_v54 = vsel %vm195_vm0, %v5630_v41, -inf  ;;  %v1474_v35 = vsel %vm195_vm0, %v5635_v8, -inf }
 0x372   : > { %v1414_v21 = vmax.f32 %v1412_v11, %v1413_v30  ;;  %v1438_v38 = vmax.f32 %v1436_v6, %v1437_v3  ;;  %v1450_v52 = vrot.slane %v1449_v46, 4  ;;  %v1462_v19 = vmax.f32 %v1460_v28, %v1461_v22  ;;  %v7578_v11 = vld [vmem:[#allocation167_spill] sm:$0xff] }
 0x373   : > { %v1426_v26 = vrot.slane %v1425_v1, 2  ;;  %v1473_v18 = vmax.f32 %v1471_v49, %v1472_v54  ;;  %v1482_v29 = vsel %vm195_vm0, %v5640_v15, -inf  ;;  %v1483_v16 = vsel %vm195_vm0, %v5647_v24, -inf  ;;  %v7580_v24 = vld [vmem:[#allocation155_spill] sm:$0xff] }
 0x374   : > { %v1415_v14 = vrot.slane %v1414_v21, 1  ;;  %v1439_v44 = vrot.slane %v1438_v38, 2  ;;  %v1451_v33 = vmax.f32 %v1449_v46, %v1450_v52  ;;  %v1463_v23 = vrot.slane %v1462_v19, 4 }
 0x375   : > { %v1427_v41 = vmax.f32 %v1425_v1, %v1426_v26  ;;  %v1475_v45 = vmax.f32 %v1473_v18, %v1474_v35  ;;  %v1484_v63 = vmax.f32 %v1482_v29, %v1483_v16  ;;  %v1485_v8 = vsel %vm195_vm0, %v5652_v42, -inf }
 0x376   : > { %vm7579_vm5 = vcmp.gt.f32.partialorder %v7578_v11, 0.0  ;;  %v1440_v43 = vmax.f32 %v1438_v38, %v1439_v44  ;;  %v1452_v15 = vrot.slane %v1451_v33, 2  ;;  %v1464_v20 = vmax.f32 %v1462_v19, %v1463_v23 }
 0x377   : > { %v5885_v6 = vsel %vm7579_vm5, %v7446_v51, -1e+30  ;;  %vm7581_vm6 = vcmp.gt.f32.partialorder %v7580_v24, 0.0  ;;  %v1476_v22 = vrot.slane %v1475_v45, 4  ;;  %v1486_v55 = vmax.f32 %v1484_v63, %v1485_v8 }
 0x378   : > { %v5890_v40 = vsel %vm7581_vm6, %v7449_v37, -1e+30  ;;  %v1487_v48 = vsel %vm195_vm0, %v5658_v31, -inf  ;;  %v1428_v30 = vrot.slane %v1427_v41, 1  ;;  %v1453_v42 = vmax.f32 %v1451_v33, %v1452_v15 }
 0x379   : > { %v1465_v3 = vrot.slane %v1464_v20, 2  ;;  %v1495_v46 = vsel %vm195_vm0, %v5663_v9, -inf  ;;  %v5896_v28 = vmax.f32 %v1414_v21, %v1415_v14  ;;  %v1477_v1 = vmax.f32 %v1475_v45, %v1476_v22 }
 0x37a   : > { %v1488_v49 = vmax.f32 %v1486_v55, %v1487_v48  ;;  %v1496_v54 = vsel %vm195_vm0, %v5668_v62, -inf  ;;  %v1441_v35 = vrot.slane %v1440_v43, 1  ;;  %v1454_v38 = vrot.slane %v1453_v42, 1 }
 0x37b   : > { %v1466_v52 = vmax.f32 %v1464_v20, %v1465_v3  ;;  %v1497_v19 = vmax.f32 %v1495_v46, %v1496_v54  ;;  %v1478_v26 = vrot.slane %v1477_v1, 2  ;;  %v1498_v31 = vsel %vm195_vm0, %v5673_v32, -inf }
 0x37c   : > { %v1489_v18 = vrot.slane %v1488_v49, 4  ;;  %v1500_v29 = vsel %vm195_vm0, %v5678_v47, -inf  ;;  %v5904_v9 = vmax.f32 %v1427_v41, %v1428_v30  ;;  %v1716_v14 = vsel %vm195_vm0, %v5683_v0, -inf }
 0x37d   : > { %v1467_v21 = vrot.slane %v1466_v52, 1  ;;  %v1499_v16 = vmax.f32 %v1497_v19, %v1498_v31  ;;  %v1479_v62 = vmax.f32 %v1477_v1, %v1478_v26  ;;  %v1717_v33 = vsel %vm195_vm0, %v5689_v13, -inf }
 0x37e   : > { %v1490_v44 = vmax.f32 %v1488_v49, %v1489_v18  ;;  %v1719_v23 = vsel %vm195_vm0, %v5694_v53, -inf  ;;  %v5912_v45 = vmax.f32 %v1440_v43, %v1441_v35  ;;  %v5914_v32 = vmax.f32 %v1453_v42, %v1454_v38 }
 0x37f   : > { %v1501_v47 = vmax.f32 %v1499_v16, %v1500_v29  ;;  %v1718_v41 = vmax.f32 %v1716_v14, %v1717_v33  ;;  %v1721_v8 = vsel %vm195_vm0, %v5699_v61, -inf  ;;  %v1729_v0 = vsel %vm195_vm0, %v5704_v2, -inf }
 0x380   : > { %v1491_v63 = vrot.slane %v1490_v44, 2  ;;  %v1730_v15 = vsel %vm195_vm0, %v5709_v17, -inf  ;;  %v1732_v53 = vsel %vm195_vm0, %v5714_v39, -inf  ;;  %v5924_v43 = vmax.f32 %v1466_v52, %v1467_v21 }
 0x381   : > { %v1502_v13 = vrot.slane %v1501_v47, 4  ;;  %v1720_v20 = vmax.f32 %v1718_v41, %v1719_v23  ;;  %v1731_v22 = vmax.f32 %v1729_v0, %v1730_v15  ;;  %v1480_v55 = vrot.slane %v1479_v62, 1  ;;  %v7582_v41 = vld [vmem:[#allocation172_spill] sm:$0xff]  ;;  %v7584_v15 = vld [vmem:[#allocation174_spill] sm:$0xff] }
 0x382   : > { %v1734_v48 = vsel %vm195_vm0, %v5719_v5, -inf  ;;  %v1742_v61 = vsel %vm195_vm0, %v5724_v58, -inf  ;;  %v1743_v17 = vsel %vm195_vm0, %v5729_v34, -inf  ;;  %v5932_v3 = vmax.f32 %v1490_v44, %v1491_v63 }
 0x383   : > { %v1503_v30 = vmax.f32 %v1501_v47, %v1502_v13  ;;  %v1722_v2 = vmax.f32 %v1720_v20, %v1721_v8  ;;  %v1733_v42 = vmax.f32 %v1731_v22, %v1732_v53  ;;  %v1744_v46 = vmax.f32 %v1742_v61, %v1743_v17  ;;  %v7583_v8 = vld [vmem:[#allocation173_spill] sm:$0xff] }
 0x384   : > { %v1745_v39 = vsel %vm195_vm0, %v5734_v50, -inf  ;;  %v1747_v1 = vsel %vm195_vm0, %v5739_v60, -inf  ;;  %v1755_v58 = vsel %vm195_vm0, %v5744_v36, -inf  ;;  %v5940_v35 = vmax.f32 %v1479_v62, %v1480_v55 }
 0x385   : > { %v1504_v49 = vrot.slane %v1503_v30, 2  ;;  %v1723_v5 = vrot.slane %v1722_v2, 4  ;;  %v1735_v54 = vmax.f32 %v1733_v42, %v1734_v48  ;;  %v1746_v38 = vmax.f32 %v1744_v46, %v1745_v39 }
 0x386   : > { %v1756_v34 = vsel %vm195_vm0, %v5749_v12, -inf  ;;  %v1758_v52 = vsel %vm195_vm0, %v5754_v4, -inf  ;;  %v1760_v31 = vsel %vm195_vm0, %v5759_v59, -inf  ;;  %v1768_v36 = vsel %vm195_vm0, %v5764_v56, -inf }
 0x387   : > { %v5946_v19 = vmax.f32 %v1503_v30, %v1504_v49  ;;  %v1724_v50 = vmax.f32 %v1722_v2, %v1723_v5  ;;  %v1736_v26 = vrot.slane %v1735_v54, 4  ;;  %v1757_v60 = vmax.f32 %v1755_v58, %v1756_v34  ;;  %v7585_v30 = vld [vmem:[#allocation175_spill] sm:$0xff]  ;;  %v7586_v5 = vld [vmem:[#allocation176_spill] sm:$0xff]  ;;  %v7587_v58 = vld [vmem:[#allocation177_spill] sm:$0xff] }
 0x388   : > { %v1748_v18 = vmax.f32 %v1746_v38, %v1747_v1  ;;  %v1769_v29 = vsel %vm195_vm0, %v5769_v57, -inf  ;;  %v1493_v12 = vrot.slane %v5932_v3, 1  ;;  %v1771_v33 = vsel %vm195_vm0, %v5774_v27, -inf }
 0x389   : > { %v1725_v21 = vrot.slane %v1724_v50, 2  ;;  %v1737_v16 = vmax.f32 %v1735_v54, %v1736_v26  ;;  %v1759_v4 = vmax.f32 %v1757_v60, %v1758_v52  ;;  %v1506_v14 = vrot.slane %v5946_v19, 1 }
 0x38a   : > { %v1749_v62 = vrot.slane %v1748_v18, 4  ;;  %v1770_v44 = vmax.f32 %v1768_v36, %v1769_v29  ;;  %v1773_v56 = vsel %vm195_vm0, %v7582_v41, -inf  ;;  %v1781_v0 = vsel %vm195_vm0, %v7583_v8, -inf }
 0x38b   : > { %v1726_v23 = vmax.f32 %v1724_v50, %v1725_v21  ;;  %v1738_v59 = vrot.slane %v1737_v16, 2  ;;  %v1761_v47 = vmax.f32 %v1759_v4, %v1760_v31  ;;  %v1782_v13 = vsel %vm195_vm0, %v7584_v15, -inf  ;;  %v7589_v4 = vld [vmem:[#allocation179_spill] sm:$0xff] }
 0x38c   : > { %v1750_v63 = vmax.f32 %v1748_v18, %v1749_v62  ;;  %v1772_v57 = vmax.f32 %v1770_v44, %v1771_v33  ;;  %v1783_v55 = vmax.f32 %v1781_v0, %v1782_v13  ;;  %v1784_v61 = vsel %vm195_vm0, %v5795_v7, -inf  ;;  %v7588_v18 = vld [vmem:[#allocation178_spill] sm:$0xff] }
 0x38d   : > { %v1727_v20 = vrot.slane %v1726_v23, 1  ;;  %v1739_v22 = vmax.f32 %v1737_v16, %v1738_v59  ;;  %v1762_v53 = vrot.slane %v1761_v47, 4  ;;  %v1786_v2 = vsel %vm195_vm0, %v7585_v30, -inf }
 0x38e   : > { %v1751_v48 = vrot.slane %v1750_v63, 2  ;;  %v1774_v27 = vmax.f32 %v1772_v57, %v1773_v56  ;;  %v1785_v39 = vmax.f32 %v1783_v55, %v1784_v61  ;;  %v1794_v54 = vsel %vm195_vm0, %v7586_v5, -inf }
 0x38f   : > { %v1728_v42 = vmax.f32 %v1726_v23, %v1727_v20  ;;  %v1740_v17 = vrot.slane %v1739_v22, 1  ;;  %v1763_v46 = vmax.f32 %v1761_v47, %v1762_v53  ;;  %v1795_v38 = vsel %vm195_vm0, %v7587_v58, -inf }
 0x390   : > { %v1752_v1 = vmax.f32 %v1750_v63, %v1751_v48  ;;  %v1775_v49 = vrot.slane %v1774_v27, 4  ;;  %v1787_v50 = vmax.f32 %v1785_v39, %v1786_v2  ;;  %v1796_v26 = vmax.f32 %v1794_v54, %v1795_v38  ;;  %v7591_v39 = vld [vmem:[#allocation171_spill] sm:$0xff] }
 0x391   : > { %v1741_v34 = vmax.f32 %v1739_v22, %v1740_v17  ;;  %v1764_v52 = vrot.slane %v1763_v46, 2  ;;  %v1797_v31 = vsel %vm195_vm0, %v7588_v18, -inf  ;;  %v1799_v36 = vsel %vm195_vm0, %v5820_v10, -inf  ;;  %v5988_v22 = vpop.f32.mrb[0].mxu0  ;;  %v7595_v54 = vld [vmem:[#allocation19_spill] sm:$0xff] }
 0x392   : > { %v1753_v7 = vrot.slane %v1752_v1, 1  ;;  %v1776_v60 = vmax.f32 %v1774_v27, %v1775_v49  ;;  %v1788_v21 = vrot.slane %v1787_v50, 4  ;;  %v1798_v16 = vmax.f32 %v1796_v26, %v1797_v31  ;;  %7590 = vst [vmem:[#allocation180_spill] sm:$0xff] %v5988_v22  ;;  %v7597_v38 = vld [vmem:[#allocation23_spill] sm:$0xff]  ;;  %v6028_v31 = vpop.f32.mrb[1].mxu0 }
 0x393   : > { %v1765_v29 = vmax.f32 %v1763_v46, %v1764_v52  ;;  %v1807_v62 = vsel %vm195_vm0, %v7589_v4, -inf  ;;  %v1808_v23 = vsel %vm195_vm0, %v5830_v25, -inf  ;;  %v1810_v59 = vsel %vm195_vm0, %v5885_v6, -inf  ;;  %7603 = vst [vmem:[#allocation169_spill] sm:$0xff] %v6028_v31  ;;  %v7699_v31 = vld [vmem:[#allocation161_spill] sm:$0xff]  ;;  %v7702_v22 = vld [vmem:[#allocation143_spill] sm:$0xff] }
 0x394   : > { %v1754_v44 = vmax.f32 %v1752_v1, %v1753_v7  ;;  %v1777_v33 = vrot.slane %v1776_v60, 2  ;;  %v1789_v41 = vmax.f32 %v1787_v50, %v1788_v21  ;;  %v1800_v56 = vmax.f32 %v1798_v16, %v1799_v36  ;;  %v7606_v16 = vld [vmem:[#allocation28_spill] sm:$0xff] }
 0x395   : > { %v1766_v47 = vrot.slane %v1765_v29, 1  ;;  %v1809_v63 = vmax.f32 %v1807_v62, %v1808_v23  ;;  %v1812_v10 = vsel %vm195_vm0, %v5890_v40, -inf  ;;  %v1861_v8 = vsel %vm1860_vm10, %v5904_v9, %v5896_v28  ;;  %v7608_v62 = vld [vmem:[#allocation26_spill] sm:$0xff] }
 0x396   : > { %v1778_v57 = vmax.f32 %v1776_v60, %v1777_v33  ;;  %v1888_v0 = vsel %vm1860_vm10, %v1741_v34, %v1728_v42  ;;  %v1790_v13 = vrot.slane %v1789_v41, 2  ;;  %v1801_v25 = vrot.slane %v1800_v56, 4  ;;  %v7601_v60 = vld [vmem:[#allocation25_spill] sm:$0xff] }
 0x397   : > { %v1767_v15 = vmax.f32 %v1765_v29, %v1766_v47  ;;  %v1811_v20 = vmax.f32 %v1809_v63, %v1810_v59  ;;  %v1494_v6 = vmax.f32 %v5932_v3, %v1493_v12  ;;  %v1863_v55 = vsel %vm1862_vm7, %v5912_v45, %v1861_v8  ;;  %v7604_v29 = vld [vmem:[#allocation24_spill] sm:$0xff]  ;;  %v7614_v63 = vld [vmem:[#allocation35_spill] sm:$0xff] }
 0x398   : > { %v1779_v53 = vrot.slane %v1778_v57, 1  ;;  %v1889_v40 = vsel %vm1862_vm7, %v1754_v44, %v1888_v0  ;;  %v1791_v48 = vmax.f32 %v1789_v41, %v1790_v13  ;;  %v1802_v27 = vmax.f32 %v1800_v56, %v1801_v25  ;;  %v7610_v59 = vld [vmem:[#allocation32_spill] sm:$0xff]  ;;  %v7612_v41 = vld [vmem:[#allocation29_spill] sm:$0xff] }
 0x399   : > { %v1813_v61 = vmax.f32 %v1811_v20, %v1812_v10  ;;  %v1865_v28 = vsel %vm1864_vm9, %v5914_v32, %v1863_v55  ;;  %v1507_v9 = vmax.f32 %v5946_v19, %v1506_v14  ;;  %v1890_v12 = vsel %vm1864_vm9, %v1767_v15, %v1889_v40  ;;  %v7592_v32 = vld [vmem:[#allocation14_spill] sm:$0xff]  ;;  %v7616_v10 = vld [vmem:[#allocation33_spill] sm:$0xff]  ;;  %v7624_v55 = vld [vmem:[#allocation39_spill] sm:$0xff] }
 0x39a   : > { %v1780_v30 = vmax.f32 %v1778_v57, %v1779_v53  ;;  %v1867_v3 = vsel %vm1866_vm11, %v5924_v43, %v1865_v28  ;;  %v1792_v2 = vrot.slane %v1791_v48, 1  ;;  %v1803_v45 = vrot.slane %v1802_v27, 2  ;;  %v7594_v43 = vld [vmem:[#allocation170_spill] sm:$0xff]  ;;  %v7618_v0 = vld [vmem:[#allocation37_spill] sm:$0xff] }
 0x39b   : > { %v1814_v42 = vrot.slane %v1813_v61, 4  ;;  %v1869_v17 = vsel %vm1868_vm12, %v5940_v35, %v1867_v3  ;;  %vm7593_vm8 = vcmp.gt.f32.partialorder %v7592_v32, 0.0  ;;  %vm7596_vm1 = vcmp.gt.f32.partialorder %v7595_v54, 0.0  ;;  %v7599_v35 = vld [vmem:[#allocation20_spill] sm:$0xff]  ;;  %v7620_v25 = vld [vmem:[#allocation9_spill] sm:$0xff]  ;;  %v7642_v54 = vld [vmem:[#allocation46_spill] sm:$0xff] }
 0x39c   : > { %v1871_v46 = vsel %vm1870_vm2, %v1494_v6, %v1869_v17  ;;  %v1903_v1 = vsel %vm7593_vm8, %v7591_v39, 1e+30  ;;  %v1793_v49 = vmax.f32 %v1791_v48, %v1792_v2  ;;  %v1804_v19 = vmax.f32 %v1802_v27, %v1803_v45  ;;  %v7622_v6 = vld [vmem:[#allocation36_spill] sm:$0xff]  ;;  %v7626_v27 = vld [vmem:[#allocation38_spill] sm:$0xff]  ;;  %v7628_v28 = vld [vmem:[#allocation41_spill] sm:$0xff] }
 0x39d   : > { %v1815_v14 = vmax.f32 %v1813_v61, %v1814_v42  ;;  %v1891_v5 = vsel %vm1866_vm11, %v1780_v30, %v1890_v12  ;;  %v1904_v58 = vsel %vm7596_vm1, %v7594_v43, 1e+30  ;;  %vm7598_vm3 = vcmp.gt.f32.partialorder %v7597_v38, 0.0  ;;  %v7630_v30 = vld [vmem:[#allocation40_spill] sm:$0xff]  ;;  %v7632_v2 = vld [vmem:[#allocation43_spill] sm:$0xff]  ;;  %v7634_v42 = vld [vmem:[#allocation42_spill] sm:$0xff] }
 0x39e   : > { %v6015_v34 = vsel %vm7598_vm3, %v7446_v51, 1e+30  ;;  %vm7600_vm5 = vcmp.gt.f32.partialorder %v7599_v35, 0.0  ;;  %v1805_v50 = vrot.slane %v1804_v19, 1  ;;  %v1873_v7 = vsel %vm1872_vm4, %v1507_v9, %v1871_v46  ;;  %v7636_v46 = vld [vmem:[#allocation44_spill] sm:$0xff] }
 0x39f   : > { %v6020_v52 = vsel %vm7600_vm5, %v7449_v37, 1e+30  ;;  %v1816_v26 = vrot.slane %v1815_v14, 2  ;;  %vm7602_vm6 = vcmp.gt.f32.partialorder %v7601_v60, 0.0  ;;  %v1892_v36 = vsel %vm1868_vm12, %v1793_v49, %v1891_v5  ;;  %v7638_v49 = vld [vmem:[#allocation45_spill] sm:$0xff] }
 0x3a0   : > { %v6026_v18 = vsel %vm7602_vm6, %v7591_v39, 1e+30  ;;  %vm7605_vm8 = vcmp.gt.f32.partialorder %v7604_v29, 0.0  ;;  %vm7607_vm1 = vcmp.gt.f32.partialorder %v7606_v16, 0.0  ;;  %vm7609_vm3 = vcmp.gt.f32.partialorder %v7608_v62, 0.0  ;;  %v7650_v16 = vld [vmem:[#allocation10_spill] sm:$0xff] }
 0x3a1   : > { %v6034_v21 = vsel %vm7605_vm8, %v7594_v43, 1e+30  ;;  %v6039_v4 = vsel %vm7607_vm1, %v7446_v51, 1e+30  ;;  %v6044_v44 = vsel %vm7609_vm3, %v7449_v37, 1e+30  ;;  %v1806_v33 = vmax.f32 %v1804_v19, %v1805_v50 }
 0x3a2   : > { %v1817_v23 = vmax.f32 %v1815_v14, %v1816_v26  ;;  %vm7611_vm5 = vcmp.gt.f32.partialorder %v7610_v59, 0.0  ;;  %vm7613_vm6 = vcmp.gt.f32.partialorder %v7612_v41, 0.0  ;;  %vm7615_vm8 = vcmp.gt.f32.partialorder %v7614_v63, 0.0  ;;  %v7640_v14 = vld [vmem:[#allocation47_spill] sm:$0xff]  ;;  %v7644_v50 = vld [vmem:[#allocation64_spill] sm:$0xff]  ;;  %v7654_v59 = vld [vmem:[#allocation70_spill] sm:$0xff] }
 0x3a3   : > { %v6049_v47 = vsel %vm7611_vm5, %v7591_v39, 1e+30  ;;  %v6054_v56 = vsel %vm7613_vm6, %v7594_v43, 1e+30  ;;  %v6059_v57 = vsel %vm7615_vm8, %v7446_v51, 1e+30  ;;  %v1893_v48 = vsel %vm1870_vm2, %v1806_v33, %v1892_v36 }
 0x3a4   : > { %vm7617_vm1 = vcmp.gt.f32.partialorder %v7616_v10, 0.0  ;;  %vm7619_vm3 = vcmp.gt.f32.partialorder %v7618_v0, 0.0  ;;  %v1818_v13 = vrot.slane %v1817_v23, 1  ;;  %vm7621_vm5 = vcmp.gt.f32.partialorder %v7620_v25, 0.0  ;;  %v7648_v36 = vld [vmem:[#allocation66_spill] sm:$0xff]  ;;  %v7656_v0 = vld [vmem:[#allocation52_spill] sm:$0xff] }
 0x3a5   : > { %v6064_v8 = vsel %vm7617_vm1, %v7449_v37, 1e+30  ;;  %v6069_v15 = vsel %vm7619_vm3, %v7591_v39, 1e+30  ;;  %v1899_v20 = vsel %vm7621_vm5, %v1873_v7, 0.0  ;;  %vm7623_vm6 = vcmp.gt.f32.partialorder %v7622_v6, 0.0 }
 0x3a6   : > { %v6076_v53 = vsel %vm7623_vm6, %v7594_v43, 1e+30  ;;  %vm7625_vm8 = vcmp.gt.f32.partialorder %v7624_v55, 0.0  ;;  %vm7627_vm1 = vcmp.gt.f32.partialorder %v7626_v27, 0.0  ;;  %vm7629_vm3 = vcmp.gt.f32.partialorder %v7628_v28, 0.0  ;;  %v7646_v7 = vld [vmem:[#allocation48_spill] sm:$0xff] }
 0x3a7   : > { %v6081_v40 = vsel %vm7625_vm8, %v7446_v51, 1e+30  ;;  %v6087_v61 = vsel %vm7627_vm1, %v7449_v37, 1e+30  ;;  %v6092_v9 = vsel %vm7629_vm3, %v7591_v39, 1e+30  ;;  %v1819_v12 = vmax.f32 %v1817_v23, %v1818_v13 }
 0x3a8   : > { %vm7631_vm5 = vcmp.gt.f32.partialorder %v7630_v30, 0.0  ;;  %vm7633_vm6 = vcmp.gt.f32.partialorder %v7632_v2, 0.0  ;;  %vm7635_vm8 = vcmp.gt.f32.partialorder %v7634_v42, 0.0  ;;  %vm7637_vm1 = vcmp.gt.f32.partialorder %v7636_v46, 0.0  ;;  %v7652_v33 = vld [vmem:[#allocation50_spill] sm:$0xff]  ;;  %v7658_v6 = vld [vmem:[#allocation73_spill] sm:$0xff] }
 0x3a9   : > { %v6097_v3 = vsel %vm7631_vm5, %v7594_v43, 1e+30  ;;  %v6102_v45 = vsel %vm7633_vm6, %v7446_v51, 1e+30  ;;  %v6107_v17 = vsel %vm7635_vm8, %v7449_v37, 1e+30  ;;  %v1894_v35 = vsel %vm1872_vm4, %v1819_v12, %v1893_v48 }
 0x3aa   : > { %v6112_v32 = vsel %vm7637_vm1, %v7591_v39, 1e+30  ;;  %vm7639_vm3 = vcmp.gt.f32.partialorder %v7638_v49, 0.0  ;;  %vm7641_vm5 = vcmp.gt.f32.partialorder %v7640_v14, 0.0  ;;  %vm7643_vm6 = vcmp.gt.f32.partialorder %v7642_v54, 0.0  ;;  %v7660_v27 = vld [vmem:[#allocation53_spill] sm:$0xff] }
 0x3ab   : > { %v6117_v19 = vsel %vm7639_vm3, %v7594_v43, 1e+30  ;;  %v6122_v5 = vsel %vm7641_vm5, %v7446_v51, 1e+30  ;;  %v6127_v38 = vsel %vm7643_vm6, %v7449_v37, 1e+30 }
 0x3ac   : > { %vm7645_vm8 = vcmp.gt.f32.partialorder %v7644_v50, 0.0  ;;  %vm7647_vm1 = vcmp.gt.f32.partialorder %v7646_v7, 0.0  ;;  %vm7649_vm3 = vcmp.gt.f32.partialorder %v7648_v36, 0.0  ;;  %vm7651_vm5 = vcmp.gt.f32.partialorder %v7650_v16, 0.0  ;;  %v7664_v30 = vld [vmem:[#allocation134_spill] sm:$0xff]  ;;  %v7668_v42 = vld [vmem:[#allocation135_spill] sm:$0xff] }
 0x3ad   : > { %v6133_v26 = vsel %vm7645_vm8, %v7591_v39, 1e+30  ;;  %v6138_v60 = vsel %vm7647_vm1, %v7594_v43, 1e+30  ;;  %v6143_v29 = vsel %vm7649_vm3, %v7446_v51, 1e+30 }
 0x3ae   : > { %v1902_v62 = vsel %vm7651_vm5, %v1894_v35, 0.0  ;;  %vm7653_vm6 = vcmp.gt.f32.partialorder %v7652_v33, 0.0  ;;  %vm7655_vm8 = vcmp.gt.f32.partialorder %v7654_v59, 0.0  ;;  %v2031_v63 = vsel %vm195_vm0, %v1903_v1, inf  ;;  %v7662_v1 = vld [vmem:[#allocation132_spill] sm:$0xff]  ;;  %v7666_v2 = vld [vmem:[#allocation150_spill] sm:$0xff] }
 0x3af   : > { %v6150_v23 = vsel %vm7653_vm6, %v7449_v37, 1e+30  ;;  %v6155_v41 = vsel %vm7655_vm8, %v7591_v39, 1e+30  ;;  %v3492_v10 = vpack.i.bf16 %v1902_v62, %v1899_v20  ;;  %vm7657_vm1 = vcmp.gt.f32.partialorder %v7656_v0, 0.0  ;;  %v7670_v49 = vld [vmem:[#allocation152_spill] sm:$0xff] }
 0x3b0   : > { %v6161_v13 = vsel %vm7657_vm1, %v7594_v43, 1e+30  ;;  %vm7659_vm3 = vcmp.gt.f32.partialorder %v7658_v6, 0.0  ;;  %v2032_v48 = vsel %vm195_vm0, %v1904_v58, inf  ;;  %vm7661_vm5 = vcmp.gt.f32.partialorder %v7660_v27, 0.0  ;;  %v7672_v54 = vld [vmem:[#allocation136_spill] sm:$0xff] }
 0x3b1   : > { %v6166_v55 = vsel %vm7659_vm3, %v7446_v51, 1e+30  ;;  %v6172_v28 = vsel %vm7661_vm5, %v7449_v37, 1e+30  ;;  %vm7663_vm6 = vcmp.gt.f32.partialorder %v7662_v1, 0.0  ;;  %vm7665_vm8 = vcmp.gt.f32.partialorder %v7664_v30, 0.0  ;;  %3493 = vrot.lane.b32.xlu1 %v3492_v10, %s3555_s28 }
 0x3b2   : > { %v6177_v20 = vsel %vm7663_vm6, %v7591_v39, 1e+30  ;;  %v6182_v12 = vsel %vm7665_vm8, %v7594_v43, 1e+30  ;;  %vm7667_vm1 = vcmp.gt.f32.partialorder %v7666_v2, 0.0  ;;  %vm7669_vm3 = vcmp.gt.f32.partialorder %v7668_v42, 0.0 }
 0x3b3   : > { %v6188_v58 = vsel %vm7667_vm1, %v7446_v51, 1e+30  ;;  %v6193_v46 = vsel %vm7669_vm3, %v7449_v37, 1e+30  ;;  %vm7671_vm5 = vcmp.gt.f32.partialorder %v7670_v49, 0.0  ;;  %vm7673_vm6 = vcmp.gt.f32.partialorder %v7672_v54, 0.0 }
 0x3b4   : > { %v6198_v14 = vsel %vm7671_vm5, %v7591_v39, 1e+30  ;;  %v6203_v35 = vsel %vm7673_vm6, %v7594_v43, 1e+30  ;;  %v7674_v50 = vld [vmem:[#allocation154_spill] sm:$0xff]  ;;  %v7676_v36 = vld [vmem:[#allocation137_spill] sm:$0xff] }
 0x3b5   : > { %vm7675_vm8 = vcmp.gt.f32.partialorder %v7674_v50, 0.0  ;;  %vm7677_vm1 = vcmp.gt.f32.partialorder %v7676_v36, 0.0  ;;  %v7678_v33 = vld [vmem:[#allocation156_spill] sm:$0xff]  ;;  %v7680_v10 = vld [vmem:[#allocation138_spill] sm:$0xff]  ;;  %v7682_v6 = vld [vmem:[#allocation157_spill] sm:$0xff] }
 0x3b6   : > { %v6208_v7 = vsel %vm7675_vm8, %v7446_v51, 1e+30  ;;  %v6213_v62 = vsel %vm7677_vm1, %v7449_v37, 1e+30  ;;  %vm7679_vm3 = vcmp.gt.f32.partialorder %v7678_v33, 0.0  ;;  %vm7681_vm5 = vcmp.gt.f32.partialorder %v7680_v10, 0.0 }
 0x3b7   : > { %v6218_v59 = vsel %vm7679_vm3, %v7591_v39, 1e+30  ;;  %v6223_v0 = vsel %vm7681_vm5, %v7594_v43, 1e+30  ;;  %vm7683_vm6 = vcmp.gt.f32.partialorder %v7682_v6, 0.0  ;;  %v7684_v1 = vld [vmem:[#allocation139_spill] sm:$0xff] }
 0x3b8   : > { %v6228_v27 = vsel %vm7683_vm6, %v7446_v51, 1e+30  ;;  %vm7685_vm8 = vcmp.gt.f32.partialorder %v7684_v1, 0.0  ;;  %v7686_v2 = vld [vmem:[#allocation158_spill] sm:$0xff]  ;;  %v7688_v49 = vld [vmem:[#allocation140_spill] sm:$0xff]  ;;  %v7690_v50 = vld [vmem:[#allocation159_spill] sm:$0xff] }
 0x3b9   : > { %v6233_v30 = vsel %vm7685_vm8, %v7449_v37, 1e+30  ;;  %vm7687_vm1 = vcmp.gt.f32.partialorder %v7686_v2, 0.0  ;;  %vm7689_vm3 = vcmp.gt.f32.partialorder %v7688_v49, 0.0  ;;  %vm7691_vm5 = vcmp.gt.f32.partialorder %v7690_v50, 0.0  ;;  %v7692_v33 = vld [vmem:[#allocation141_spill] sm:$0xff] }
 0x3ba   : > { %v6238_v42 = vsel %vm7687_vm1, %v7591_v39, 1e+30  ;;  %v6243_v54 = vsel %vm7689_vm3, %v7594_v43, 1e+30  ;;  %v6248_v36 = vsel %vm7691_vm5, %v7446_v51, 1e+30 }
 0x3bb   : > { %vm7693_vm6 = vcmp.gt.f32.partialorder %v7692_v33, 0.0  ;;  %v7694_v6 = vld [vmem:[#allocation160_spill] sm:$0xff]  ;;  %v7696_v2 = vld [vmem:[#allocation142_spill] sm:$0xff]  ;;  %vm7700_vm3 = vcmp.gt.f32.partialorder %v7699_v31, 0.0  ;;  %vm7703_vm5 = vcmp.gt.f32.partialorder %v7702_v22, 0.0  ;;  %v7708_v25 = vld [vmem:[#allocation145_spill] sm:$0xff] }
 0x3bc   : > { %v6253_v10 = vsel %vm7693_vm6, %v7449_v37, 1e+30  ;;  %vm7695_vm8 = vcmp.gt.f32.partialorder %v7694_v6, 0.0  ;;  %vm7697_vm1 = vcmp.gt.f32.partialorder %v7696_v2, 0.0  ;;  %v6268_v50 = vsel %vm7700_vm3, %v7446_v51, 1e+30 }
 0x3bd   : > { %v6258_v1 = vsel %vm7695_vm8, %v7591_v39, 1e+30  ;;  %v6263_v49 = vsel %vm7697_vm1, %v7594_v43, 1e+30  ;;  %7701 = vst [vmem:[#allocation172_spill] sm:$0xff] %v6268_v50  ;;  %v7705_v16 = vld [vmem:[#allocation162_spill] sm:$0xff]  ;;  %v2033_v50 = vmin.f32 %v2031_v63, %v2032_v48 }
 0x3be   : > { %7698 = vst [vmem:[#allocation168_spill] sm:$0xff] %v6263_v49  ;;  %v6273_v33 = vsel %vm7703_vm5, %v7449_v37, 1e+30  ;;  %vm7706_vm6 = vcmp.gt.f32.partialorder %v7705_v16, 0.0  ;;  %vm7709_vm8 = vcmp.gt.f32.partialorder %v7708_v25, 0.0  ;;  %v7711_v49 = vld [vmem:[#allocation163_spill] sm:$0xff] }
 0x3bf   : > { %7704 = vst [vmem:[#allocation173_spill] sm:$0xff] %v6273_v33  ;;  %v6278_v6 = vsel %vm7706_vm6, %v7591_v39, 1e+30  ;;  %v6283_v2 = vsel %vm7709_vm8, %v7594_v43, 1e+30  ;;  %vm7712_vm1 = vcmp.gt.f32.partialorder %v7711_v49, 0.0 }
 0x3c0   : > { %7707 = vst [vmem:[#allocation174_spill] sm:$0xff] %v6278_v6  ;;  %7710 = vst [vmem:[#allocation175_spill] sm:$0xff] %v6283_v2  ;;  %v6288_v31 = vsel %vm7712_vm1, %v7446_v51, 1e+30  ;;  %v7714_v22 = vld [vmem:[#allocation147_spill] sm:$0xff]  ;;  %v7716_v16 = vld [vmem:[#allocation164_spill] sm:$0xff] }
 0x3c1   : > { %7713 = vst [vmem:[#allocation176_spill] sm:$0xff] %v6288_v31  ;;  %vm7715_vm3 = vcmp.gt.f32.partialorder %v7714_v22, 0.0  ;;  %vm7717_vm5 = vcmp.gt.f32.partialorder %v7716_v16, 0.0  ;;  %v7719_v25 = vld [vmem:[#allocation149_spill] sm:$0xff]  ;;  %v7725_v63 = vld [vmem:[#allocation151_spill] sm:$0xff]  ;;  %v7728_v22 = vld [vmem:[#allocation166_spill] sm:$0xff] }
 0x3c2   : > { %v6293_v33 = vsel %vm7715_vm3, %v7449_v37, 1e+30  ;;  %v6298_v6 = vsel %vm7717_vm5, %v7591_v39, 1e+30  ;;  %vm7720_vm6 = vcmp.gt.f32.partialorder %v7719_v25, 0.0  ;;  %v7722_v49 = vld [vmem:[#allocation165_spill] sm:$0xff] }
 0x3c3   : > { %7718 = vst [vmem:[#allocation177_spill] sm:$0xff] %v6298_v6  ;;  %v6303_v2 = vsel %vm7720_vm6, %v7594_v43, 1e+30  ;;  %vm7723_vm8 = vcmp.gt.f32.partialorder %v7722_v49, 0.0  ;;  %vm7726_vm1 = vcmp.gt.f32.partialorder %v7725_v63, 0.0  ;;  %vm7729_vm3 = vcmp.gt.f32.partialorder %v7728_v22, 0.0 }
 0x3c4   : > { %7721 = vst [vmem:[#allocation178_spill] sm:$0xff] %v6303_v2  ;;  %v6308_v31 = vsel %vm7723_vm8, %v7446_v51, 1e+30  ;;  %v6313_v48 = vsel %vm7726_vm1, %v7449_v37, 1e+30  ;;  %v2034_v25 = vsel %vm195_vm0, %v6015_v34, inf }
 0x3c5   : > { %7724 = vst [vmem:[#allocation179_spill] sm:$0xff] %v6308_v31  ;;  %7727 = vst [vmem:[#allocation171_spill] sm:$0xff] %v6313_v48  ;;  %v6318_v16 = vsel %vm7729_vm3, %v7591_v39, 1e+30  ;;  %v2036_v2 = vsel %vm195_vm0, %v6020_v52, inf  ;;  %v2044_v49 = vsel %vm195_vm0, %v6026_v18, inf  ;;  %v2035_v63 = vmin.f32 %v2033_v50, %v2034_v25 }
 0x3c6   : > { %v2045_v31 = vsel %vm195_vm0, %v6034_v21, inf  ;;  %v2047_v48 = vsel %vm195_vm0, %v6039_v4, inf  ;;  %v2049_v22 = vsel %vm195_vm0, %v6044_v44, inf  ;;  %v2057_v34 = vsel %vm195_vm0, %v6049_v47, inf }
 0x3c7   : > { %v2046_v6 = vmin.f32 %v2044_v49, %v2045_v31  ;;  %v2058_v52 = vsel %vm195_vm0, %v6054_v56, inf  ;;  %v2060_v18 = vsel %vm195_vm0, %v6059_v57, inf  ;;  %v2062_v21 = vsel %vm195_vm0, %v6064_v8, inf }
 0x3c8   : > { %v2037_v50 = vmin.f32 %v2035_v63, %v2036_v2  ;;  %v2059_v25 = vmin.f32 %v2057_v34, %v2058_v52  ;;  %v2070_v4 = vsel %vm195_vm0, %v6069_v15, inf  ;;  %v2071_v44 = vsel %vm195_vm0, %v6076_v53, inf }
 0x3c9   : > { %v2048_v31 = vmin.f32 %v2046_v6, %v2047_v48  ;;  %v2073_v47 = vsel %vm195_vm0, %v6081_v40, inf  ;;  %v2075_v56 = vsel %vm195_vm0, %v6087_v61, inf  ;;  %v2083_v57 = vsel %vm195_vm0, %v6092_v9, inf }
 0x3ca   : > { %v2038_v49 = vrot.slane %v2037_v50, 4  ;;  %v2061_v2 = vmin.f32 %v2059_v25, %v2060_v18  ;;  %v2072_v6 = vmin.f32 %v2070_v4, %v2071_v44  ;;  %v2084_v48 = vsel %vm195_vm0, %v6097_v3, inf }
 0x3cb   : > { %v2050_v8 = vmin.f32 %v2048_v31, %v2049_v22  ;;  %v2086_v15 = vsel %vm195_vm0, %v6102_v45, inf  ;;  %v2088_v53 = vsel %vm195_vm0, %v6107_v17, inf  ;;  %v2096_v40 = vsel %vm195_vm0, %v6112_v32, inf }
 0x3cc   : > { %v2039_v61 = vmin.f32 %v2037_v50, %v2038_v49  ;;  %v2063_v34 = vmin.f32 %v2061_v2, %v2062_v21  ;;  %v2074_v9 = vmin.f32 %v2072_v6, %v2073_v47  ;;  %v2085_v52 = vmin.f32 %v2083_v57, %v2084_v48 }
 0x3cd   : > { %v2051_v63 = vrot.slane %v2050_v8, 4  ;;  %v2097_v22 = vsel %vm195_vm0, %v6117_v19, inf  ;;  %v2099_v3 = vsel %vm195_vm0, %v6122_v5, inf  ;;  %v2101_v45 = vsel %vm195_vm0, %v6127_v38, inf }
 0x3ce   : > { %v2040_v18 = vrot.slane %v2039_v61, 2  ;;  %v2064_v17 = vrot.slane %v2063_v34, 4  ;;  %v2076_v25 = vmin.f32 %v2074_v9, %v2075_v56  ;;  %v2087_v4 = vmin.f32 %v2085_v52, %v2086_v15  ;;  %v7730_v56 = vld [vmem:[#allocation153_spill] sm:$0xff] }
 0x3cf   : > { %v2052_v31 = vmin.f32 %v2050_v8, %v2051_v63  ;;  %v2098_v32 = vmin.f32 %v2096_v40, %v2097_v22  ;;  %v2109_v21 = vsel %vm195_vm0, %v6133_v26, inf  ;;  %v2110_v50 = vsel %vm195_vm0, %v6138_v60, inf }
 0x3d0   : > { %v2041_v44 = vmin.f32 %v2039_v61, %v2040_v18  ;;  %v2065_v47 = vmin.f32 %v2063_v34, %v2064_v17  ;;  %v2077_v57 = vrot.slane %v2076_v25, 4  ;;  %v2089_v5 = vmin.f32 %v2087_v4, %v2088_v53 }
 0x3d1   : > { %v2053_v19 = vrot.slane %v2052_v31, 2  ;;  %v2100_v49 = vmin.f32 %v2098_v32, %v2099_v3  ;;  %v2111_v2 = vmin.f32 %v2109_v21, %v2110_v50  ;;  %v2112_v38 = vsel %vm195_vm0, %v6143_v29, inf }
 0x3d2   : > { %vm7731_vm5 = vcmp.gt.f32.partialorder %v7730_v56, 0.0  ;;  %v2066_v26 = vrot.slane %v2065_v47, 2  ;;  %v2078_v48 = vmin.f32 %v2076_v25, %v2077_v57  ;;  %v2090_v15 = vrot.slane %v2089_v5, 4 }
 0x3d3   : > { %v6373_v8 = vsel %vm7731_vm5, %v7594_v43, 1e+30  ;;  %v2054_v6 = vmin.f32 %v2052_v31, %v2053_v19  ;;  %v2102_v60 = vmin.f32 %v2100_v49, %v2101_v45  ;;  %v2113_v40 = vmin.f32 %v2111_v2, %v2112_v38 }
 0x3d4   : > { %v2114_v61 = vsel %vm195_vm0, %v6150_v23, inf  ;;  %vm7732_vm6 = vcmp.gt.f32.partialorder %v7578_v11, 0.0  ;;  %v2042_v29 = vrot.slane %v2041_v44, 1  ;;  %v2067_v63 = vmin.f32 %v2065_v47, %v2066_v26  ;;  %v2901_v11 = vld [vmem:[%s6704_s13 + $0x18] sm:$0xff] (%p1091_p0) }
 0x3d5   : > { %v6380_v53 = vsel %vm7732_vm6, %v7446_v51, 1e+30  ;;  %v2079_v34 = vrot.slane %v2078_v48, 2  ;;  %v2091_v9 = vmin.f32 %v2089_v5, %v2090_v15  ;;  %v2103_v52 = vrot.slane %v2102_v60, 4 }
 0x3d6   : > { %v2115_v22 = vmin.f32 %v2113_v40, %v2114_v61  ;;  %v2122_v3 = vsel %vm195_vm0, %v6155_v41, inf  ;;  %vm7733_vm8 = vcmp.gt.f32.partialorder %v7580_v24, 0.0  ;;  %v2055_v23 = vrot.slane %v2054_v6, 1 }
 0x3d7   : > { %v6387_v45 = vsel %vm7733_vm8, %v7449_v37, 1e+30  ;;  %v2080_v18 = vmin.f32 %v2078_v48, %v2079_v34  ;;  %v2123_v31 = vsel %vm195_vm0, %v6161_v13, inf  ;;  %v2092_v17 = vrot.slane %v2091_v9, 2 }
 0x3d8   : > { %v2104_v25 = vmin.f32 %v2102_v60, %v2103_v52  ;;  %v2116_v4 = vrot.slane %v2115_v22, 4  ;;  %v2124_v32 = vmin.f32 %v2122_v3, %v2123_v31  ;;  %v6391_v21 = vmin.f32 %v2041_v44, %v2042_v29 }
 0x3d9   : > { %v2068_v50 = vrot.slane %v2067_v63, 1  ;;  %v2125_v41 = vsel %vm195_vm0, %v6166_v55, inf  ;;  %v2127_v19 = vsel %vm195_vm0, %v6172_v28, inf  ;;  %v2093_v47 = vmin.f32 %v2091_v9, %v2092_v17 }
 0x3da   : > { %v2105_v57 = vrot.slane %v2104_v25, 2  ;;  %v2117_v5 = vmin.f32 %v2115_v22, %v2116_v4  ;;  %v2126_v49 = vmin.f32 %v2124_v32, %v2125_v41  ;;  %v6397_v2 = vmin.f32 %v2054_v6, %v2055_v23 }
 0x3db   : > { %v2081_v13 = vrot.slane %v2080_v18, 1  ;;  %v2343_v38 = vsel %vm195_vm0, %v6177_v20, inf  ;;  %v2344_v44 = vsel %vm195_vm0, %v6182_v12, inf  ;;  %v2094_v56 = vrot.slane %v2093_v47, 1 }
 0x3dc   : > { %v2106_v26 = vmin.f32 %v2104_v25, %v2105_v57  ;;  %v2128_v48 = vmin.f32 %v2126_v49, %v2127_v19  ;;  %v2346_v55 = vsel %vm195_vm0, %v6188_v58, inf  ;;  %v6405_v28 = vmin.f32 %v2067_v63, %v2068_v50  ;;  %v7734_v49 = vld [vmem:[#allocation168_spill] sm:$0xff] }
 0x3dd   : > { %v2345_v15 = vmin.f32 %v2343_v38, %v2344_v44  ;;  %v2356_v6 = vsel %vm195_vm0, %v6198_v14, inf  ;;  %v2357_v60 = vsel %vm195_vm0, %v6203_v35, inf  ;;  %v2118_v20 = vrot.slane %v2117_v5, 2 }
 0x3de   : > { %v2107_v40 = vrot.slane %v2106_v26, 1  ;;  %v2129_v61 = vrot.slane %v2128_v48, 4  ;;  %v2348_v12 = vsel %vm195_vm0, %v6193_v46, inf  ;;  %v6413_v29 = vmin.f32 %v2080_v18, %v2081_v13 }
 0x3df   : > { %v2347_v34 = vmin.f32 %v2345_v15, %v2346_v55  ;;  %v2358_v9 = vmin.f32 %v2356_v6, %v2357_v60  ;;  %v2359_v58 = vsel %vm195_vm0, %v6208_v7, inf  ;;  %v6417_v63 = vmin.f32 %v2093_v47, %v2094_v56  ;;  %v7735_v56 = vld [vmem:[#allocation172_spill] sm:$0xff]  ;;  %v7736_v55 = vld [vmem:[#allocation173_spill] sm:$0xff] }
 0x3e0   : > { %v2130_v52 = vmin.f32 %v2128_v48, %v2129_v61  ;;  %v2361_v14 = vsel %vm195_vm0, %v6213_v62, inf  ;;  %v2369_v35 = vsel %vm195_vm0, %v6218_v59, inf  ;;  %v2370_v46 = vsel %vm195_vm0, %v6223_v0, inf }
 0x3e1   : > { %v2349_v22 = vmin.f32 %v2347_v34, %v2348_v12  ;;  %v2360_v3 = vmin.f32 %v2358_v9, %v2359_v58  ;;  %v2372_v23 = vsel %vm195_vm0, %v6228_v27, inf  ;;  %v6427_v18 = vmin.f32 %v2106_v26, %v2107_v40  ;;  %v7737_v40 = vld [vmem:[#allocation174_spill] sm:$0xff]  ;;  %v7738_v34 = vld [vmem:[#allocation175_spill] sm:$0xff]  ;;  %v7739_v58 = vld [vmem:[#allocation176_spill] sm:$0xff] }
 0x3e2   : > { %v6429_v7 = vmin.f32 %v2117_v5, %v2118_v20  ;;  %v2371_v31 = vmin.f32 %v2369_v35, %v2370_v46  ;;  %v2374_v17 = vsel %vm195_vm0, %v6233_v30, inf  ;;  %v2382_v59 = vsel %vm195_vm0, %v6238_v42, inf }
 0x3e3   : > { %v2350_v62 = vrot.slane %v2349_v22, 4  ;;  %v2362_v25 = vmin.f32 %v2360_v3, %v2361_v14  ;;  %v2383_v4 = vsel %vm195_vm0, %v6243_v54, inf  ;;  %v2131_v0 = vrot.slane %v2130_v52, 2 }
 0x3e4   : > { %v2373_v32 = vmin.f32 %v2371_v31, %v2372_v23  ;;  %v2384_v50 = vmin.f32 %v2382_v59, %v2383_v4  ;;  %v2385_v27 = vsel %vm195_vm0, %v6248_v36, inf  ;;  %v2387_v47 = vsel %vm195_vm0, %v6253_v10, inf }
 0x3e5   : > { %v2351_v41 = vmin.f32 %v2349_v22, %v2350_v62  ;;  %v2363_v19 = vrot.slane %v2362_v25, 4  ;;  %v2395_v30 = vsel %vm195_vm0, %v6258_v1, inf  ;;  %v2120_v57 = vrot.slane %v6429_v7, 1 }
 0x3e6   : > { %v2375_v42 = vmin.f32 %v2373_v32, %v2374_v17  ;;  %v2386_v5 = vmin.f32 %v2384_v50, %v2385_v27  ;;  %v2396_v54 = vsel %vm195_vm0, %v7734_v49, inf  ;;  %v2398_v36 = vsel %vm195_vm0, %v7735_v56, inf  ;;  %v7740_v17 = vld [vmem:[#allocation177_spill] sm:$0xff]  ;;  %v7741_v27 = vld [vmem:[#allocation178_spill] sm:$0xff] }
 0x3e7   : > { %v2352_v13 = vrot.slane %v2351_v41, 2  ;;  %v2364_v38 = vmin.f32 %v2362_v25, %v2363_v19  ;;  %v2397_v44 = vmin.f32 %v2395_v30, %v2396_v54  ;;  %v6448_v26 = vmin.f32 %v2130_v52, %v2131_v0  ;;  %v7742_v19 = vld [vmem:[#allocation179_spill] sm:$0xff] }
 0x3e8   : > { %v2376_v48 = vrot.slane %v2375_v42, 4  ;;  %v2388_v10 = vmin.f32 %v2386_v5, %v2387_v47  ;;  %v2400_v1 = vsel %vm195_vm0, %v7736_v55, inf  ;;  %v2408_v20 = vsel %vm195_vm0, %v7737_v40, inf }
 0x3e9   : > { %v2353_v15 = vmin.f32 %v2351_v41, %v2352_v13  ;;  %v2365_v6 = vrot.slane %v2364_v38, 2  ;;  %v2399_v60 = vmin.f32 %v2397_v44, %v2398_v36  ;;  %v2409_v9 = vsel %vm195_vm0, %v7738_v34, inf  ;;  %v7743_v13 = vld [vmem:[#allocation171_spill] sm:$0xff] }
 0x3ea   : > { %v2377_v61 = vmin.f32 %v2375_v42, %v2376_v48  ;;  %v2389_v12 = vrot.slane %v2388_v10, 4  ;;  %v2411_v52 = vsel %vm195_vm0, %v7739_v58, inf  ;;  %v2410_v3 = vmin.f32 %v2408_v20, %v2409_v9 }
 0x3eb   : > { %v2354_v14 = vrot.slane %v2353_v15, 1  ;;  %v2366_v35 = vmin.f32 %v2364_v38, %v2365_v6  ;;  %v2401_v22 = vmin.f32 %v2399_v60, %v2400_v1  ;;  %v2413_v31 = vsel %vm195_vm0, %v6293_v33, inf }
 0x3ec   : > { %v2378_v46 = vrot.slane %v2377_v61, 2  ;;  %v2390_v23 = vmin.f32 %v2388_v10, %v2389_v12  ;;  %v2421_v62 = vsel %vm195_vm0, %v7740_v17, inf  ;;  %v2412_v0 = vmin.f32 %v2410_v3, %v2411_v52 }
 0x3ed   : > { %v2355_v25 = vmin.f32 %v2353_v15, %v2354_v14  ;;  %v2367_v59 = vrot.slane %v2366_v35, 1  ;;  %v2402_v4 = vrot.slane %v2401_v22, 4  ;;  %v2422_v41 = vsel %vm195_vm0, %v7741_v27, inf }
 0x3ee   : > { %v2379_v32 = vmin.f32 %v2377_v61, %v2378_v46  ;;  %v2391_v50 = vrot.slane %v2390_v23, 2  ;;  %v2424_v47 = vsel %vm195_vm0, %v7742_v19, inf  ;;  %v2414_v5 = vmin.f32 %v2412_v0, %v2413_v31 }
 0x3ef   : > { %v2368_v30 = vmin.f32 %v2366_v35, %v2367_v59  ;;  %v2403_v42 = vmin.f32 %v2401_v22, %v2402_v4  ;;  %v2423_v49 = vmin.f32 %v2421_v62, %v2422_v41  ;;  %v2426_v38 = vsel %vm195_vm0, %v7743_v13, inf  ;;  %v7744_v41 = vld [vmem:[#allocation146_spill] sm:$0xff] }
 0x3f0   : > { %v2380_v33 = vrot.slane %v2379_v32, 1  ;;  %v2392_v54 = vmin.f32 %v2390_v23, %v2391_v50  ;;  %v2434_v44 = vsel %vm195_vm0, %v6318_v16, inf  ;;  %v2415_v36 = vrot.slane %v2414_v5, 4 }
 0x3f1   : > { %v2404_v56 = vrot.slane %v2403_v42, 2  ;;  %v2425_v48 = vmin.f32 %v2423_v49, %v2424_v47  ;;  %v2435_v10 = vsel %vm195_vm0, %v6373_v8, inf  ;;  %v2437_v6 = vsel %vm195_vm0, %v6380_v53, inf }
 0x3f2   : > { %v2381_v55 = vmin.f32 %v2379_v32, %v2380_v33  ;;  %v2393_v1 = vrot.slane %v2392_v54, 1  ;;  %v2436_v15 = vmin.f32 %v2434_v44, %v2435_v10  ;;  %v2416_v40 = vmin.f32 %v2414_v5, %v2415_v36  ;;  %v7746_v5 = vld [vmem:[#allocation148_spill] sm:$0xff] }
 0x3f3   : > { %v2405_v60 = vmin.f32 %v2403_v42, %v2404_v56  ;;  %v2427_v20 = vmin.f32 %v2425_v48, %v2426_v38  ;;  %v2439_v61 = vsel %vm195_vm0, %v6387_v45, inf  ;;  %v2479_v34 = vsel %vm1860_vm10, %v6397_v2, %v6391_v21  ;;  %v7747_v38 = vld [vmem:[#allocation133_spill] sm:$0xff] }
 0x3f4   : > { %v2394_v12 = vmin.f32 %v2392_v54, %v2393_v1  ;;  %v2438_v16 = vmin.f32 %v2436_v15, %v2437_v6  ;;  %v2500_v8 = vsel %vm1860_vm10, %v2368_v30, %v2355_v25  ;;  %v2417_v58 = vrot.slane %v2416_v40, 2  ;;  %v7745_v30 = vld [vmem:[#allocation144_spill] sm:$0xff] }
 0x3f5   : > { %v2406_v9 = vrot.slane %v2405_v60, 1  ;;  %v2428_v52 = vrot.slane %v2427_v20, 4  ;;  %v2480_v53 = vsel %vm1862_vm7, %v6405_v28, %v2479_v34  ;;  %v2133_v14 = vrot.slane %v6448_v26, 1  ;;  %v2600_v34 = vld [vmem:[%s6518_s30 + $0x8] sm:$0xff] }
 0x3f6   : > { %v2440_v35 = vmin.f32 %v2438_v16, %v2439_v61  ;;  %v2481_v45 = vsel %vm1864_vm9, %v6413_v29, %v2480_v53  ;;  %v2501_v22 = vsel %vm1862_vm7, %v2381_v55, %v2500_v8  ;;  %v2418_v46 = vmin.f32 %v2416_v40, %v2417_v58  ;;  %v7749_v40 = vld [vmem:[#allocation9_spill] sm:$0xff]  ;;  %v2570_v61 = vpop.permute.xlu1 %2569  ;;  %v2599_v16 = vld [vmem:[%s6518_s30] sm:$0xff] }
 0x3f7   : > { %v2407_v3 = vmin.f32 %v2405_v60, %v2406_v9  ;;  %v2429_v23 = vmin.f32 %v2427_v20, %v2428_v52  ;;  %v2482_v21 = vsel %vm1866_vm11, %v6417_v63, %v2481_v45  ;;  %v2121_v2 = vmin.f32 %v6429_v7, %v2120_v57  ;;  %v6497_v7 = vpop.f32.mrb[2].mxu0  ;;  %v2601_v8 = vld [vmem:[%s6518_s30 + $0x10] sm:$0xff] }
 0x3f8   : > { %v2441_v31 = vrot.slane %v2440_v35, 4  ;;  %v2502_v28 = vsel %vm1864_vm9, %v2394_v12, %v2501_v22  ;;  %v2419_v17 = vrot.slane %v2418_v46, 1  ;;  %v2483_v29 = vsel %vm1868_vm12, %v6427_v18, %v2482_v21  ;;  %v6499_v27 = vpop.f32.mrb[3].mxu0  ;;  %v7751_v21 = vld [vmem:[#allocation10_spill] sm:$0xff] }
 0x3f9   : > { %v2430_v62 = vrot.slane %v2429_v23, 2  ;;  %v2134_v59 = vmin.f32 %v6448_v26, %v2133_v14  ;;  %v2503_v32 = vsel %vm1866_vm11, %v2407_v3, %v2502_v28  ;;  %v2484_v50 = vsel %vm1870_vm2, %v2121_v2, %v2483_v29  ;;  %v3266_v26 = vpop.f32.mrb[4].mxu0  ;;  %v2602_v14 = vld [vmem:[%s6518_s30 + $0x18] sm:$0xff] }
 0x3fa   : > { %v2442_v25 = vmin.f32 %v2440_v35, %v2441_v31  ;;  %v2420_v4 = vmin.f32 %v2418_v46, %v2419_v17  ;;  %v1265_v19 = vmul.f32 %v7594_v43, %v7744_v41  ;;  %v1264_v42 = vmul.f32 %v7591_v39, %v7745_v30  ;;  %v1221_v13 = vpop.f32.mrb[5].mxu0  ;;  %v2608_v41 = vld [vmem:[%s6518_s30 + $0x48] sm:$0xff] }
 0x3fb   : > { %v2431_v0 = vmin.f32 %v2429_v23, %v2430_v62  ;;  %v1267_v49 = vmul.f32 %v7449_v37, %v7746_v5  ;;  %v2485_v54 = vsel %vm1872_vm4, %v2134_v59, %v2484_v50  ;;  %v1266_v44 = vmul.f32 %v7446_v51, %v7747_v38  ;;  %v3269_v10 = vpop.f32.mrb[6].mxu0  ;;  %v2604_v59 = vld [vmem:[%s6518_s30 + $0x28] sm:$0xff]  ;;  %v2613_v38 = vld [vmem:[%s6518_s30 + $0x70] sm:$0xff] }
 0x3fc   : > { %v2443_v63 = vrot.slane %v2442_v25, 2  ;;  %v2504_v47 = vsel %vm1868_vm12, %v2420_v4, %v2503_v32  ;;  %v1269_v36 = vsub.f32 %v3266_v26, %v1265_v19  ;;  %v1268_v48 = vsub.f32 %v1221_v13, %v1264_v42  ;;  %v1231_v6 = vpop.f32.mrb[7].mxu0  ;;  %v2605_v32 = vld [vmem:[%s6518_s30 + $0x30] sm:$0xff]  ;;  %v2610_v26 = vld [vmem:[%s6518_s30 + $0x58] sm:$0xff] }
 0x3fd   : > { %v2432_v57 = vrot.slane %v2431_v0, 1  ;;  %v3557_v55 = vmov 0.0|0.0   ;;  %v1271_v15 = vsub.f32 %v3269_v10, %v1267_v49  ;;  %vm7750_vm10 = vcmp.gt.f32.partialorder %v7749_v40, 0.0  ;;  %v3272_v9 = vpop.f32.mrb[8].mxu0  ;;  %v7753_v19 = vld [vmem:[#allocation126_spill] sm:$0xff]  ;;  %v7754_v30 = vld [vmem:[#allocation129_spill] sm:$0xff] }
 0x3fe   : > { %v2444_v18 = vmin.f32 %v2442_v25, %v2443_v63  ;;  %3371 = vmatprep.subr.bf16.mxu1 %v3557_v55  ;;  %3318 = vmatprep.subr.bf16.mxu0 %v3557_v55  ;;  %v2511_v20 = vsel %vm7750_vm10, %v2485_v54, 0.0  ;;  %vm2583_vm7 = vcmask 523264   ;;  %v1270_v12 = vsub.f32 %v1231_v6, %v1266_v44  ;;  %v6526_v35 = vpop.f32.mrb[9].mxu0  ;;  %v2603_v25 = vld [vmem:[%s6518_s30 + $0x20] sm:$0xff]  ;;  %v2606_v63 = vld [vmem:[%s6518_s30 + $0x38] sm:$0xff]  ;;  %v2620_v40 = vld [vmem:[%s6518_s30 + $0xa8] sm:$0xff] }
 0x3ff   : > { %v2433_v33 = vmin.f32 %v2431_v0, %v2432_v57  ;;  %v1272_v58 = vand.u32 2147483647, %v1268_v48  ;;  %v1275_v52 = vand.u32 2147483647, %v1271_v15  ;;  %v3319_v53 = vpack.c.bf16 %v2600_v34, %v2599_v16  ;;  %v6530_v23 = vpop.f32.mrb[10].mxu0  ;;  %v2607_v57 = vld [vmem:[%s6518_s30 + $0x40] sm:$0xff]  ;;  %v2572_v34 = vpop.permute.xlu0 %2571 }
 0x400   : > { %v2445_v56 = vrot.slane %v2444_v18, 1  ;;  %v2594_v45 = vsel %vm195_vm0, %v3272_v9, %v2570_v61  ;;  %v1273_v3 = vand.u32 2147483647, %v1269_v36  ;;  %v1274_v46 = vand.u32 2147483647, %v1270_v12  ;;  %v6535_v17 = vpop.f32.mrb[11].mxu0 }
 0x401   : > { %v2505_v1 = vsel %vm1870_vm2, %v2433_v33, %v2504_v47  ;;  %3194 = vmatprep.mubr.msk.f32.mxu1 %vm2583_vm7, %v2594_v45  ;;  %vm7752_vm2 = vcmp.gt.f32.partialorder %v7751_v21, 0.0  ;;  %v3507_v31 = vpack.i.bf16 %v1275_v52, %v1272_v58  ;;  %3383 = vmatpush1.bf16.msra.mxu1 %v3319_v53  ;;  %v3322_v28 = vpack.c.bf16 %v2602_v14, %v2601_v8  ;;  %v2609_v47 = vld [vmem:[%s6518_s30 + $0x50] sm:$0xff]  ;;  %v7755_v42 = vld [vmem:[#allocation127_spill] sm:$0xff]  ;;  %v2612_v33 = vld [vmem:[%s6518_s30 + $0x68] sm:$0xff] }
 0x402   : > { %v2446_v60 = vmin.f32 %v2444_v18, %v2445_v56  ;;  %3320 = vmatpush1.bf16.msra.mxu0 %v3319_v53  ;;  %v3502_v29 = vpack.i.bf16 %v1274_v46, %v1273_v3  ;;  %3372 = vmatprep.subr.bf16.mxu1 %v3557_v55  ;;  %v3558_v4 = vmov 0   ;;  %v3325_v0 = vpack.c.bf16 %v2604_v59, %v2603_v25  ;;  %v2611_v49 = vld [vmem:[%s6518_s30 + $0x60] sm:$0xff]  ;;  %v2614_v44 = vld [vmem:[%s6518_s30 + $0x78] sm:$0xff]  ;;  %v2616_v48 = vld [vmem:[%s6518_s30 + $0x88] sm:$0xff] }
 0x403   : > { %3321 = vmatprep.subr.bf16.mxu0 %v3557_v55  ;;  %3512 = vset.pattern.permute.xlu0 %v3558_v4  ;;  %v3328_v50 = vpack.c.bf16 %v2606_v63, %v2605_v32  ;;  %v3331_v18 = vpack.c.bf16 %v2608_v41, %v2607_v57  ;;  %v3334_v5 = vpack.c.bf16 %v2610_v26, %v2609_v47  ;;  %v7756_v54 = vld [vmem:[#allocation128_spill] sm:$0xff]  ;;  %v2618_v15 = vld [vmem:[%s6518_s30 + $0x98] sm:$0xff]  ;;  %v2621_v61 = vld [vmem:[%s6518_s30 + $0xb0] sm:$0xff]  ;;  %v3484_v8 = vpop.permute.xlu0 %3483 }
 0x404   : > { %v2506_v22 = vsel %vm1872_vm4, %v2446_v60, %v2505_v1  ;;  %3513 = vset.pattern.permute.xlu1 %v3558_v4  ;;  %v3337_v13 = vpack.c.bf16 %v2612_v33, %v2611_v49  ;;  %v3340_v56 = vpack.c.bf16 %v2614_v44, %v2613_v38  ;;  %v2615_v36 = vld [vmem:[%s6518_s30 + $0x80] sm:$0xff]  ;;  %v2617_v1 = vld [vmem:[%s6518_s30 + $0x90] sm:$0xff]  ;;  %v2622_v12 = vld [vmem:[%s6518_s30 + $0xb8] sm:$0xff]  ;;  %v3485_v58 = vunpack.i.l.bf16 %v3484_v8 }
 0x405   : > { %v2514_v2 = vsel %vm7752_vm2, %v2506_v22, 0.0  ;;  %3503 = vrot.lane.b32.xlu1 %v3502_v29, %s3559_s20  ;;  %3384 = vmatpush1.bf16.msra.mxu1 %v3322_v28  ;;  %v3343_v10 = vpack.c.bf16 %v2616_v48, %v2615_v36  ;;  %v3346_v6 = vpack.c.bf16 %v2618_v15, %v2617_v1  ;;  %v2619_v60 = vld [vmem:[%s6518_s30 + $0xa0] sm:$0xff]  ;;  %v3352_v16 = vpack.c.bf16 %v2622_v12, %v2621_v61  ;;  %v7757_v52 = vld [vmem:[#allocation18_spill] sm:$0xff]  ;;  %v7765_v12 = vld [vmem:[#allocation17_spill] sm:$0xff] }
 0x406   : > { %v3497_v62 = vpack.i.bf16 %v2514_v2, %v2511_v20  ;;  %3323 = vmatpush1.bf16.msra.mxu0 %v3322_v28  ;;  %3373 = vmatprep.subr.bf16.mxu1 %v3557_v55  ;;  %v3349_v20 = vpack.c.bf16 %v2620_v40, %v2619_v60  ;;  %v7758_v53 = vld [vmem:[#allocation180_spill] sm:$0xff]  ;;  %v3486_v22 = vunpack.i.h.bf16 %v3484_v8  ;;  %vm2588_vm4 = vcmask 785408   ;;  %v7763_v48 = vld [vmem:[#allocation22_spill] sm:$0xff] }
 0x407   : > { %3324 = vmatprep.subr.bf16.mxu0 %v3557_v55  ;;  %v3489_v9 = vpop.permute.xlu0 %3488  ;;  %v1261_v14 = vmul.f32 %v7758_v53, %v7757_v52  ;;  %v7759_v46 = vld [vmem:[#allocation12_spill] sm:$0xff]  ;;  %v7767_v52 = vld [vmem:[#allocation30_spill] sm:$0xff] }
 0x408   : > { %3498 = vrot.lane.b32.xlu0 %v3497_v62, %s3556_s18  ;;  %v3490_v3 = vunpack.i.l.bf16 %v3489_v9  ;;  %v1262_v21 = vmul.f32 %v6499_v27, %v7759_v46  ;;  %v7761_v62 = vld [vmem:[#allocation169_spill] sm:$0xff]  ;;  %v3491_v59 = vunpack.i.h.bf16 %v3489_v9  ;;  %v7762_v4 = vld [vmem:[#allocation16_spill] sm:$0xff]  ;;  %v7770_v46 = vld [vmem:[#allocation27_spill] sm:$0xff] }
 0x409   : > { %2567 = vrot.lane.b32.xlu1 %v7591_v39, %s3555_s28  ;;  %3385 = vmatpush1.bf16.msra.mxu1 %v3325_v0  ;;  %v2580_v2 = vsel %vm195_vm0, %v1261_v14, %v3485_v58  ;;  %v7768_v14 = vld [vmem:[#allocation31_spill] sm:$0xff] }
 0x40a   : > { %3326 = vmatpush1.bf16.msra.mxu0 %v3325_v0  ;;  %3374 = vmatprep.subr.bf16.mxu1 %v3557_v55  ;;  %v1263_v0 = vmul.f32 %v6497_v7, %v7762_v4  ;;  %v2581_v32 = vsel %vm195_vm0, %v1262_v21, %v3486_v22  ;;  %v2585_v63 = vsel %vm2583_vm7, %v2580_v2, %v3490_v3  ;;  %v7769_v22 = vld [vmem:[#allocation15_spill] sm:$0xff] }
 0x40b   : > { %3327 = vmatprep.subr.bf16.mxu0 %v3557_v55 }
 0x40c   : > { %2573 = vrot.lane.b32.xlu0 %v7449_v37, %s3555_s28 }
 0x40d   : > { %3508 = vrot.lane.b32.xlu1 %v3507_v31, %s3559_s20  ;;  %3386 = vmatpush1.bf16.msra.mxu1 %v3328_v50 }
 0x40e   : > { %3329 = vmatpush1.bf16.msra.mxu0 %v3328_v50  ;;  %3375 = vmatprep.subr.bf16.mxu1 %v3557_v55 }
 0x40f   : > { %3330 = vmatprep.subr.bf16.mxu0 %v3557_v55 }
 0x410   : > { %2782 = vperm.xlu0 %3512, %v7753_v19   ;;  %v2595_v19 = vsel %vm195_vm0, %v6535_v17, %v2572_v34  ;;  %v7766_v34 = vld [vmem:[#allocation21_spill] sm:$0xff] }
 0x411   : > { %2787 = vperm.xlu1 %3513, %v7755_v42   ;;  %3387 = vmatpush1.bf16.msra.mxu1 %v3331_v18  ;;  %v2586_v42 = vsel %vm2583_vm7, %v2581_v32, %v3491_v59  ;;  %v3198_v32 = vld [vmem:[%s2804_s23] ss:$0 sm:$0xff] }
 0x412   : > { %3332 = vmatpush1.bf16.msra.mxu0 %v3331_v18  ;;  %3376 = vmatprep.subr.bf16.mxu1 %v3557_v55 }
 0x413   : > { %3333 = vmatprep.subr.bf16.mxu0 %v3557_v55 }
 0x414   : > { %2797 = vperm.xlu0 %3512, %v7754_v30  }
 0x415   : > { %2792 = vperm.xlu1 %3513, %v7756_v54   ;;  %3388 = vmatpush1.bf16.msra.mxu1 %v3334_v5 }
 0x416   : > { %3335 = vmatpush1.bf16.msra.mxu0 %v3334_v5  ;;  %3377 = vmatprep.subr.bf16.mxu1 %v3557_v55 }
 0x417   : > { %3336 = vmatprep.subr.bf16.mxu0 %v3557_v55 }
 0x419   : > { %3389 = vmatpush1.bf16.msra.mxu1 %v3337_v13 }
 0x41a   : > { %3338 = vmatpush1.bf16.msra.mxu0 %v3337_v13  ;;  %3378 = vmatprep.subr.bf16.mxu1 %v3557_v55 }
 0x41b   : > { %3339 = vmatprep.subr.bf16.mxu0 %v3557_v55 }
 0x41d   : > { %3390 = vmatpush1.bf16.msra.mxu1 %v3340_v56 }
 0x41e   : > { %3341 = vmatpush1.bf16.msra.mxu0 %v3340_v56  ;;  %3379 = vmatprep.subr.bf16.mxu1 %v3557_v55 }
 0x41f   : > { %3342 = vmatprep.subr.bf16.mxu0 %v3557_v55 }
 0x421   : > { %3391 = vmatpush1.bf16.msra.mxu1 %v3343_v10 }
 0x422   : > { %3344 = vmatpush1.bf16.msra.mxu0 %v3343_v10  ;;  %3380 = vmatprep.subr.bf16.mxu1 %v3557_v55 }
 0x423   : > { %3345 = vmatprep.subr.bf16.mxu0 %v3557_v55  ;;  %v3494_v45 = vpop.permute.xlu1 %3493 }
 0x424   : > { %v3496_v50 = vunpack.i.h.bf16 %v3494_v45  ;;  %v3495_v57 = vunpack.i.l.bf16 %v3494_v45 }
 0x425   : > { %3392 = vmatpush1.bf16.msra.mxu1 %v3346_v6 }
 0x426   : > { %3347 = vmatpush1.bf16.msra.mxu0 %v3346_v6  ;;  %3381 = vmatprep.subr.bf16.mxu1 %v3557_v55  ;;  %v2582_v17 = vsel %vm195_vm0, %v1263_v0, %v3496_v50  ;;  %v7764_v6 = vld [vmem:[#allocation34_spill] sm:$0xff] }
 0x427   : > { %3348 = vmatprep.subr.bf16.mxu0 %v3557_v55 }
 0x429   : > { %3393 = vmatpush1.bf16.msra.mxu1 %v3349_v20 }
 0x42a   : > { %3350 = vmatpush1.bf16.msra.mxu0 %v3349_v20  ;;  %3382 = vmatprep.subr.bf16.mxu1 %v3557_v55 }
 0x42b   : > { %3351 = vmatprep.subr.bf16.mxu0 %v3557_v55  ;;  %v7760_v55 = vld [vmem:[#allocation13_spill] sm:$0xff] }
 0x42c   : > { %v1260_v29 = vmul.f32 %v7761_v62, %v7760_v55 }
 0x42d   : > { %3394 = vmatpush1.bf16.msra.mxu1 %v3352_v16 }
 0x42e   : > { %3353 = vmatpush1.bf16.msra.mxu0 %v3352_v16  ;;  %v2579_v49 = vsel %vm195_vm0, %v1260_v29, %v3495_v57 }
 0x477   : > { %v3504_v28 = vpop.permute.xlu1 %3503 }
 0x478   : > { %v3505_v25 = vunpack.i.l.bf16 %v3504_v28  ;;  %v3506_v27 = vunpack.i.h.bf16 %v3504_v28 }
 0x47a   : > { %v3499_v31 = vpop.permute.xlu0 %3498  ;;  %v2590_v41 = vsel %vm2588_vm4, %v2585_v63, %v3505_v25  ;;  %v2591_v33 = vsel %vm2588_vm4, %v2586_v42, %v3506_v27  ;;  %v3197_v25 = vld [vmem:[%s2768_s6] ss:$0 sm:$0xff] }
 0x47b   : > { %v2568_v18 = vpop.permute.xlu1 %2567  ;;  %2705 = vmatmul.mubr.f32.vlgmr.msra.gmra.mrb[0].mxu1 %v2590_v41  ;;  %v3501_v7 = vunpack.i.h.bf16 %v3499_v31  ;;  %v3500_v30 = vunpack.i.l.bf16 %v3499_v31 }
 0x47c   : > { %v2593_v26 = vsel %vm195_vm0, %v6526_v35, %v2568_v18  ;;  %3195 = vmatprep.mubr.msk.f32.mxu1 %vm2583_vm7, %v2595_v19 }
 0x47d   : > { %3193 = vmatprep.mubr.msk.f32.mxu0 %vm2583_vm7, %v2593_v26  ;;  %v2584_v38 = vsel %vm2583_vm7, %v2579_v49, %v3500_v30  ;;  %v2587_v44 = vsel %vm2583_vm7, %v2582_v17, %v3501_v7 }
 0x47e   : > { %v2574_v47 = vpop.permute.xlu0 %2573 }
 0x47f   : > { %v2596_v5 = vsel %vm195_vm0, %v6530_v23, %v2574_v47  ;;  %v3509_v54 = vpop.permute.xlu1 %3508  ;;  %2710 = vmatmul.mubr.f32.gmra.mrb[2].mxu1 %v2591_v33 }
 0x480   : > { %v3511_v35 = vunpack.i.h.bf16 %v3509_v54  ;;  %v3510_v13 = vunpack.i.l.bf16 %v3509_v54  ;;  %3196 = vmatprep.mubr.msk.f32.mxu1 %vm2583_vm7, %v2596_v5 }
 0x482   : > { %v2589_v56 = vsel %vm2588_vm4, %v2584_v38, %v3510_v13  ;;  %v2592_v23 = vsel %vm2588_vm4, %v2587_v44, %v3511_v35 }
 0x483   : > { %2700 = vmatmul.mubr.f32.vlgmr.msra.gmra.mrb[12].mxu0 %v2589_v56  ;;  %2715 = vmatmul.mubr.f32.gmra.mrb[4].mxu1 %v2592_v23 }
 0x48f   : > { %v2783_v2 = vpop.permute.xlu0 %2782 }
 0x490   : > { %v2788_v28 = vpop.permute.xlu1 %2787 }
 0x493   : > { %v2798_v31 = vpop.permute.xlu0 %2797 }
 0x494   : > { %v2793_v29 = vpop.permute.xlu1 %2792 }
 0x54e   : > { %v2706_v36 = vpop.f32.mrb[0].mxu1 }
 0x54f   : > { %v2721_v10 = vmul.f32 %v2706_v36, %v7763_v48  ;;  %v2708_v1 = vpop.f32.mrb[1].mxu1  ;;  %v2745_v60 = vmul.f32 %v2706_v36, %v7764_v6 }
 0x551   : > { %2730 = vrot.lane.b32.xlu0 %v2721_v10, %s3559_s20 }
 0x552   : > { %v2711_v15 = vpop.f32.mrb[2].mxu1 }
 0x553   : > { %v2713_v40 = vpop.f32.mrb[3].mxu1  ;;  %v2722_v3 = vmul.f32 %v2711_v15, %v7769_v22  ;;  %v2746_v21 = vmul.f32 %v2711_v15, %v7770_v46 }
 0x555   : > { %2754 = vrot.lane.b32.xlu0 %v2745_v60, %s3556_s18 }
 0x556   : > { %v2701_v20 = vpop.f32.mrb[12].mxu0  ;;  %v2716_v61 = vpop.f32.mrb[4].mxu1 }
 0x557   : > { %v2720_v16 = vmul.f32 %v2701_v20, %v7765_v12  ;;  %v2723_v8 = vmul.f32 %v2716_v61, %v7766_v34  ;;  %v2703_v9 = vpop.f32.mrb[13].mxu0  ;;  %v2718_v58 = vpop.f32.mrb[5].mxu1  ;;  %v2744_v53 = vmul.f32 %v2701_v20, %v7767_v52  ;;  %v2747_v45 = vmul.f32 %v2716_v61, %v7768_v14  ;;  %v2900_v12 = vld [vmem:[%s6704_s13 + $0x10] sm:$0xff] (%p1091_p0)  ;;  %v2824_v34 = vld [vmem:[%s6703_s12] sm:$0xf] (%p1091_p0)  ;;  %v2984_v52 = vld [vmem:[%s6706_s15 + $0x8] sm:$0xff] (%p1091_p0) }
 0x558   :  { %v2983_v58 = vld [vmem:[%s6706_s15] sm:$0xff] (%p1091_p0) }
 0x559   : > { %2728 = vrot.lane.b32.xlu1 %v2720_v16, %s3559_s20  ;;  %2734 = vrot.lane.b32.xlu0 %v2723_v8, %s3559_s20  ;;  %v3364_v16 = vpack.c.bf16 (%p1091_p0), %v2901_v11, %v2900_v12  ;;  %v3200_v14 = vld [vmem:[%s6705_s14] ss:$0 sm:$0xff] (%p1091_p0) }
 0x55d   : > { %2752 = vrot.lane.b32.xlu1 %v2744_v53, %s3556_s18  ;;  %2758 = vrot.lane.b32.xlu0 %v2747_v45, %s3556_s18  ;;  %v3367_v53 = vpack.c.bf16 (%p1091_p0), %v2984_v52, %v2983_v58 }
 0x561   : > { %2732 = vrot.lane.b32.xlu1 %v2722_v3, %s3559_s20 }
 0x565   : > { %2756 = vrot.lane.b32.xlu1 %v2746_v21, %s3556_s18  ;;  %v3067_v21 = vld [vmem:[%s6708_s17] sm:$0xff] (%p1091_p0) }
 0x5c3   : > { %v2731_v55 = vpop.permute.xlu0 %2730 }
 0x5c4   : > { %v2741_v62 = vadd.f32 %v2731_v55, %v2706_v36 }
 0x5c7   : > { %v2755_v59 = vpop.permute.xlu0 %2754 }
 0x5c8   : > { %v2765_v4 = vadd.f32 %v2755_v59, %v2741_v62 }
 0x5ca   : > { %v2777_v0 = vadd.f32 %v3197_v25, %v2765_v4 }
 0x5cb   : > { %v2729_v63 = vpop.permute.xlu1 %2728  ;;  %v2735_v50 = vpop.permute.xlu0 %2734 }
 0x5cc   : > { %v2801_v57 = vmul.f32 %v2788_v28, %v2777_v0  ;;  %v2740_v41 = vadd.f32 %v2729_v63, %v2701_v20  ;;  %v2743_v19 = vadd.f32 %v2735_v50, %v2716_v61  ;;  %v3560_v20 = vmov (%p1091_p0), 0.0|0.0  }
 0x5cd   :  { %3354 = vmatprep.subr.bf16.mxu0 (%p1091_p0), %v3560_v20  ;;  %3360 = vmatprep.subr.bf16.mxu1 (%p1091_p0), %v3560_v20 }
 0x5ce   : > { %v2813_v27 = vadd.f32 %v3198_v32, %v2801_v57 }
 0x5cf   : > { %v2753_v18 = vpop.permute.xlu1 %2752  ;;  %v2759_v47 = vpop.permute.xlu0 %2758 }
 0x5d0   : > { %v2817_v26 = vmax.f32 %v2813_v27, 0.0  ;;  %v2764_v7 = vadd.f32 %v2753_v18, %v2740_v41  ;;  %v2767_v30 = vadd.f32 %v2759_v47, %v2743_v19 }
 0x5d2   : > { %v2821_v42 = vadd.f32 %v7594_v43, %v2817_v26   ;;  %v2776_v5 = vadd.f32 %v3197_v25, %v2764_v7  ;;  %v2779_v49 = vadd.f32 %v3197_v25, %v2767_v30 }
 0x5d3   : > { %v2733_v17 = vpop.permute.xlu1 %2732 }
 0x5d4   : > { %v2800_v33 = vmul.f32 %v2783_v2, %v2776_v5  ;;  %v2803_v54 = vmul.f32 %v2798_v31, %v2779_v49  ;;  %v2742_v38 = vadd.f32 %v2733_v17, %v2711_v15  ;;  %v7774_v26 = vmov %v2821_v42  ;;  %v2898_v15 = vld [vmem:[%s6704_s13] sm:$0xff] (%p1091_p0) }
 0x5d5   :  { %v3202_v2 = vld [vmem:[%s6707_s16] ss:$0 sm:$0xff] (%p1091_p0) }
 0x5d6   : > { %v2812_v35 = vadd.f32 %v3198_v32, %v2800_v33  ;;  %v2815_v13 = vadd.f32 %v3198_v32, %v2803_v54 }
 0x5d7   : > { %v2757_v44 = vpop.permute.xlu1 %2756 }
 0x5d8   : > { %v2816_v56 = vmax.f32 %v2812_v35, 0.0  ;;  %v2819_v23 = vmax.f32 %v2815_v13, 0.0  ;;  %v2766_v36 = vadd.f32 %v2757_v44, %v2742_v38 }
 0x5da   : > { %v2820_v48 = vadd.f32 %v7591_v39, %v2816_v56   ;;  %v2823_v10 = vadd.f32 %v7449_v37, %v2819_v23   ;;  %v2778_v1 = vadd.f32 %v3197_v25, %v2766_v36 }
 0x5dc   : > { %v2802_v6 = vmul.f32 %v2793_v29, %v2778_v1  ;;  %v7772_v38 = vmov %v2823_v10  ;;  %v7775_v9 = vmov %v2820_v48  ;;  %v3355_v37 = vpack.c.bf16 (%p1091_p0), %v2821_v42, %v2820_v48  ;;  %v3204_v29 = vld [vmem:[#allocation3] ss:$0 sm:$0xff] (%p1091_p0) }
 0x5de   : > { %v2814_v60 = vadd.f32 %v3198_v32, %v2802_v6  ;;  %1093 = sbr.rel (!%p1091_p0) target bundleno = 637 (0x27d), region = 106  ;;  %3356 = vmatpush3.bf16.msra.mxu0 (%p1091_p0), %v3355_v37 }
 0x5df   :  { %3357 = vmatprep.subr.bf16.mxu0 (%p1091_p0), %v3560_v20 }
 0x5e0   : > { %v2818_v43 = vmax.f32 %v2814_v60, 0.0 }
 0x5e2   : > { %v2822_v40 = vadd.f32 %v7446_v51, %v2818_v43   ;;  %v2899_v51 = vld [vmem:[%s6704_s13 + $0x8] sm:$0xff] (%p1091_p0) }
 0x5e3   :  { %v3361_v61 = vpack.c.bf16 (%p1091_p0), %v2899_v51, %v2898_v15 }
 0x5e4   : > { %v7773_v39 = vmov %v2822_v40  ;;  %v3358_v24 = vpack.c.bf16 (%p1091_p0), %v2823_v10, %v2822_v40 }
 0x5e5   :  { %v3562_v39 = vmov 0.0   ;;  %3362 = vmatpush3.bf16.msra.mxu1 %v3361_v61 }
 0x5e6   :  { %3284 = vmatprep.mubr.msk.f32.mxu0 %vm3561_vm13, %v3562_v39  ;;  %3363 = vmatprep.subr.bf16.mxu1 %v3560_v20 }
 0x5e7   :  { %3295 = vmatprep.mubr.msk.f32.mxu1 %vm3561_vm13, %v3562_v39  ;;  %3359 = vmatpush3.bf16.msra.mxu0 %v3358_v24 }
 0x5e8   :  { %3366 = vmatprep.subr.bf16.mxu0 %v3560_v20 }
 0x5e9   :  { %3365 = vmatpush3.bf16.msra.mxu1 %v3364_v16 }
 0x5ea   :  { %3305 = vmatprep.subr.mxu1 %v3562_v39  ;;  %3285 = vmatmul.mubr.msk.f32.vlgmr.msra.gmra.mrb[0].mxu0 %vm195_vm0, %v2824_v34 }
 0x5eb   :  { %3302 = vmatprep.mubr.msk.f32.mxu0 %vm3561_vm13, %v3562_v39  ;;  %3368 = vmatpush3.bf16.msra.mxu0 %v3367_v53 }
 0x6bd   :  { %v2894_v8 = vpop.f32.mrb[0].mxu0 }
 0x6be   :  { %v3286_v9 = vpop.f32.mrb[1].mxu0  ;;  %3296 = vmatmul.mubr.msk.f32.vlgmr.msra.gmra.mrb[0].mxu1 %vm195_vm0, %v2894_v8  ;;  %vm2992_vm0 = vcmask 130048  }
 0x6bf   :  { %3307 = vmatprep.mubr.msk.f32.mxu1 %vm3561_vm13, %v3562_v39  ;;  %3306 = vmatpush3.msra.mxu1 %v3067_v21 }
 0x791   :  { %v2978_v45 = vpop.f32.mrb[0].mxu1 }
 0x792   :  { %v2979_v22 = vadd.f32 %v3200_v14, %v2978_v45  ;;  %v3297_v3 = vpop.f32.mrb[1].mxu1 }
 0x794   :  { %v2982_v46 = vmax.f32 %v2979_v22, 0.0 }
 0x796   :  { %3303 = vmatmul.mubr.msk.f32.vlgmr.msra.gmra.mrb[2].mxu0 %vm2992_vm0, %v2982_v46 }
 0x869   :  { %v3062_v31 = vpop.f32.mrb[2].mxu0 }
 0x86a   :  { %v3063_v28 = vadd.f32 %v3202_v2, %v3062_v31  ;;  %v3304_v55 = vpop.f32.mrb[3].mxu0 }
 0x86c   :  { %v3066_v62 = vmax.f32 %v3063_v28, 0.0 }
 0x86e   :  { %3308 = vmatmul.mubr.msk.f32.vlgmr.msra.gmra.mrb[2].mxu1 %vm7776_vm14, %v3066_v62 }
 0x941   :  { %v3144_v25 = vpop.f32.mrb[2].mxu1 }
 0x942   :  { %v3145_v59 = vadd.f32 %v3204_v29, %v3144_v25  ;;  %v3309_v4 = vpop.f32.mrb[3].mxu1 }
 0x944   :  { %3149 = vst.msk [vmem:[%s6710_s19] sm:$0xf] %vm3148_vm15, %v3145_v59 }

</bundles_post_ra>
